<compile_context>
chip_gen: v5e
topology: v5e:2x2
jax: 0.10.0
libtpu: 0.0.40
codegen_flags: <defaults>
</compile_context>

<pallas_src>
import jax
import jax.numpy as jnp
from jax.experimental import pallas as pl
from jax.experimental.pallas import tpu as pltpu


def _leaky_relu(x, slope=0.2):
    return jnp.where(x > 0, x, slope * x)


def _round_up(x, m):
    return (x + m - 1) // m * m


def disc_mlp_kernel(x_ref, lab_ref,
                    emb_ref,
                    w1_ref,
                    w2_ref, b2_ref,
                    w3_ref, b3_ref,
                    w4_ref, b4_ref,
                    out_ref):
    # x:   (TB, 784) f32 image tile (cast to bf16 here, not in the wrapper)
    # lab: (TB, 1)   int32 labels
    # emb: (16, 1024) bf16 table = label_emb @ w1[784:] + b1 (padded rows 10..15 = 0)
    tb = x_ref.shape[0]
    n_cls = emb_ref.shape[0]

    # In-kernel label-embedding "gather": one-hot (TB, 16) bf16 matmul against the
    # VMEM-resident table.  Exactly one 1.0 per row, so with f32 accumulation this
    # reproduces the gathered bf16 row exactly.
    onehot = (lab_ref[...] ==
              jax.lax.broadcasted_iota(jnp.int32, (tb, n_cls), 1)).astype(jnp.bfloat16)
    emb = jnp.dot(onehot, emb_ref[...], preferred_element_type=jnp.float32)

    # Layer 1: image half of w1 (bf16); label branch + b1 already folded into `emb`.
    h1 = jnp.dot(x_ref[...].astype(jnp.bfloat16), w1_ref[...],
                 preferred_element_type=jnp.float32) + emb
    h1 = _leaky_relu(h1)

    h2 = jnp.dot(h1.astype(jnp.bfloat16), w2_ref[...],
                 preferred_element_type=jnp.float32) + b2_ref[...]
    h2 = _leaky_relu(h2)

    h3 = jnp.dot(h2.astype(jnp.bfloat16), w3_ref[...],
                 preferred_element_type=jnp.float32) + b3_ref[...]
    h3 = _leaky_relu(h3)

    # 256 -> 1 head, lane-dense: (1, 256) @ (TB, 256)^T -> (1, TB)  (trans-B dot).
    z = jax.lax.dot_general(
        w4_ref[...], h3.astype(jnp.bfloat16),
        dimension_numbers=(((1,), (1,)), ((), ())),
        preferred_element_type=jnp.float32) + b4_ref[...]
    out_ref[...] = pl.reciprocal(1.0 + jnp.exp(-z), approx=True)


def conditional_discriminator_forward(img, labels, prep, *, tb=512):
    """img: (B, 784) f32, labels: (B,) int in [0, 10). Returns (B, 1) f32."""
    B = img.shape[0]
    if B <= tb:
        TB, Bp = B, B                   # single grid step, zero padding
    else:
        TB = tb
        Bp = _round_up(B, TB)

    x = img.astype(jnp.float32)
    lab = labels.astype(jnp.int32).reshape(B, 1)
    if Bp != B:                         # only for large, non-multiple batches
        x = jnp.pad(x, ((0, Bp - B), (0, 0)))
        lab = jnp.pad(lab, ((0, Bp - B), (0, 0)))

    n_tiles = Bp // TB

    def const_spec(arr):
        return pl.BlockSpec(arr.shape, lambda i: (0,) * arr.ndim)

    flops_per_row = 2 * (16 * 1024 + 784 * 1024 + 1024 * 512 + 512 * 256 + 256)
    weight_bytes = ((784 * 1024 + 1024 * 512 + 512 * 256 + 16 * 1024 + 256) * 2
                    + (512 + 256 + 1) * 4)
    cost = pl.CostEstimate(
        flops=flops_per_row * Bp,
        transcendentals=Bp,
        bytes_accessed=weight_bytes + Bp * (784 * 4 + 4 + 4),
    )

    out = pl.pallas_call(
        disc_mlp_kernel,
        out_shape=jax.ShapeDtypeStruct((n_tiles, 1, TB), jnp.float32),
        grid=(n_tiles,),
        in_specs=[
            pl.BlockSpec((TB, 784), lambda i: (i, 0)),   # f32 img tile
            pl.BlockSpec((TB, 1), lambda i: (i, 0)),     # int32 label tile
            const_spec(prep["emb_proj"]),
            const_spec(prep["w1_img"]),
            const_spec(prep["w2"]), const_spec(prep["b2"]),
            const_spec(prep["w3"]), const_spec(prep["b3"]),
            const_spec(prep["w4_row"]), const_spec(prep["b4"]),
        ],
        out_specs=pl.BlockSpec((None, 1, TB), lambda i: (i, 0, 0)),  # lane-dense (1, TB)
        compiler_params=pltpu.CompilerParams(
            dimension_semantics=("arbitrary",) if n_tiles == 1 else ("parallel",),
            vmem_limit_bytes=32 << 20,
        ),
        cost_estimate=cost,
    )(x, lab,
      prep["emb_proj"], prep["w1_img"],
      prep["w2"], prep["b2"],
      prep["w3"], prep["b3"],
      prep["w4_row"], prep["b4"])

    return out.reshape(Bp, 1)[:B]


def init_params(key):
    """Deterministic init matching the PyTorch module's shapes.
    Linear weights stored already transposed as (in, out) for x @ W."""
    ks = jax.random.split(key, 9)

    def linear(kw, kb, fan_in, fan_out):
        bound = 1.0 / jnp.sqrt(jnp.float32(fan_in))
        w = jax.random.uniform(kw, (fan_in, fan_out), jnp.float32, -bound, bound)
        b = jax.random.uniform(kb, (1, fan_out), jnp.float32, -bound, bound)
        return w, b

    label_emb = jax.random.normal(ks[0], (10, 784), jnp.float32)  # nn.Embedding ~ N(0,1)
    w1, b1 = linear(ks[1], ks[2], 784 + 784, 1024)
    w2, b2 = linear(ks[3], ks[4], 1024, 512)
    w3, b3 = linear(ks[5], ks[6], 512, 256)
    w4, b4 = linear(ks[7], ks[8], 256, 1)
    return {"label_emb": label_emb,
            "w1": w1, "b1": b1, "w2": w2, "b2": b2,
            "w3": w3, "b3": b3, "w4": w4, "b4": b4}


def prepare_params(params):
    """One-time prep (off the hot path): fold the label-embedding branch of layer 1
    (and b1) into a small gather table (padded to 16 classes, bf16); cast the
    streamed weights to bf16."""
    w1 = params["w1"]
    emb_proj = params["label_emb"] @ w1[784:, :] + params["b1"]   # (10, 1024) f32
    emb_proj = jnp.pad(emb_proj, ((0, 6), (0, 0)))                # pad classes 10 -> 16
    return {
        "emb_proj": emb_proj.astype(jnp.bfloat16),                # (16, 1024) VMEM table
        "w1_img": w1[:784, :].astype(jnp.bfloat16),
        "w2": params["w2"].astype(jnp.bfloat16), "b2": params["b2"],
        "w3": params["w3"].astype(jnp.bfloat16), "b3": params["b3"],
        "w4_row": params["w4"].reshape(1, 256).astype(jnp.bfloat16),
        "b4": params["b4"].reshape(1, 1).astype(jnp.float32),
    }


def reference_forward_matched(img, labels, prep):
    """Pure-JAX reference with the SAME precision scheme as the kernel."""
    emb = prep["emb_proj"][labels].astype(jnp.float32)            # bf16 table gather
    h1 = jnp.dot(img.astype(jnp.bfloat16), prep["w1_img"],
                 preferred_element_type=jnp.float32) + emb
    h1 = jnp.where(h1 > 0, h1, 0.2 * h1)
    h2 = jnp.dot(h1.astype(jnp.bfloat16), prep["w2"],
                 preferred_element_type=jnp.float32) + prep["b2"]
    h2 = jnp.where(h2 > 0, h2, 0.2 * h2)
    h3 = jnp.dot(h2.astype(jnp.bfloat16), prep["w3"],
                 preferred_element_type=jnp.float32) + prep["b3"]
    h3 = jnp.where(h3 > 0, h3, 0.2 * h3)
    z = jnp.dot(h3.astype(jnp.bfloat16), prep["w4_row"].T,
                preferred_element_type=jnp.float32) + prep["b4"]
    return jax.nn.sigmoid(z)


def reference_forward_f32(img, labels, params):
    """Pure-f32 reference of the exact PyTorch forward (sanity only)."""
    x = jnp.concatenate([img, params["label_emb"][labels]], axis=1)
    h = x @ params["w1"] + params["b1"]
    h = jnp.where(h > 0, h, 0.2 * h)
    h = h @ params["w2"] + params["b2"]
    h = jnp.where(h > 0, h, 0.2 * h)
    h = h @ params["w3"] + params["b3"]
    h = jnp.where(h > 0, h, 0.2 * h)
    return jax.nn.sigmoid(h @ params["w4"] + params["b4"])


if __name__ == "__main__":
    key = jax.random.PRNGKey(0)
    k_img, k_lab, k_par = jax.random.split(key, 3)

    B = 2
    img = jax.random.normal(k_img, (B, 784), jnp.float32)          # flattened 28x28
    labels = jax.random.randint(k_lab, (B,), 0, 10, jnp.int32)
    params = init_params(k_par)
    prep = prepare_params(params)

    out = conditional_discriminator_forward(img, labels, prep)
    out = jax.block_until_ready(out)

    assert out.shape == (B, 1)

    ref = reference_forward_matched(img, labels, prep)
    assert jnp.allclose(out, ref, atol=2e-3), float(jnp.max(jnp.abs(out - ref)))

    # Sanity (not asserted tightly): bf16-weight output stays close to the f32 module.
    ref32 = reference_forward_f32(img, labels, params)
    _max_f32_diff = float(jnp.max(jnp.abs(out - ref32)))

    print("KERNEL_OK")
</pallas_src>

<mosaic_0001>
module attributes {stable_mosaic.version = 11 : i64} {
  func.func @disc_mlp_kernel(%arg0: i32, %arg1: memref<2x784xf32, #tpu.memory_space<vmem>>, %arg2: memref<2x1xi32, #tpu.memory_space<vmem>>, %arg3: memref<16x1024xbf16, #tpu.memory_space<vmem>>, %arg4: memref<784x1024xbf16, #tpu.memory_space<vmem>>, %arg5: memref<1024x512xbf16, #tpu.memory_space<vmem>>, %arg6: memref<1x512xf32, #tpu.memory_space<vmem>>, %arg7: memref<512x256xbf16, #tpu.memory_space<vmem>>, %arg8: memref<1x256xf32, #tpu.memory_space<vmem>>, %arg9: memref<1x256xbf16, #tpu.memory_space<vmem>>, %arg10: memref<1x1xf32, #tpu.memory_space<vmem>>, %arg11: memref<1x1x2xf32, #tpu.memory_space<vmem>>) attributes {dimension_semantics = [#tpu.dimension_semantics<arbitrary>], iteration_bounds = array<i64: 1>, scalar_prefetch = 0 : i64, scratch_operands = 0 : i64, tpu.core_type = #tpu.core_type<tc>, window_params = [{transform_indices = @transform_0, window_bounds = array<i64: 2, 784>}, {transform_indices = @transform_1, window_bounds = array<i64: 2, 1>}, {pipeline_mode = #tpu.pipeline_mode<synchronous>, transform_indices = @transform_2, window_bounds = array<i64: 16, 1024>}, {pipeline_mode = #tpu.pipeline_mode<synchronous>, transform_indices = @transform_3, window_bounds = array<i64: 784, 1024>}, {pipeline_mode = #tpu.pipeline_mode<synchronous>, transform_indices = @transform_4, window_bounds = array<i64: 1024, 512>}, {pipeline_mode = #tpu.pipeline_mode<synchronous>, transform_indices = @transform_5, window_bounds = array<i64: 1, 512>}, {pipeline_mode = #tpu.pipeline_mode<synchronous>, transform_indices = @transform_6, window_bounds = array<i64: 512, 256>}, {pipeline_mode = #tpu.pipeline_mode<synchronous>, transform_indices = @transform_7, window_bounds = array<i64: 1, 256>}, {pipeline_mode = #tpu.pipeline_mode<synchronous>, transform_indices = @transform_8, window_bounds = array<i64: 1, 256>}, {pipeline_mode = #tpu.pipeline_mode<synchronous>, transform_indices = @transform_9, window_bounds = array<i64: 1, 1>}, {transform_indices = @transform_10, window_bounds = array<i64: 1, 1, 2>}]} {
    %c0 = arith.constant 0 : index
    %c0_0 = arith.constant 0 : index
    %0 = vector.load %arg2[%c0, %c0_0] : memref<2x1xi32, #tpu.memory_space<vmem>>, vector<2x1xi32>
    %1 = tpu.iota {dimensions = array<i32: 1>} : vector<2x16xi32>
    %2 = vector.broadcast %0 : vector<2x1xi32> to vector<2x16xi32>
    %3 = arith.cmpi eq, %2, %1 : vector<2x16xi32>
    %4 = arith.extui %3 : vector<2x16xi1> to vector<2x16xi32>
    %5 = arith.sitofp %4 : vector<2x16xi32> to vector<2x16xf32>
    %6 = arith.truncf %5 : vector<2x16xf32> to vector<2x16xbf16>
    %c0_1 = arith.constant 0 : index
    %c0_2 = arith.constant 0 : index
    %7 = vector.load %arg3[%c0_1, %c0_2] : memref<16x1024xbf16, #tpu.memory_space<vmem>>, vector<16x1024xbf16>
    %cst = arith.constant dense<0.000000e+00> : vector<2x1024xf32>
    %8 = tpu.matmul %6, %7, %cst {dimension_numbers = #tpu.dot_dimension_numbers<[1], [0], [0], [1], [0, 0, 1, 1], [], []>} : vector<2x16xbf16>, vector<16x1024xbf16>, vector<2x1024xf32> -> vector<2x1024xf32>
    %c0_3 = arith.constant 0 : index
    %c0_4 = arith.constant 0 : index
    %9 = vector.load %arg1[%c0_3, %c0_4] : memref<2x784xf32, #tpu.memory_space<vmem>>, vector<2x784xf32>
    %10 = arith.truncf %9 : vector<2x784xf32> to vector<2x784xbf16>
    %c0_5 = arith.constant 0 : index
    %c0_6 = arith.constant 0 : index
    %11 = vector.load %arg4[%c0_5, %c0_6] : memref<784x1024xbf16, #tpu.memory_space<vmem>>, vector<784x1024xbf16>
    %cst_7 = arith.constant dense<0.000000e+00> : vector<2x1024xf32>
    %12 = tpu.matmul %10, %11, %cst_7 {dimension_numbers = #tpu.dot_dimension_numbers<[1], [0], [0], [1], [0, 0, 1, 1], [], []>} : vector<2x784xbf16>, vector<784x1024xbf16>, vector<2x1024xf32> -> vector<2x1024xf32>
    %13 = arith.addf %12, %8 : vector<2x1024xf32>
    %cst_8 = arith.constant 0.000000e+00 : f32
    %14 = vector.broadcast %cst_8 : f32 to vector<2x1024xf32>
    %15 = arith.cmpf ogt, %13, %14 : vector<2x1024xf32>
    %cst_9 = arith.constant 2.000000e-01 : f32
    %16 = vector.broadcast %cst_9 : f32 to vector<2x1024xf32>
    %17 = arith.mulf %16, %13 : vector<2x1024xf32>
    %18 = arith.select %15, %13, %17 : vector<2x1024xi1>, vector<2x1024xf32>
    %19 = arith.truncf %18 : vector<2x1024xf32> to vector<2x1024xbf16>
    %c0_10 = arith.constant 0 : index
    %c0_11 = arith.constant 0 : index
    %20 = vector.load %arg5[%c0_10, %c0_11] : memref<1024x512xbf16, #tpu.memory_space<vmem>>, vector<1024x512xbf16>
    %cst_12 = arith.constant dense<0.000000e+00> : vector<2x512xf32>
    %21 = tpu.matmul %19, %20, %cst_12 {dimension_numbers = #tpu.dot_dimension_numbers<[1], [0], [0], [1], [0, 0, 1, 1], [], []>} : vector<2x1024xbf16>, vector<1024x512xbf16>, vector<2x512xf32> -> vector<2x512xf32>
    %c0_13 = arith.constant 0 : index
    %c0_14 = arith.constant 0 : index
    %22 = vector.load %arg6[%c0_13, %c0_14] : memref<1x512xf32, #tpu.memory_space<vmem>>, vector<1x512xf32>
    %23 = vector.broadcast %22 : vector<1x512xf32> to vector<2x512xf32>
    %24 = arith.addf %21, %23 : vector<2x512xf32>
    %cst_15 = arith.constant 0.000000e+00 : f32
    %25 = vector.broadcast %cst_15 : f32 to vector<2x512xf32>
    %26 = arith.cmpf ogt, %24, %25 : vector<2x512xf32>
    %cst_16 = arith.constant 2.000000e-01 : f32
    %27 = vector.broadcast %cst_16 : f32 to vector<2x512xf32>
    %28 = arith.mulf %27, %24 : vector<2x512xf32>
    %29 = arith.select %26, %24, %28 : vector<2x512xi1>, vector<2x512xf32>
    %30 = arith.truncf %29 : vector<2x512xf32> to vector<2x512xbf16>
    %c0_17 = arith.constant 0 : index
    %c0_18 = arith.constant 0 : index
    %31 = vector.load %arg7[%c0_17, %c0_18] : memref<512x256xbf16, #tpu.memory_space<vmem>>, vector<512x256xbf16>
    %cst_19 = arith.constant dense<0.000000e+00> : vector<2x256xf32>
    %32 = tpu.matmul %30, %31, %cst_19 {dimension_numbers = #tpu.dot_dimension_numbers<[1], [0], [0], [1], [0, 0, 1, 1], [], []>} : vector<2x512xbf16>, vector<512x256xbf16>, vector<2x256xf32> -> vector<2x256xf32>
    %c0_20 = arith.constant 0 : index
    %c0_21 = arith.constant 0 : index
    %33 = vector.load %arg8[%c0_20, %c0_21] : memref<1x256xf32, #tpu.memory_space<vmem>>, vector<1x256xf32>
    %34 = vector.broadcast %33 : vector<1x256xf32> to vector<2x256xf32>
    %35 = arith.addf %32, %34 : vector<2x256xf32>
    %cst_22 = arith.constant 0.000000e+00 : f32
    %36 = vector.broadcast %cst_22 : f32 to vector<2x256xf32>
    %37 = arith.cmpf ogt, %35, %36 : vector<2x256xf32>
    %cst_23 = arith.constant 2.000000e-01 : f32
    %38 = vector.broadcast %cst_23 : f32 to vector<2x256xf32>
    %39 = arith.mulf %38, %35 : vector<2x256xf32>
    %40 = arith.select %37, %35, %39 : vector<2x256xi1>, vector<2x256xf32>
    %c0_24 = arith.constant 0 : index
    %c0_25 = arith.constant 0 : index
    %41 = vector.load %arg9[%c0_24, %c0_25] : memref<1x256xbf16, #tpu.memory_space<vmem>>, vector<1x256xbf16>
    %42 = arith.truncf %40 : vector<2x256xf32> to vector<2x256xbf16>
    %cst_26 = arith.constant dense<0.000000e+00> : vector<1x2xf32>
    %43 = tpu.matmul %41, %42, %cst_26 {dimension_numbers = #tpu.dot_dimension_numbers<[1], [1], [0], [0], [0, 0, 1, 0], [], []>} : vector<1x256xbf16>, vector<2x256xbf16>, vector<1x2xf32> -> vector<1x2xf32>
    %c0_27 = arith.constant 0 : index
    %c0_28 = arith.constant 0 : index
    %44 = vector.load %arg10[%c0_27, %c0_28] : memref<1x1xf32, #tpu.memory_space<vmem>>, vector<1x1xf32>
    %45 = vector.broadcast %44 : vector<1x1xf32> to vector<1x2xf32>
    %46 = arith.addf %43, %45 : vector<1x2xf32>
    %cst_29 = arith.constant 0.000000e+00 : f32
    %47 = vector.broadcast %cst_29 : f32 to vector<1x2xf32>
    %48 = arith.subf %47, %46 : vector<1x2xf32>
    %49 = math.exp %48 : vector<1x2xf32>
    %cst_30 = arith.constant 1.000000e+00 : f32
    %50 = vector.broadcast %cst_30 : f32 to vector<1x2xf32>
    %51 = arith.addf %50, %49 : vector<1x2xf32>
    %52 = tpu.reciprocal %51 {approx = true} : vector<1x2xf32> -> vector<1x2xf32>
    %c0_31 = arith.constant 0 : index
    %c0_32 = arith.constant 0 : index
    %c0_33 = arith.constant 0 : index
    %53 = vector.load %arg11[%c0_31, %c0_32, %c0_33] : memref<1x1x2xf32, #tpu.memory_space<vmem>>, vector<1x1x2xf32>
    %54 = vector.shape_cast %53 : vector<1x1x2xf32> to vector<1x2xf32>
    %55 = vector.shape_cast %52 : vector<1x2xf32> to vector<1x1x2xf32>
    tpu.vector_store %arg11[%c0_31, %c0_32, %c0_33], %55 {strides = array<i32>} : memref<1x1x2xf32, #tpu.memory_space<vmem>>, vector<1x1x2xf32>,
    return
  }
  func.func @transform_0(%arg0: i32) -> (i32, i32) {
    %c0_i32 = arith.constant 0 : i32
    %c0_i32_0 = arith.constant 0 : i32
    return %arg0, %c0_i32 : i32, i32
  }
  func.func @transform_1(%arg0: i32) -> (i32, i32) {
    %c0_i32 = arith.constant 0 : i32
    %c0_i32_0 = arith.constant 0 : i32
    return %arg0, %c0_i32 : i32, i32
  }
  func.func @transform_2(%arg0: i32) -> (i32, i32) {
    %c0_i32 = arith.constant 0 : i32
    %c0_i32_0 = arith.constant 0 : i32
    %c0_i32_1 = arith.constant 0 : i32
    return %c0_i32, %c0_i32_0 : i32, i32
  }
  func.func @transform_3(%arg0: i32) -> (i32, i32) {
    %c0_i32 = arith.constant 0 : i32
    %c0_i32_0 = arith.constant 0 : i32
    %c0_i32_1 = arith.constant 0 : i32
    return %c0_i32, %c0_i32_0 : i32, i32
  }
  func.func @transform_4(%arg0: i32) -> (i32, i32) {
    %c0_i32 = arith.constant 0 : i32
    %c0_i32_0 = arith.constant 0 : i32
    %c0_i32_1 = arith.constant 0 : i32
    return %c0_i32, %c0_i32_0 : i32, i32
  }
  func.func @transform_5(%arg0: i32) -> (i32, i32) {
    %c0_i32 = arith.constant 0 : i32
    %c0_i32_0 = arith.constant 0 : i32
    %c0_i32_1 = arith.constant 0 : i32
    return %c0_i32, %c0_i32_0 : i32, i32
  }
  func.func @transform_6(%arg0: i32) -> (i32, i32) {
    %c0_i32 = arith.constant 0 : i32
    %c0_i32_0 = arith.constant 0 : i32
    %c0_i32_1 = arith.constant 0 : i32
    return %c0_i32, %c0_i32_0 : i32, i32
  }
  func.func @transform_7(%arg0: i32) -> (i32, i32) {
    %c0_i32 = arith.constant 0 : i32
    %c0_i32_0 = arith.constant 0 : i32
    %c0_i32_1 = arith.constant 0 : i32
    return %c0_i32, %c0_i32_0 : i32, i32
  }
  func.func @transform_8(%arg0: i32) -> (i32, i32) {
    %c0_i32 = arith.constant 0 : i32
    %c0_i32_0 = arith.constant 0 : i32
    %c0_i32_1 = arith.constant 0 : i32
    return %c0_i32, %c0_i32_0 : i32, i32
  }
  func.func @transform_9(%arg0: i32) -> (i32, i32) {
    %c0_i32 = arith.constant 0 : i32
    %c0_i32_0 = arith.constant 0 : i32
    %c0_i32_1 = arith.constant 0 : i32
    return %c0_i32, %c0_i32_0 : i32, i32
  }
  func.func @transform_10(%arg0: i32) -> (i32, i32, i32) {
    %c0_i32 = arith.constant 0 : i32
    %c0_i32_0 = arith.constant 0 : i32
    %c0_i32_1 = arith.constant 0 : i32
    return %arg0, %c0_i32, %c0_i32_0 : i32, i32, i32
  }
}

</mosaic_0001>

<bundles_post_ra>
// kernel: tpu_custom_call.1
= control target key start
LH: loop header
LB: loop body
LE: loop exit
PB: predicated region body
PF: predicated region fallthrough
CT: control target
= control target key end

     0   :  { %s10305_s0 = inlined_call_operand.hbm [shape: f32[2,784], index: 0, kind: input, shape index: {}]   ;;  %s10306_s1 = inlined_call_operand.vmem [shape: s32[2,1], index: 1, kind: input, shape index: {}]   ;;  %s10307_s2 = inlined_call_operand.hbm [shape: bf16[16,1024], index: 2, kind: input, shape index: {}]   ;;  %s10308_s3 = inlined_call_operand.hbm [shape: bf16[784,1024], index: 3, kind: input, shape index: {}]   ;;  %s10309_s4 = inlined_call_operand.hbm [shape: bf16[1024,512], index: 4, kind: input, shape index: {}]   ;;  %s10310_s5 = inlined_call_operand.hbm [shape: f32[1,512], index: 5, kind: input, shape index: {}]   ;;  %s10311_s6 = inlined_call_operand.hbm [shape: bf16[512,256], index: 6, kind: input, shape index: {}]   ;;  %s10312_s7 = inlined_call_operand.hbm [shape: f32[1,256], index: 7, kind: input, shape index: {}]   ;;  %s10313_s8 = inlined_call_operand.hbm [shape: bf16[1,256], index: 8, kind: input, shape index: {}]   ;;  %s10314_s9 = inlined_call_operand.<no memory space> [shape: f32[1,1], index: 9, kind: input, shape index: {}]   ;;  %s10315_s10 = inlined_call_operand.hbm [shape: f32[1,1,2], index: 10, kind: output, shape index: {}]  }
   0x1   :  { %v15_v0 = vstv %s10314_s9 }
   0x2   :  { %16 = vst [vmem:[#allocation2] sm:$0x1] %v15_v0 }
   0x3   :  { %17 = vsyncpa [#allocation4], 0 }
   0x4   :  { %18 = vsyncpa [#allocation7], 0 }
   0x5   :  { %19 = vsyncpa [#allocation10], 0 }
   0x6   :  { %20 = vsyncpa [#allocation13], 0 }
   0x7   :  { %21 = vsyncpa [#allocation16], 0  ;;  %s40_s17 = sshll.u32 %s10307_s2, 4  ;;  %s41_s17 = int_to_ptr.hbm [resolvable:$true] %s40_s17 }
   0x8   :  { %22 = vsyncpa [#allocation5], 0  ;;  %s9881_s18 = smov [#allocation6]   ;;  %s66_s22 = sshll.u32 %s10309_s4, 4  ;;  %s67_s22 = int_to_ptr.hbm [resolvable:$true] %s66_s22 }
   0x9   :  { %s42_s19 = sshll.u32 %s9881_s18, 4  ;;  %s9882_s9 = smov 512   ;;  %s43_s19 = int_to_ptr.vmem [resolvable:$true] %s42_s19 }
   0xa   :  { %s9883_s23 = smov 32   ;;  %s9884_s24 = smov [#allocation9]  }
   0xb   :  { %48 = dma.hbm_to_vmem [thread:$0]  %s41_s17, 1024, %s43_s19, [#allocation7], %s9882_s9, %s9882_s9, %s9883_s23  }
   0xc   :  { %s68_s25 = sshll.u32 %s9884_s24, 4  ;;  %s9885_s2 = smov 256   ;;  %s69_s25 = int_to_ptr.vmem [resolvable:$true] %s68_s25 }
   0xd   :  { %s9886_s26 = smov 16   ;;  %s90_s29 = sshll.u32 %s10311_s6, 4  ;;  %s91_s29 = int_to_ptr.hbm [resolvable:$true] %s90_s29 }
   0xe   :  { %74 = dma.hbm_to_vmem [thread:$0]  %s67_s22, 32768, %s69_s25, [#allocation10], %s9885_s2, %s9885_s2, %s9886_s26  }
   0xf   :  { %s9887_s30 = smov [#allocation12]   ;;  %s28_s13 = sshll.u32 %s10305_s0, 4  ;;  %s29_s13 = int_to_ptr.hbm [resolvable:$true] %s28_s13 }
  0x10   :  { %s92_s4 = sshll.u32 %s9887_s30, 4  ;;  %s9888_s14 = smov 128   ;;  %s93_s4 = int_to_ptr.vmem [resolvable:$true] %s92_s4 }
  0x11   :  { %s9889_s15 = smov 8   ;;  %s9890_s16 = smov [#allocation3]  }
  0x12   :  { %98 = dma.hbm_to_vmem [thread:$0]  %s91_s29, 8192, %s93_s4, [#allocation13], %s9888_s14, %s9888_s14, %s9889_s15  }
  0x13   :  { %s30_s17 = sshll.u32 %s9890_s16, 4  ;;  %s53_s20 = sshll.u32 %s10308_s3, 4  ;;  %s31_s17 = int_to_ptr.vmem [resolvable:$true] %s30_s17  ;;  %s54_s20 = int_to_ptr.hbm [resolvable:$true] %s53_s20 }
  0x14   :  { %33 = dma.hbm_to_vmem [thread:$0]  %s29_s13, 224, %s31_s17, [#allocation4]  }
  0x15   :  { %s80_s22 = sshll.u32 %s10310_s5, 4  ;;  %s9891_s24 = smov [#allocation8]   ;;  %s81_s22 = int_to_ptr.hbm [resolvable:$true] %s80_s22 }
  0x16   :  { %s55_s25 = sshll.u32 %s9891_s24, 4  ;;  %s9892_s0 = smov [#allocation11]   ;;  %s56_s25 = int_to_ptr.vmem [resolvable:$true] %s55_s25 }
  0x17   :  { %61 = dma.hbm_to_vmem [thread:$0]  %s54_s20, 50176, %s56_s25, [#allocation7], %s9882_s9, %s9882_s9, %s9883_s23  }
  0x18   :  { %s82_s2 = sshll.u32 %s9892_s0, 4  ;;  %s104_s3 = sshll.u32 %s10312_s7, 4  ;;  %s83_s2 = int_to_ptr.vmem [resolvable:$true] %s82_s2  ;;  %s105_s3 = int_to_ptr.hbm [resolvable:$true] %s104_s3 }
  0x19   :  { %85 = dma.hbm_to_vmem [thread:$0]  %s81_s22, 64, %s83_s2, [#allocation10]  }
  0x1a   :  { %s115_s5 = sshll.u32 %s10313_s8, 4  ;;  %s9893_s30 = smov [#allocation14]   ;;  %s116_s5 = int_to_ptr.hbm [resolvable:$true] %s115_s5 }
  0x1b   :  { %s106_s4 = sshll.u32 %s9893_s30, 4  ;;  %s9894_s11 = smov [#allocation15]   ;;  %s107_s4 = int_to_ptr.vmem [resolvable:$true] %s106_s4 }
  0x1c   :  { %109 = dma.hbm_to_vmem [thread:$0]  %s105_s3, 32, %s107_s4, [#allocation13]  }
  0x1d   :  { %s117_s9 = sshll.u32 %s9894_s11, 4  ;;  %s118_s9 = int_to_ptr.vmem [resolvable:$true] %s117_s9 }
  0x1e   :  { %120 = dma.hbm_to_vmem [thread:$0]  %s116_s5, 32, %s118_s9, [#allocation16]  }
  0x1f   :  { %9869 = dma.done.wait [#allocation4], 224  }
  0x20   :  { %9870 = vsyncadd [#allocation4], 4294967072 }
  0x21   :  { %9871 = dma.done.wait [#allocation7], 51200  }
  0x22   :  { %9872 = vsyncadd [#allocation7], 4294916096 }
  0x23   :  { %9873 = dma.done.wait [#allocation10], 32832  }
  0x24   :  { %9874 = vsyncadd [#allocation10], 4294934464 }
  0x25   :  { %9875 = dma.done.wait [#allocation13], 8224  }
  0x26   :  { %9876 = vsyncadd [#allocation13], 4294959072 }
  0x27   :  { %9877 = dma.done.wait [#allocation16], 32  }
  0x28   :  { %9878 = vsyncadd [#allocation16], 4294967264  ;;  %v9895_v1 = vmov 0   ;;  %v156_v2 = vld [vmem:[%s10306_s1] sm:$0x3]  ;;  %v157_v28 = vlaneseq  ;;  %v322_v33 = vld [vmem:[#allocation3] sm:$0xff] }
  0x29   :  { %9647 = vset.pattern.permute.xlu0 %v9895_v1  ;;  %v5946_v3 = vld [vmem:[#allocation2] sm:$0x1]  ;;  %v6016_v4 = vld [vmem:[#allocation6] sm:$0xf]  ;;  %v8910_v6 = vld [vmem:[#allocation6 + $0x4] sm:$0xf] }
  0x2a   :  { %160 = vperm.xlu0 %9647, %v156_v2   ;;  %v8914_v5 = vld [vmem:[#allocation6 + $0x1c] sm:$0xf0]  ;;  %v6018_v8 = vld [vmem:[#allocation6 + $0x20] sm:$0xf0]  ;;  %v6024_v9 = vld [vmem:[#allocation6 + $0x8] sm:$0xf] }
  0x2b   :  { %v6017_v7 = vor.u32 %v8914_v5, %v6016_v4  ;;  %v8915_v10 = vld [vmem:[#allocation6 + $0x24] sm:$0xf0]  ;;  %v6021_v11 = vor.u32 %v8910_v6, %v6018_v8  ;;  %v8911_v13 = vld [vmem:[#allocation6 + $0xc] sm:$0xf]  ;;  %v6032_v16 = vld [vmem:[#allocation6 + $0x10] sm:$0xf] }
  0x2c   :  { %v6025_v12 = vor.u32 %v8915_v10, %v6024_v9  ;;  %v6026_v14 = vld [vmem:[#allocation6 + $0x28] sm:$0xf0]  ;;  %v8916_v17 = vld [vmem:[#allocation6 + $0x2c] sm:$0xf0]  ;;  %v8912_v18 = vld [vmem:[#allocation6 + $0x14] sm:$0xf] }
  0x2d   :  { %225 = vmatpush.bf16.msra.mxu0 %v6017_v7  ;;  %v6029_v15 = vor.u32 %v8911_v13, %v6026_v14  ;;  %238 = vmatpush.bf16.msra.mxu1 %v6021_v11  ;;  %v6033_v19 = vor.u32 %v8916_v17, %v6032_v16  ;;  %v6034_v20 = vld [vmem:[#allocation6 + $0x30] sm:$0xf0]  ;;  %v6040_v21 = vld [vmem:[#allocation6 + $0x18] sm:$0xf]  ;;  %v8913_v25 = vld [vmem:[#allocation6 + $0x1c] sm:$0xf] }
  0x2e   :  { %251 = vmatpush.bf16.msra.mxu2 %v6025_v12  ;;  %v8917_v22 = vld [vmem:[#allocation6 + $0x34] sm:$0xf0]  ;;  %v6037_v23 = vor.u32 %v8912_v18, %v6034_v20  ;;  %v6042_v26 = vld [vmem:[#allocation6 + $0x38] sm:$0xf0]  ;;  %v158_v29 = vand.u32 127, %v157_v28  ;;  %v9896_v40 = vmov 0.0  }
  0x2f   :  { %264 = vmatpush.bf16.msra.mxu3 %v6029_v15  ;;  %v6041_v24 = vor.u32 %v8917_v22, %v6040_v21  ;;  %v6045_v27 = vor.u32 %v8913_v25, %v6042_v26  ;;  %v6280_v30 = vld [vmem:[#allocation8 + $0x1c0] sm:$0xf]  ;;  %326 = vst [vmem:[#allocation1] ss:$4 sm:$0xff] %v322_v33  ;;  %vm214_vm1 = vcmask 130048   ;;  %s9897_s1 = smov [#allocation17]  }
  0x30   :  { %v8978_v31 = vld [vmem:[#allocation8 + $0x1dc] sm:$0xf0]  ;;  %s5997_s23 = sshll.u32 %s9897_s1, 4  ;;  %s5999_s14 = sshll.u32 %s10315_s10, 4  ;;  %s5998_s23 = int_to_ptr.vmem [resolvable:$true] %s5997_s23  ;;  %s6000_s14 = int_to_ptr.hbm [resolvable:$true] %s5999_s14 }
  0x31   :  { %277 = vmatpush.bf16.msrb.mxu0 %v6033_v19  ;;  %290 = vmatpush.bf16.msrb.mxu1 %v6037_v23  ;;  %v6536_v32 = vld [vmem:[#allocation8 + $0x3c0] sm:$0xf]  ;;  %v6281_v43 = vor.u32 %v8978_v31, %v6280_v30 }
  0x32   :  { %5949 = vperm.xlu0 %9647, %v5946_v3   ;;  %303 = vmatpush.bf16.msrb.mxu2 %v6041_v24  ;;  %v9042_v35 = vld [vmem:[#allocation8 + $0x3dc] sm:$0xf0] }
  0x33   :  { %316 = vmatpush.bf16.msrb.mxu3 %v6045_v27  ;;  %v6792_v36 = vld [vmem:[#allocation8 + $0x5c0] sm:$0xf]  ;;  %v6537_v44 = vor.u32 %v9042_v35, %v6536_v32  ;;  %v323_v27 = vld [vmem:[#allocation3 + $0x8] sm:$0x3f] }
  0x34   :  { %v9106_v37 = vld [vmem:[#allocation8 + $0x5dc] sm:$0xf0]  ;;  %328 = vst [vmem:[#allocation1 + $0x20] ss:$4 sm:$0xff] %v323_v27  ;;  %v8966_v27 = vld [vmem:[#allocation8 + $0x184] sm:$0xf] }
  0x35   :  { %v7048_v38 = vld [vmem:[#allocation8 + $0x7c0] sm:$0xf]  ;;  %v6793_v47 = vor.u32 %v9106_v37, %v6792_v36 }
  0x36   :  { %v9170_v39 = vld [vmem:[#allocation8 + $0x7dc] sm:$0xf0] }
  0x37   :  { %v6248_v45 = vld [vmem:[#allocation8 + $0x180] sm:$0xf]  ;;  %v7049_v48 = vor.u32 %v9170_v39, %v7048_v38 }
  0x38   :  { %v8970_v46 = vld [vmem:[#allocation8 + $0x19c] sm:$0xf0] }
  0x39   :  { %v6504_v49 = vld [vmem:[#allocation8 + $0x380] sm:$0xf]  ;;  %v6249_v55 = vor.u32 %v8970_v46, %v6248_v45 }
  0x3a   :  { %v9034_v50 = vld [vmem:[#allocation8 + $0x39c] sm:$0xf0] }
  0x3b   :  { %v6760_v51 = vld [vmem:[#allocation8 + $0x580] sm:$0xf]  ;;  %v6505_v56 = vor.u32 %v9034_v50, %v6504_v49 }
  0x3c   :  { %v9098_v52 = vld [vmem:[#allocation8 + $0x59c] sm:$0xf0] }
  0x3d   :  { %v7016_v53 = vld [vmem:[#allocation8 + $0x780] sm:$0xf]  ;;  %v6761_v59 = vor.u32 %v9098_v52, %v6760_v51 }
  0x3e   :  { %v9162_v54 = vld [vmem:[#allocation8 + $0x79c] sm:$0xf0] }
  0x3f   :  { %v6216_v57 = vld [vmem:[#allocation8 + $0x140] sm:$0xf]  ;;  %v7017_v60 = vor.u32 %v9162_v54, %v7016_v53 }
  0x40   :  { %v8962_v58 = vld [vmem:[#allocation8 + $0x15c] sm:$0xf0] }
  0x41   :  { %v6472_v61 = vld [vmem:[#allocation8 + $0x340] sm:$0xf]  ;;  %v6217_v3 = vor.u32 %v8962_v58, %v6216_v57 }
  0x42   :  { %v9026_v62 = vld [vmem:[#allocation8 + $0x35c] sm:$0xf0] }
  0x43   :  { %v6728_v63 = vld [vmem:[#allocation8 + $0x540] sm:$0xf]  ;;  %v6473_v4 = vor.u32 %v9026_v62, %v6472_v61 }
  0x44   :  { %v9090_v0 = vld [vmem:[#allocation8 + $0x55c] sm:$0xf0] }
  0x45   :  { %v6984_v1 = vld [vmem:[#allocation8 + $0x740] sm:$0xf]  ;;  %v6729_v7 = vor.u32 %v9090_v0, %v6728_v63 }
  0x46   :  { %v9154_v2 = vld [vmem:[#allocation8 + $0x75c] sm:$0xf0] }
  0x47   :  { %v6184_v5 = vld [vmem:[#allocation8 + $0x100] sm:$0xf]  ;;  %v6985_v8 = vor.u32 %v9154_v2, %v6984_v1 }
  0x48   :  { %v8954_v6 = vld [vmem:[#allocation8 + $0x11c] sm:$0xf0] }
  0x49   :  { %v6440_v9 = vld [vmem:[#allocation8 + $0x300] sm:$0xf]  ;;  %v6185_v15 = vor.u32 %v8954_v6, %v6184_v5  ;;  %v6282_v5 = vld [vmem:[#allocation8 + $0x1e0] sm:$0xf0] }
  0x4a   :  { %v9018_v10 = vld [vmem:[#allocation8 + $0x31c] sm:$0xf0] }
  0x4b   :  { %v6696_v11 = vld [vmem:[#allocation8 + $0x500] sm:$0xf]  ;;  %v6441_v16 = vor.u32 %v9018_v10, %v6440_v9  ;;  %v9038_v10 = vld [vmem:[#allocation8 + $0x3c4] sm:$0xf] }
  0x4c   :  { %v9082_v12 = vld [vmem:[#allocation8 + $0x51c] sm:$0xf0] }
  0x4d   :  { %v6952_v13 = vld [vmem:[#allocation8 + $0x700] sm:$0xf]  ;;  %v6697_v20 = vor.u32 %v9082_v12, %v6696_v11  ;;  %v6538_v11 = vld [vmem:[#allocation8 + $0x3e0] sm:$0xf0] }
  0x4e   :  { %v9146_v14 = vld [vmem:[#allocation8 + $0x71c] sm:$0xf0] }
  0x4f   :  { %v6152_v17 = vld [vmem:[#allocation8 + $0xc0] sm:$0xf]  ;;  %v6953_v21 = vor.u32 %v9146_v14, %v6952_v13  ;;  %v329_v14 = vld.sshfl [vmem:[#allocation1] sm:$0xff pattern:$0x73625140] }
  0x50   :  { %v8946_v18 = vld [vmem:[#allocation8 + $0xdc] sm:$0xf0] }
  0x51   :  { %v6408_v19 = vld [vmem:[#allocation8 + $0x2c0] sm:$0xf]  ;;  %v6153_v28 = vor.u32 %v8946_v18, %v6152_v17 }
  0x52   :  { %v9010_v22 = vld [vmem:[#allocation8 + $0x2dc] sm:$0xf0] }
  0x53   :  { %v6664_v23 = vld [vmem:[#allocation8 + $0x4c0] sm:$0xf] }
  0x54   :  { %v9074_v24 = vld [vmem:[#allocation8 + $0x4dc] sm:$0xf0] }
  0x55   :  { %v6920_v25 = vld [vmem:[#allocation8 + $0x6c0] sm:$0xf]  ;;  %v6665_v32 = vor.u32 %v9074_v24, %v6664_v23 }
  0x56   :  { %v9138_v26 = vld [vmem:[#allocation8 + $0x6dc] sm:$0xf0] }
  0x57   :  { %v6120_v30 = vld [vmem:[#allocation8 + $0x80] sm:$0xf]  ;;  %v6921_v33 = vor.u32 %v9138_v26, %v6920_v25  ;;  %v10007_v25 = vpack.c.bf16 %v329_v14, %v329_v14 }
  0x58   :  { %v8938_v31 = vld [vmem:[#allocation8 + $0x9c] sm:$0xf0] }
  0x59   :  { %v9002_v35 = vld [vmem:[#allocation8 + $0x29c] sm:$0xf0] }
  0x5a   :  { %v6632_v36 = vld [vmem:[#allocation8 + $0x480] sm:$0xf] }
  0x5b   :  { %v9066_v37 = vld [vmem:[#allocation8 + $0x49c] sm:$0xf0] }
  0x5c   :  { %v6888_v38 = vld [vmem:[#allocation8 + $0x680] sm:$0xf]  ;;  %v6633_v45 = vor.u32 %v9066_v37, %v6632_v36 }
  0x5d   :  { %v9130_v39 = vld [vmem:[#allocation8 + $0x69c] sm:$0xf0] }
  0x5e   :  { %v6889_v46 = vor.u32 %v9130_v39, %v6888_v38  ;;  %v6600_v49 = vld [vmem:[#allocation8 + $0x440] sm:$0xf] }
  0x5f   :  { %v9058_v50 = vld [vmem:[#allocation8 + $0x45c] sm:$0xf0] }
  0x60   :  { %v6856_v51 = vld [vmem:[#allocation8 + $0x640] sm:$0xf] }
  0x61   :  { %v9122_v52 = vld [vmem:[#allocation8 + $0x65c] sm:$0xf0] }
  0x62   :  { %v6056_v53 = vld [vmem:[#allocation8] sm:$0xf]  ;;  %v6857_v61 = vor.u32 %v9122_v52, %v6856_v51 }
  0x63   :  { %v8922_v54 = vld [vmem:[#allocation8 + $0x1c] sm:$0xf0] }
  0x64   :  { %v8986_v57 = vld [vmem:[#allocation8 + $0x21c] sm:$0xf0] }
  0x65   :  { %v6568_v58 = vld [vmem:[#allocation8 + $0x400] sm:$0xf] }
  0x66   :  { %v6824_v62 = vld [vmem:[#allocation8 + $0x600] sm:$0xf] }
  0x67   :  { %v9114_v63 = vld [vmem:[#allocation8 + $0x61c] sm:$0xf0] }
  0x68   :  { %v7304_v0 = vld [vmem:[#allocation8 + $0x9c0] sm:$0xf]  ;;  %v6825_v13 = vor.u32 %v9114_v63, %v6824_v62 }
  0x69   :  { %v9234_v1 = vld [vmem:[#allocation8 + $0x9dc] sm:$0xf0] }
  0x6a   :  { %v7560_v2 = vld [vmem:[#allocation8 + $0xbc0] sm:$0xf] }
  0x6b   :  { %v7592_v6 = vld [vmem:[#allocation8 + $0xc00] sm:$0xf] }
  0x6c   :  { %v9306_v9 = vld [vmem:[#allocation8 + $0xc1c] sm:$0xf0] }
  0x6d   :  { %v7272_v18 = vld [vmem:[#allocation8 + $0x980] sm:$0xf] }
  0x6e   :  { %v7528_v23 = vld [vmem:[#allocation8 + $0xb80] sm:$0xf] }
  0x6f   :  { %v9290_v24 = vld [vmem:[#allocation8 + $0xb9c] sm:$0xf0] }
  0x70   :  { %v7240_v36 = vld [vmem:[#allocation8 + $0x940] sm:$0xf] }
  0x71   :  { %v9218_v38 = vld [vmem:[#allocation8 + $0x95c] sm:$0xf0] }
  0x72   :  { %v7496_v39 = vld [vmem:[#allocation8 + $0xb40] sm:$0xf] }
  0x73   :  { %v9210_v52 = vld [vmem:[#allocation8 + $0x91c] sm:$0xf0] }
  0x74   :  { %v9202_v63 = vld [vmem:[#allocation8 + $0x8dc] sm:$0xf0] }
  0x75   :  { %v9258_v14 = vld [vmem:[#allocation8 + $0xa9c] sm:$0xf0] }
  0x9c   :  { %v161_v34 = vpop.permute.xlu0 %160 }
  0x9d   :  { %vm162_vm0 = vcmp.eq.s32.totalorder %v161_v34, %v158_v29  ;;  %v6409_v29 = vor.u32 %v9010_v22, %v6408_v19  ;;  %v6376_v34 = vld [vmem:[#allocation8 + $0x280] sm:$0xf]  ;;  %v330_v19 = vld.sshfl [vmem:[#allocation1 + $0x8] sm:$0xff pattern:$0x73625140] }
  0x9e   :  { %v6013_v41 = vsel %vm162_vm0, 1.0, %v9896_v40  ;;  %v6121_v40 = vor.u32 %v8938_v31, %v6120_v30  ;;  %v9226_v22 = vld [vmem:[#allocation8 + $0x99c] sm:$0xf0]  ;;  %v10011_v30 = vpack.c.bf16 %v330_v19, %v330_v19  ;;  %vm5990_vm0 = vcmask 8192  }
  0x9f   :  { %v9989_v42 = vpack.c.bf16 %v6013_v41, %v6013_v41  ;;  %v6377_v41 = vor.u32 %v9002_v35, %v6376_v34  ;;  %v332_v31 = vld.sshfl [vmem:[#allocation1 + $0x18] sm:$0xff pattern:$0x73625140] }
  0xa0   :  { %v9030_v34 = vld [vmem:[#allocation8 + $0x384] sm:$0xf] }
  0xa1   :  { %6046 = vmatmul.msk.bf16.vlgmr.msra.gmra.mxu0 %vm214_vm1, %v9989_v42  ;;  %6047 = vmatmul.msk.bf16.vlgmr.msra.gmra.mxu1 %vm214_vm1, %v9989_v42  ;;  %v6506_v35 = vld [vmem:[#allocation8 + $0x3a0] sm:$0xf0] }
  0xa2   :  { %6048 = vmatmul.msk.bf16.vlgmr.msra.gmra.mxu2 %vm214_vm1, %v9989_v42  ;;  %6049 = vmatmul.msk.bf16.vlgmr.msra.gmra.mxu3 %vm214_vm1, %v9989_v42 }
  0xa3   :  { %2705 = vmatpush.bf16.msra.mxu0 %v6281_v43  ;;  %2718 = vmatpush.bf16.msra.mxu1 %v6537_v44  ;;  %v6088_v43 = vld [vmem:[#allocation8 + $0x40] sm:$0xf] }
  0xa4   :  { %2731 = vmatpush.bf16.msra.mxu2 %v6793_v47  ;;  %2744 = vmatpush.bf16.msra.mxu3 %v7049_v48  ;;  %v8930_v44 = vld [vmem:[#allocation8 + $0x5c] sm:$0xf0] }
  0xa5   :  { %v6344_v47 = vld [vmem:[#allocation8 + $0x240] sm:$0xf] }
  0xa6   :  { %v8994_v48 = vld [vmem:[#allocation8 + $0x25c] sm:$0xf0] }
  0xa7   :  { %2706 = vmatpush.bf16.msra.mxu0 %v6249_v55  ;;  %2719 = vmatpush.bf16.msra.mxu1 %v6505_v56  ;;  %v6312_v55 = vld [vmem:[#allocation8 + $0x200] sm:$0xf]  ;;  %v6345_v56 = vor.u32 %v8994_v48, %v6344_v47  ;;  %v9022_v48 = vld [vmem:[#allocation8 + $0x344] sm:$0xf] }
  0xa8   :  { %2732 = vmatpush.bf16.msra.mxu2 %v6761_v59  ;;  %2745 = vmatpush.bf16.msra.mxu3 %v7017_v60  ;;  %v9050_v59 = vld [vmem:[#allocation8 + $0x41c] sm:$0xf0]  ;;  %v6601_v60 = vor.u32 %v9058_v50, %v6600_v49  ;;  %v6474_v49 = vld [vmem:[#allocation8 + $0x360] sm:$0xf0] }
  0xa9   :  { %v6569_v12 = vor.u32 %v9050_v59, %v6568_v58  ;;  %v7208_v50 = vld [vmem:[#allocation8 + $0x900] sm:$0xf]  ;;  %v9014_v59 = vld [vmem:[#allocation8 + $0x304] sm:$0xf] }
  0xab   :  { %2707 = vmatpush.bf16.msra.mxu0 %v6217_v3  ;;  %2720 = vmatpush.bf16.msra.mxu1 %v6473_v4  ;;  %v9298_v3 = vld [vmem:[#allocation8 + $0xbdc] sm:$0xf0]  ;;  %v8974_v4 = vld [vmem:[#allocation8 + $0x1c4] sm:$0xf] }
  0xac   :  { %2733 = vmatpush.bf16.msra.mxu2 %v6729_v7  ;;  %2746 = vmatpush.bf16.msra.mxu3 %v6985_v8  ;;  %v6057_v7 = vor.u32 %v8922_v54, %v6056_v53  ;;  %v6313_v8 = vor.u32 %v8986_v57, %v6312_v55  ;;  %v7561_v17 = vor.u32 %v9298_v3, %v7560_v2  ;;  %v7464_v53 = vld [vmem:[#allocation8 + $0xb00] sm:$0xf]  ;;  %v8950_v55 = vld [vmem:[#allocation8 + $0x104] sm:$0xf] }
  0xad   :  { %v9274_v54 = vld [vmem:[#allocation8 + $0xb1c] sm:$0xf0]  ;;  %v7209_v57 = vor.u32 %v9210_v52, %v7208_v50  ;;  %v8942_v2 = vld [vmem:[#allocation8 + $0xc4] sm:$0xf] }
  0xae   :  { %v7465_v58 = vor.u32 %v9274_v54, %v7464_v53  ;;  %v6154_v3 = vld [vmem:[#allocation8 + $0xe0] sm:$0xf0]  ;;  %v333_v54 = vld.sshfl [vmem:[#allocation1 + $0x20] sm:$0xff pattern:$0x73625140] }
  0xaf   :  { %2708 = vmatpush.bf16.msra.mxu0 %v6185_v15  ;;  %2721 = vmatpush.bf16.msra.mxu1 %v6441_v16  ;;  %v331_v15 = vld.sshfl [vmem:[#allocation1 + $0x10] sm:$0xff pattern:$0x73625140]  ;;  %v7305_v16 = vor.u32 %v9234_v1, %v7304_v0  ;;  %v7050_v50 = vld [vmem:[#allocation8 + $0x7e0] sm:$0xf0] }
  0xb0   :  { %2734 = vmatpush.bf16.msra.mxu2 %v6697_v20  ;;  %2747 = vmatpush.bf16.msra.mxu3 %v6953_v21  ;;  %v6285_v20 = vor.u32 %v8974_v4, %v6282_v5  ;;  %v7593_v21 = vor.u32 %v9306_v9, %v7592_v6  ;;  %v10009_v26 = vpack.c.bf16 %v331_v15, %v331_v15  ;;  %v7432_v0 = vld [vmem:[#allocation8 + $0xac0] sm:$0xf]  ;;  %v6410_v9 = vld [vmem:[#allocation8 + $0x2e0] sm:$0xf0] }
  0xb1   :  { %6050 = vmatmul.msk.bf16.vlgmr.msrb.gmra.mxu0 %vm214_vm1, %v9989_v42  ;;  %6051 = vmatmul.msk.bf16.vlgmr.msrb.gmra.mxu1 %vm214_vm1, %v9989_v42  ;;  %v9266_v1 = vld [vmem:[#allocation8 + $0xadc] sm:$0xf0]  ;;  %v7306_v53 = vld [vmem:[#allocation8 + $0x9e0] sm:$0xf0] }
  0xb2   :  { %6052 = vmatmul.msk.bf16.vlgmr.msrb.gmra.mxu2 %vm214_vm1, %v9989_v42  ;;  %6053 = vmatmul.msk.bf16.vlgmr.msrb.gmra.mxu3 %vm214_vm1, %v9989_v42  ;;  %v6089_v42 = vor.u32 %v8930_v44, %v6088_v43  ;;  %v8958_v43 = vld [vmem:[#allocation8 + $0x144] sm:$0xf]  ;;  %v335_v5 = vld.sshfl [vmem:[#allocation1 + $0x30] sm:$0xff pattern:$0x73625140] }
  0xb3   :  { %2709 = vmatpush.bf16.msra.mxu0 %v6153_v28  ;;  %2722 = vmatpush.bf16.msra.mxu1 %v6409_v29  ;;  %v6250_v28 = vld [vmem:[#allocation8 + $0x1a0] sm:$0xf0]  ;;  %v6541_v29 = vor.u32 %v9038_v10, %v6538_v11  ;;  %v7144_v10 = vld [vmem:[#allocation8 + $0x880] sm:$0xf]  ;;  %v6157_v11 = vor.u32 %v8942_v2, %v6154_v3  ;;  %v10019_v15 = vpack.c.bf16 %v335_v5, %v335_v5 }
  0xb4   :  { %2735 = vmatpush.bf16.msra.mxu2 %v6665_v32  ;;  %2748 = vmatpush.bf16.msra.mxu3 %v6921_v33  ;;  %v7273_v32 = vor.u32 %v9226_v22, %v7272_v18  ;;  %v7529_v33 = vor.u32 %v9290_v24, %v7528_v23  ;;  %v6253_v37 = vor.u32 %v8966_v27, %v6250_v28  ;;  %v6218_v44 = vld [vmem:[#allocation8 + $0x160] sm:$0xf0]  ;;  %v7112_v23 = vld [vmem:[#allocation8 + $0x840] sm:$0xf] }
  0xb5   :  { %v6221_v51 = vor.u32 %v8958_v43, %v6218_v44  ;;  %v6378_v22 = vld [vmem:[#allocation8 + $0x2a0] sm:$0xf0]  ;;  %v9186_v27 = vld [vmem:[#allocation8 + $0x85c] sm:$0xf0] }
  0xb6   :  { %v7368_v28 = vld [vmem:[#allocation8 + $0xa40] sm:$0xf]  ;;  %v8918_v44 = vld [vmem:[#allocation8 + $0x4] sm:$0xf] }
  0xb7   :  { %2710 = vmatpush.bf16.msra.mxu0 %v6121_v40  ;;  %2723 = vmatpush.bf16.msra.mxu1 %v6377_v41  ;;  %v9282_v40 = vld [vmem:[#allocation8 + $0xb5c] sm:$0xf0]  ;;  %v10015_v41 = vpack.c.bf16 %v332_v31, %v332_v31  ;;  %v8926_v31 = vld [vmem:[#allocation8 + $0x44] sm:$0xf] }
  0xb8   :  { %2736 = vmatpush.bf16.msra.mxu2 %v6633_v45  ;;  %2749 = vmatpush.bf16.msra.mxu3 %v6889_v46  ;;  %v6509_v45 = vor.u32 %v9030_v34, %v6506_v35  ;;  %v7241_v46 = vor.u32 %v9218_v38, %v7240_v36  ;;  %v7497_v47 = vor.u32 %v9282_v40, %v7496_v39  ;;  %v6346_v35 = vld [vmem:[#allocation8 + $0x260] sm:$0xf0]  ;;  %v7080_v36 = vld [vmem:[#allocation8 + $0x800] sm:$0xf] }
  0xb9   :  { %v7113_v38 = vor.u32 %v9186_v27, %v7112_v23  ;;  %v7336_v40 = vld [vmem:[#allocation8 + $0xa00] sm:$0xf]  ;;  %v6762_v2 = vld [vmem:[#allocation8 + $0x5a0] sm:$0xf0] }
  0xba   :  { %v9242_v43 = vld [vmem:[#allocation8 + $0xa1c] sm:$0xf0]  ;;  %v9158_v3 = vld [vmem:[#allocation8 + $0x784] sm:$0xf] }
  0xbb   :  { %2711 = vmatpush.bf16.msra.mxu0 %v6089_v42  ;;  %2724 = vmatpush.bf16.msra.mxu1 %v6345_v56  ;;  %v6186_v42 = vld [vmem:[#allocation8 + $0x120] sm:$0xf0]  ;;  %v6477_v56 = vor.u32 %v9022_v48, %v6474_v49 }
  0xbc   :  { %2737 = vmatpush.bf16.msra.mxu2 %v6601_v60  ;;  %2750 = vmatpush.bf16.msra.mxu3 %v6857_v61  ;;  %v6442_v60 = vld [vmem:[#allocation8 + $0x320] sm:$0xf0]  ;;  %v7176_v61 = vld [vmem:[#allocation8 + $0x8c0] sm:$0xf]  ;;  %v6189_v62 = vor.u32 %v8950_v55, %v6186_v42  ;;  %v7337_v42 = vor.u32 %v9242_v43, %v7336_v40 }
  0xbd   :  { %v6445_v4 = vor.u32 %v9014_v59, %v6442_v60  ;;  %v7177_v6 = vor.u32 %v9202_v63, %v7176_v61  ;;  %v6794_v48 = vld [vmem:[#allocation8 + $0x5e0] sm:$0xf0] }
  0xbe   :  { %v9166_v49 = vld [vmem:[#allocation8 + $0x7c4] sm:$0xf] }
  0xbf   :  { %2712 = vmatpush.bf16.msra.mxu0 %v6057_v7  ;;  %2725 = vmatpush.bf16.msra.mxu1 %v6313_v8  ;;  %v7433_v7 = vor.u32 %v9266_v1, %v7432_v0  ;;  %v9006_v8 = vld [vmem:[#allocation8 + $0x2c4] sm:$0xf]  ;;  %v7053_v63 = vor.u32 %v9166_v49, %v7050_v50 }
  0xc0   :  { %2738 = vmatpush.bf16.msra.mxu2 %v6569_v12  ;;  %2751 = vmatpush.bf16.msra.mxu3 %v6825_v13  ;;  %v9194_v12 = vld [vmem:[#allocation8 + $0x89c] sm:$0xf0]  ;;  %v6413_v18 = vor.u32 %v9006_v8, %v6410_v9  ;;  %v7562_v61 = vld [vmem:[#allocation8 + $0xbe0] sm:$0xf0] }
  0xc1   :  { %v7400_v13 = vld [vmem:[#allocation8 + $0xa80] sm:$0xf]  ;;  %v7145_v19 = vor.u32 %v9194_v12, %v7144_v10  ;;  %v9094_v1 = vld [vmem:[#allocation8 + $0x584] sm:$0xf] }
  0xc2   :  { %2713 = vmatmul.bf16.vlgmr.msra.gmra.mxu0 %v10007_v25  ;;  %2726 = vmatmul.bf16.vlgmr.msra.gmra.mxu1 %v10011_v30  ;;  %v7274_v8 = vld [vmem:[#allocation8 + $0x9a0] sm:$0xf0] }
  0xc3   :  { %2757 = vmatpush.bf16.msrb.mxu0 %v7305_v16  ;;  %2770 = vmatpush.bf16.msrb.mxu1 %v7561_v17  ;;  %v8934_v16 = vld [vmem:[#allocation8 + $0x84] sm:$0xf] }
  0xc4   :  { %2796 = vmatpush.bf16.msrb.mxu3 %v6285_v20  ;;  %2790 = vmatpush.bf16.msrb.mxu2 %v7593_v21  ;;  %v6122_v17 = vld [vmem:[#allocation8 + $0xa0] sm:$0xf0]  ;;  %v7401_v20 = vor.u32 %v9258_v14, %v7400_v13 }
  0xc5   :  { %2739 = vmatmul.bf16.vlgmr.msra.gmra.mxu2 %v10009_v26  ;;  %2752 = vmatmul.bf16.vlgmr.msra.gmra.mxu3 %v10015_v41  ;;  %v8998_v21 = vld [vmem:[#allocation8 + $0x284] sm:$0xf]  ;;  %v6125_v24 = vor.u32 %v8934_v16, %v6122_v17 }
  0xc6   :  { %v6381_v34 = vor.u32 %v8998_v21, %v6378_v22  ;;  %v9286_v12 = vld [vmem:[#allocation8 + $0xb84] sm:$0xf] }
  0xc7   :  { %2758 = vmatpush.bf16.msrb.mxu0 %v7273_v32  ;;  %2771 = vmatpush.bf16.msrb.mxu1 %v7529_v33  ;;  %v6090_v32 = vld [vmem:[#allocation8 + $0x60] sm:$0xf0] }
  0xc8   :  { %2809 = vmatpush.bf16.msra.mxu2 %v6541_v29  ;;  %2797 = vmatpush.bf16.msrb.mxu3 %v6253_v37  ;;  %v9250_v29 = vld [vmem:[#allocation8 + $0xa5c] sm:$0xf0]  ;;  %v8990_v33 = vld [vmem:[#allocation8 + $0x244] sm:$0xf] }
  0xc9   :  { %v9178_v37 = vld [vmem:[#allocation8 + $0x81c] sm:$0xf0]  ;;  %v7369_v39 = vor.u32 %v9250_v29, %v7368_v28  ;;  %v6349_v52 = vor.u32 %v8990_v33, %v6346_v35  ;;  %v7530_v13 = vld [vmem:[#allocation8 + $0xba0] sm:$0xf0] }
  0xca   :  { %v7081_v55 = vor.u32 %v9178_v37, %v7080_v36  ;;  %v9086_v17 = vld [vmem:[#allocation8 + $0x544] sm:$0xf]  ;;  %v7533_v23 = vor.u32 %v9286_v12, %v7530_v13 }
  0xcb   :  { %2759 = vmatpush.bf16.msrb.mxu0 %v7241_v46  ;;  %2772 = vmatpush.bf16.msrb.mxu1 %v7497_v47  ;;  %v6058_v46 = vld [vmem:[#allocation8 + $0x20] sm:$0xf0] }
  0xcc   :  { %2810 = vmatpush.bf16.msra.mxu2 %v6509_v45  ;;  %2798 = vmatpush.bf16.msrb.mxu3 %v6221_v51  ;;  %v6093_v45 = vor.u32 %v8926_v31, %v6090_v32  ;;  %v9102_v47 = vld [vmem:[#allocation8 + $0x5c4] sm:$0xf]  ;;  %v6061_v59 = vor.u32 %v8918_v44, %v6058_v46 }
  0xcd   :  { %v9230_v51 = vld [vmem:[#allocation8 + $0x9c4] sm:$0xf]  ;;  %v6797_v60 = vor.u32 %v9102_v47, %v6794_v48 }
  0xce   :  { %v7309_v0 = vor.u32 %v9230_v51, %v7306_v53  ;;  %v9214_v21 = vld [vmem:[#allocation8 + $0x944] sm:$0xf] }
  0xcf   :  { %2760 = vmatpush.bf16.msrb.mxu0 %v7209_v57  ;;  %2773 = vmatpush.bf16.msrb.mxu1 %v7465_v58  ;;  %v6314_v57 = vld [vmem:[#allocation8 + $0x220] sm:$0xf0] }
  0xd0   :  { %2811 = vmatpush.bf16.msra.mxu2 %v6477_v56  ;;  %2799 = vmatpush.bf16.msrb.mxu3 %v6189_v62  ;;  %v8982_v56 = vld [vmem:[#allocation8 + $0x204] sm:$0xf]  ;;  %v334_v62 = vld.sshfl [vmem:[#allocation1 + $0x28] sm:$0xff pattern:$0x73625140] }
  0xd1   :  { %v9294_v58 = vld [vmem:[#allocation8 + $0xbc4] sm:$0xf]  ;;  %v6317_v5 = vor.u32 %v8982_v56, %v6314_v57  ;;  %v10025_v10 = vpack.c.bf16 %v334_v62, %v334_v62 }
  0xd2   :  { %v7565_v9 = vor.u32 %v9294_v58, %v7562_v61  ;;  %v7242_v22 = vld [vmem:[#allocation8 + $0x960] sm:$0xf0] }
  0xd3   :  { %2761 = vmatpush.bf16.msrb.mxu0 %v7177_v6  ;;  %2774 = vmatpush.bf16.msrb.mxu1 %v7433_v7  ;;  %v7018_v6 = vld [vmem:[#allocation8 + $0x7a0] sm:$0xf0]  ;;  %v7245_v31 = vor.u32 %v9214_v21, %v7242_v22 }
  0xd4   :  { %2812 = vmatpush.bf16.msra.mxu2 %v6445_v4  ;;  %2800 = vmatpush.bf16.msrb.mxu3 %v6157_v11  ;;  %v10023_v4 = vpack.c.bf16 %v333_v54, %v333_v54  ;;  %v9222_v7 = vld [vmem:[#allocation8 + $0x984] sm:$0xf]  ;;  %v6765_v11 = vor.u32 %v9094_v1, %v6762_v2  ;;  %v7021_v14 = vor.u32 %v9158_v3, %v7018_v6 }
  0xd5   :  { %7622 = vmatmul.msk.bf16.vlgmr.msrb.gmra.mxu2 %vm214_vm1, %v10019_v15  ;;  %v7277_v16 = vor.u32 %v9222_v7, %v7274_v8  ;;  %v9278_v27 = vld [vmem:[#allocation8 + $0xb44] sm:$0xf] }
  0xd6   :  { %v7498_v28 = vld [vmem:[#allocation8 + $0xb60] sm:$0xf0] }
  0xd7   :  { %2762 = vmatpush.bf16.msrb.mxu0 %v7145_v19  ;;  %2775 = vmatpush.bf16.msrb.mxu1 %v7401_v20  ;;  %v9150_v19 = vld [vmem:[#allocation8 + $0x744] sm:$0xf] }
  0xd8   :  { %2813 = vmatpush.bf16.msra.mxu2 %v6413_v18  ;;  %2801 = vmatpush.bf16.msrb.mxu3 %v6125_v24  ;;  %v6730_v18 = vld [vmem:[#allocation8 + $0x560] sm:$0xf0] }
  0xd9   :  { %v6986_v20 = vld [vmem:[#allocation8 + $0x760] sm:$0xf0]  ;;  %v6733_v24 = vor.u32 %v9086_v17, %v6730_v18 }
  0xda   :  { %v6989_v29 = vor.u32 %v9150_v19, %v6986_v20  ;;  %v9078_v32 = vld [vmem:[#allocation8 + $0x504] sm:$0xf] }
  0xdb   :  { %2763 = vmatpush.bf16.msrb.mxu0 %v7113_v38  ;;  %2776 = vmatpush.bf16.msrb.mxu1 %v7369_v39  ;;  %v6698_v33 = vld [vmem:[#allocation8 + $0x520] sm:$0xf0]  ;;  %v7501_v38 = vor.u32 %v9278_v27, %v7498_v28  ;;  %v6288_v28 = vld [vmem:[#allocation8 + $0x1c8] sm:$0xf] }
  0xdc   :  { %2814 = vmatpush.bf16.msra.mxu2 %v6381_v34  ;;  %2802 = vmatpush.bf16.msrb.mxu3 %v6093_v45  ;;  %v9142_v34 = vld [vmem:[#allocation8 + $0x704] sm:$0xf]  ;;  %v6701_v39 = vor.u32 %v9078_v32, %v6698_v33  ;;  %v6544_v32 = vld [vmem:[#allocation8 + $0x3c8] sm:$0xf] }
  0xdd   :  { %v6954_v35 = vld [vmem:[#allocation8 + $0x720] sm:$0xf0]  ;;  %v9043_v33 = vld [vmem:[#allocation8 + $0x3e4] sm:$0xf0] }
  0xde   :  { %v9206_v36 = vld [vmem:[#allocation8 + $0x904] sm:$0xf]  ;;  %v6957_v44 = vor.u32 %v9142_v34, %v6954_v35 }
  0xdf   :  { %2764 = vmatpush.bf16.msrb.mxu0 %v7081_v55  ;;  %2777 = vmatpush.bf16.msrb.mxu1 %v7337_v42  ;;  %v7210_v37 = vld [vmem:[#allocation8 + $0x920] sm:$0xf0] }
  0xe0   :  { %2815 = vmatpush.bf16.msra.mxu2 %v6349_v52  ;;  %2803 = vmatpush.bf16.msrb.mxu3 %v6061_v59  ;;  %v9270_v40 = vld [vmem:[#allocation8 + $0xb04] sm:$0xf]  ;;  %v7213_v45 = vor.u32 %v9206_v36, %v7210_v37 }
  0xe1   :  { %v7466_v43 = vld [vmem:[#allocation8 + $0xb20] sm:$0xf0] }
  0xe2   :  { %2765 = vmatmul.bf16.vlgmr.msrb.gmra.mxu0 %v10023_v4  ;;  %2778 = vmatmul.bf16.vlgmr.msrb.gmra.mxu1 %v10025_v10  ;;  %v9070_v46 = vld [vmem:[#allocation8 + $0x4c4] sm:$0xf]  ;;  %v7469_v52 = vor.u32 %v9270_v40, %v7466_v43  ;;  %v6800_v43 = vld [vmem:[#allocation8 + $0x5c8] sm:$0xf] }
  0xe3   :  { %2822 = vmatpush.bf16.msra.mxu0 %v6797_v60  ;;  %2835 = vmatpush.bf16.msra.mxu1 %v7053_v63  ;;  %v6666_v47 = vld [vmem:[#allocation8 + $0x4e0] sm:$0xf0] }
  0xe4   :  { %2848 = vmatpush.bf16.msra.mxu3 %v7309_v0  ;;  %2816 = vmatpush.bf16.msra.mxu2 %v6317_v5  ;;  %v9134_v48 = vld [vmem:[#allocation8 + $0x6c4] sm:$0xf]  ;;  %v6669_v53 = vor.u32 %v9070_v46, %v6666_v47  ;;  %v9107_v46 = vld [vmem:[#allocation8 + $0x5e4] sm:$0xf0] }
  0xe5   :  { %2804 = vmatmul.bf16.vlgmr.msrb.gmra.mxu3 %v10007_v25  ;;  %v6922_v49 = vld [vmem:[#allocation8 + $0x6e0] sm:$0xf0]  ;;  %v7056_v47 = vld [vmem:[#allocation8 + $0x7c8] sm:$0xf] }
  0xe6   :  { %v9198_v50 = vld [vmem:[#allocation8 + $0x8c4] sm:$0xf]  ;;  %v6925_v42 = vor.u32 %v9134_v48, %v6922_v49  ;;  %v9171_v48 = vld [vmem:[#allocation8 + $0x7e4] sm:$0xf0] }
  0xe7   :  { %2823 = vmatpush.bf16.msra.mxu0 %v6765_v11  ;;  %2836 = vmatpush.bf16.msra.mxu1 %v7021_v14  ;;  %v7178_v51 = vld [vmem:[#allocation8 + $0x8e0] sm:$0xf0] }
  0xe8   :  { %2861 = vmatpush.bf16.msrb.mxu2 %v7565_v9  ;;  %2849 = vmatpush.bf16.msra.mxu3 %v7277_v16  ;;  %v9262_v54 = vld [vmem:[#allocation8 + $0xac4] sm:$0xf]  ;;  %v7181_v56 = vor.u32 %v9198_v50, %v7178_v51  ;;  %v6512_v50 = vld [vmem:[#allocation8 + $0x388] sm:$0xf] }
  0xe9   :  { %2817 = vmatmul.bf16.vlgmr.msra.gmra.mxu2 %v10011_v30  ;;  %v7434_v55 = vld [vmem:[#allocation8 + $0xae0] sm:$0xf0]  ;;  %v9035_v51 = vld [vmem:[#allocation8 + $0x3a4] sm:$0xf0] }
  0xea   :  { %v9062_v57 = vld [vmem:[#allocation8 + $0x484] sm:$0xf]  ;;  %v7437_v63 = vor.u32 %v9262_v54, %v7434_v55  ;;  %v8971_v54 = vld [vmem:[#allocation8 + $0x1a4] sm:$0xf0]  ;;  %v6801_v55 = vor.u32 %v9107_v46, %v6800_v43 }
  0xeb   :  { %2824 = vmatpush.bf16.msra.mxu0 %v6733_v24  ;;  %2837 = vmatpush.bf16.msra.mxu1 %v6989_v29  ;;  %v6634_v58 = vld [vmem:[#allocation8 + $0x4a0] sm:$0xf0]  ;;  %v9003_v43 = vld [vmem:[#allocation8 + $0x2a4] sm:$0xf0] }
  0xec   :  { %2862 = vmatpush.bf16.msrb.mxu2 %v7533_v23  ;;  %2850 = vmatpush.bf16.msra.mxu3 %v7245_v31  ;;  %v9126_v59 = vld [vmem:[#allocation8 + $0x684] sm:$0xf]  ;;  %v6637_v0 = vor.u32 %v9062_v57, %v6634_v58  ;;  %v8979_v31 = vld [vmem:[#allocation8 + $0x1e4] sm:$0xf0]  ;;  %v6513_v57 = vor.u32 %v9035_v51, %v6512_v50 }
  0xed   :  { %v6890_v60 = vld [vmem:[#allocation8 + $0x6a0] sm:$0xf0]  ;;  %v9099_v58 = vld [vmem:[#allocation8 + $0x5a4] sm:$0xf0] }
  0xee   :  { %v9190_v61 = vld [vmem:[#allocation8 + $0x884] sm:$0xf]  ;;  %v6893_v3 = vor.u32 %v9126_v59, %v6890_v60  ;;  %v7024_v59 = vld [vmem:[#allocation8 + $0x788] sm:$0xf] }
  0xef   :  { %2825 = vmatpush.bf16.msra.mxu0 %v6701_v39  ;;  %2838 = vmatpush.bf16.msra.mxu1 %v6957_v44  ;;  %v7146_v62 = vld [vmem:[#allocation8 + $0x8a0] sm:$0xf0]  ;;  %v6289_v44 = vor.u32 %v8979_v31, %v6288_v28  ;;  %v9163_v60 = vld [vmem:[#allocation8 + $0x7a4] sm:$0xf0] }
  0xf0   :  { %2863 = vmatpush.bf16.msrb.mxu2 %v7501_v38  ;;  %2851 = vmatpush.bf16.msra.mxu3 %v7213_v45  ;;  %v9254_v1 = vld [vmem:[#allocation8 + $0xa84] sm:$0xf]  ;;  %v7149_v5 = vor.u32 %v9190_v61, %v7146_v62  ;;  %v6545_v45 = vor.u32 %v9043_v33, %v6544_v32  ;;  %v6480_v62 = vld [vmem:[#allocation8 + $0x348] sm:$0xf] }
  0xf1   :  { %v7402_v2 = vld [vmem:[#allocation8 + $0xaa0] sm:$0xf0]  ;;  %v9011_v28 = vld [vmem:[#allocation8 + $0x2e4] sm:$0xf0] }
  0xf2   :  { %v9054_v6 = vld [vmem:[#allocation8 + $0x444] sm:$0xf]  ;;  %v7405_v13 = vor.u32 %v9254_v1, %v7402_v2  ;;  %v8963_v1 = vld [vmem:[#allocation8 + $0x164] sm:$0xf0] }
  0xf3   :  { %2826 = vmatpush.bf16.msra.mxu0 %v6669_v53  ;;  %2839 = vmatpush.bf16.msra.mxu1 %v6925_v42  ;;  %v6602_v7 = vld [vmem:[#allocation8 + $0x460] sm:$0xf0]  ;;  %v6256_v53 = vld [vmem:[#allocation8 + $0x188] sm:$0xf]  ;;  %v7057_v42 = vor.u32 %v9171_v48, %v7056_v47 }
  0xf4   :  { %2864 = vmatpush.bf16.msrb.mxu2 %v7469_v52  ;;  %2852 = vmatpush.bf16.msra.mxu3 %v7181_v56  ;;  %v9118_v8 = vld [vmem:[#allocation8 + $0x644] sm:$0xf]  ;;  %v6605_v14 = vor.u32 %v9054_v6, %v6602_v7  ;;  %v6768_v56 = vld [vmem:[#allocation8 + $0x588] sm:$0xf]  ;;  %v6257_v61 = vor.u32 %v8971_v54, %v6256_v53 }
  0xf5   :  { %v6858_v9 = vld [vmem:[#allocation8 + $0x660] sm:$0xf0]  ;;  %v6769_v2 = vor.u32 %v9099_v58, %v6768_v56  ;;  %v9091_v7 = vld [vmem:[#allocation8 + $0x564] sm:$0xf0] }
  0xf6   :  { %v9182_v11 = vld [vmem:[#allocation8 + $0x844] sm:$0xf]  ;;  %v6861_v19 = vor.u32 %v9118_v8, %v6858_v9  ;;  %v6992_v8 = vld [vmem:[#allocation8 + $0x748] sm:$0xf] }
  0xf7   :  { %v7114_v12 = vld [vmem:[#allocation8 + $0x860] sm:$0xf0]  ;;  %2827 = vmatpush.bf16.msra.mxu0 %v6637_v0  ;;  %2840 = vmatpush.bf16.msra.mxu1 %v6893_v3  ;;  %v6224_v0 = vld [vmem:[#allocation8 + $0x148] sm:$0xf]  ;;  %v7025_v3 = vor.u32 %v9163_v60, %v7024_v59 }
  0xf8   :  { %2865 = vmatpush.bf16.msrb.mxu2 %v7437_v63  ;;  %v9246_v16 = vld [vmem:[#allocation8 + $0xa44] sm:$0xf]  ;;  %2853 = vmatpush.bf16.msra.mxu3 %v7149_v5  ;;  %v7117_v20 = vor.u32 %v9182_v11, %v7114_v12  ;;  %v9027_v63 = vld [vmem:[#allocation8 + $0x364] sm:$0xf0]  ;;  %v6225_v11 = vor.u32 %v8963_v1, %v6224_v0 }
  0xf9   :  { %v7370_v17 = vld [vmem:[#allocation8 + $0xa60] sm:$0xf0]  ;;  %v6736_v5 = vld [vmem:[#allocation8 + $0x548] sm:$0xf]  ;;  %v6481_v6 = vor.u32 %v9027_v63, %v6480_v62 }
  0xfa   :  { %v9046_v18 = vld [vmem:[#allocation8 + $0x404] sm:$0xf]  ;;  %v7373_v29 = vor.u32 %v9246_v16, %v7370_v17  ;;  %v9155_v9 = vld [vmem:[#allocation8 + $0x764] sm:$0xf0]  ;;  %v6737_v17 = vor.u32 %v9091_v7, %v6736_v5 }
  0xfb   :  { %v6570_v21 = vld [vmem:[#allocation8 + $0x420] sm:$0xf0]  ;;  %2828 = vmatpush.bf16.msra.mxu0 %v6605_v14  ;;  %2841 = vmatpush.bf16.msra.mxu1 %v6861_v19  ;;  %v6448_v12 = vld [vmem:[#allocation8 + $0x308] sm:$0xf] }
  0xfc   :  { %v9110_v22 = vld [vmem:[#allocation8 + $0x604] sm:$0xf]  ;;  %2866 = vmatpush.bf16.msrb.mxu2 %v7405_v13  ;;  %v6573_v34 = vor.u32 %v9046_v18, %v6570_v21  ;;  %2854 = vmatpush.bf16.msra.mxu3 %v7117_v20  ;;  %v9019_v13 = vld [vmem:[#allocation8 + $0x324] sm:$0xf0]  ;;  %v6993_v18 = vor.u32 %v9155_v9, %v6992_v8 }
  0xfd   :  { %v6826_v23 = vld [vmem:[#allocation8 + $0x620] sm:$0xf0]  ;;  %v6192_v14 = vld [vmem:[#allocation8 + $0x108] sm:$0xf]  ;;  %v6449_v20 = vor.u32 %v9019_v13, %v6448_v12 }
  0xfe   :  { %v9174_v24 = vld [vmem:[#allocation8 + $0x804] sm:$0xf]  ;;  %v6829_v37 = vor.u32 %v9110_v22, %v6826_v23  ;;  %v8955_v16 = vld [vmem:[#allocation8 + $0x124] sm:$0xf0] }
  0xff   :  { %v7082_v27 = vld [vmem:[#allocation8 + $0x820] sm:$0xf0]  ;;  %2829 = vmatpush.bf16.msra.mxu0 %v6573_v34  ;;  %v6704_v19 = vld [vmem:[#allocation8 + $0x508] sm:$0xf] }
 0x100   :  { %v9238_v35 = vld [vmem:[#allocation8 + $0xa04] sm:$0xf]  ;;  %v7085_v38 = vor.u32 %v9174_v24, %v7082_v27  ;;  %2867 = vmatpush.bf16.msrb.mxu2 %v7373_v29  ;;  %2842 = vmatpush.bf16.msra.mxu1 %v6829_v37  ;;  %v9083_v21 = vld [vmem:[#allocation8 + $0x524] sm:$0xf0]  ;;  %v6193_v24 = vor.u32 %v8955_v16, %v6192_v14 }
 0x101   :  { %v7338_v36 = vld [vmem:[#allocation8 + $0xa20] sm:$0xf0]  ;;  %v6960_v22 = vld [vmem:[#allocation8 + $0x708] sm:$0xf]  ;;  %v6705_v32 = vor.u32 %v9083_v21, %v6704_v19  ;;  %v8975_v21 = vld [vmem:[#allocation8 + $0x1cc] sm:$0xf] }
 0x102   :  { %v9302_v39 = vld [vmem:[#allocation8 + $0xc04] sm:$0xf]  ;;  %v7341_v49 = vor.u32 %v9238_v35, %v7338_v36  ;;  %2855 = vmatpush.bf16.msra.mxu3 %v7085_v38  ;;  %2830 = vmatmul.bf16.vlgmr.msra.gmra.mxu0 %v10009_v26  ;;  %v9147_v23 = vld [vmem:[#allocation8 + $0x724] sm:$0xf0] }
 0x103   :  { %v7594_v40 = vld [vmem:[#allocation8 + $0xc20] sm:$0xf0]  ;;  %2843 = vmatmul.bf16.vlgmr.msra.gmra.mxu1 %v10015_v41  ;;  %v6416_v27 = vld [vmem:[#allocation8 + $0x2c8] sm:$0xf]  ;;  %v6961_v33 = vor.u32 %v9147_v23, %v6960_v22  ;;  %v6290_v22 = vld [vmem:[#allocation8 + $0x1e8] sm:$0xf0] }
 0x104   :  { %v7597_v52 = vor.u32 %v9302_v39, %v7594_v40  ;;  %2887 = vmatpush.bf16.msrb.mxu1 %v6289_v44  ;;  %2868 = vmatpush.bf16.msrb.mxu2 %v7341_v49  ;;  %v6160_v29 = vld [vmem:[#allocation8 + $0xc8] sm:$0xf]  ;;  %v6417_v35 = vor.u32 %v9011_v28, %v6416_v27 }
 0x105   :  { %2856 = vmatmul.bf16.vlgmr.msra.gmra.mxu3 %v10023_v4  ;;  %v8947_v31 = vld [vmem:[#allocation8 + $0xe4] sm:$0xf0] }
 0x106   :  { %2900 = vmatpush.bf16.msrb.mxu3 %v6545_v45  ;;  %2881 = vmatpush.bf16.msrb.mxu0 %v7597_v52  ;;  %v6672_v34 = vld [vmem:[#allocation8 + $0x4c8] sm:$0xf]  ;;  %v6161_v39 = vor.u32 %v8947_v31, %v6160_v29 }
 0x107   :  { %2869 = vmatmul.bf16.vlgmr.msrb.gmra.mxu2 %v10025_v10  ;;  %v9075_v36 = vld [vmem:[#allocation8 + $0x4e4] sm:$0xf0] }
 0x108   :  { %2926 = vmatpush.bf16.msra.mxu2 %v7057_v42  ;;  %2888 = vmatpush.bf16.msrb.mxu1 %v6257_v61  ;;  %v6928_v37 = vld [vmem:[#allocation8 + $0x6c8] sm:$0xf]  ;;  %v6673_v46 = vor.u32 %v9075_v36, %v6672_v34 }
 0x109   :  { %v9139_v38 = vld [vmem:[#allocation8 + $0x6e4] sm:$0xf0] }
 0x10a   :  { %2913 = vmatpush.bf16.msra.mxu0 %v6801_v55  ;;  %2901 = vmatpush.bf16.msrb.mxu3 %v6513_v57  ;;  %v6384_v40 = vld [vmem:[#allocation8 + $0x288] sm:$0xf]  ;;  %v6929_v47 = vor.u32 %v9139_v38, %v6928_v37  ;;  %v9039_v37 = vld [vmem:[#allocation8 + $0x3cc] sm:$0xf] }
 0x10b   :  { %v6128_v44 = vld [vmem:[#allocation8 + $0x88] sm:$0xf]  ;;  %v6385_v49 = vor.u32 %v9003_v43, %v6384_v40  ;;  %v6546_v38 = vld [vmem:[#allocation8 + $0x3e8] sm:$0xf0] }
 0x10c   :  { %2927 = vmatpush.bf16.msra.mxu2 %v7025_v3  ;;  %2889 = vmatpush.bf16.msrb.mxu1 %v6225_v11  ;;  %v8939_v45 = vld [vmem:[#allocation8 + $0xa4] sm:$0xf0] }
 0x10d   :  { %v6640_v48 = vld [vmem:[#allocation8 + $0x488] sm:$0xf]  ;;  %v6129_v53 = vor.u32 %v8939_v45, %v6128_v44  ;;  %v6258_v44 = vld [vmem:[#allocation8 + $0x1a8] sm:$0xf0] }
 0x10e   :  { %2914 = vmatpush.bf16.msra.mxu0 %v6769_v2  ;;  %2902 = vmatpush.bf16.msrb.mxu3 %v6481_v6  ;;  %v9067_v50 = vld [vmem:[#allocation8 + $0x4a4] sm:$0xf0] }
 0x10f   :  { %v6896_v51 = vld [vmem:[#allocation8 + $0x688] sm:$0xf]  ;;  %v6641_v57 = vor.u32 %v9067_v50, %v6640_v48 }
 0x110   :  { %2928 = vmatpush.bf16.msra.mxu2 %v6993_v18  ;;  %2890 = vmatpush.bf16.msrb.mxu1 %v6193_v24  ;;  %v9131_v52 = vld [vmem:[#allocation8 + $0x6a4] sm:$0xf0] }
 0x111   :  { %v6352_v54 = vld [vmem:[#allocation8 + $0x248] sm:$0xf]  ;;  %v6897_v58 = vor.u32 %v9131_v52, %v6896_v51  ;;  %v9031_v52 = vld [vmem:[#allocation8 + $0x38c] sm:$0xf] }
 0x112   :  { %2915 = vmatpush.bf16.msra.mxu0 %v6737_v17  ;;  %2903 = vmatpush.bf16.msrb.mxu3 %v6449_v20  ;;  %v8995_v55 = vld [vmem:[#allocation8 + $0x264] sm:$0xf0] }
 0x113   :  { %7623 = vmatmul.msk.bf16.vlgmr.msrb.gmra.mxu0 %vm214_vm1, %v10019_v15  ;;  %v6096_v42 = vld [vmem:[#allocation8 + $0x48] sm:$0xf]  ;;  %v6353_v60 = vor.u32 %v8995_v55, %v6352_v54  ;;  %v8959_v54 = vld [vmem:[#allocation8 + $0x14c] sm:$0xf] }
 0x114   :  { %2929 = vmatpush.bf16.msra.mxu2 %v6961_v33  ;;  %2891 = vmatpush.bf16.msrb.mxu1 %v6161_v39  ;;  %v8931_v56 = vld [vmem:[#allocation8 + $0x64] sm:$0xf0]  ;;  %v8967_v39 = vld [vmem:[#allocation8 + $0x18c] sm:$0xf] }
 0x115   :  { %v6608_v59 = vld [vmem:[#allocation8 + $0x448] sm:$0xf]  ;;  %v6097_v0 = vor.u32 %v8931_v56, %v6096_v42  ;;  %v6261_v50 = vor.u32 %v8967_v39, %v6258_v44  ;;  %v6130_v39 = vld [vmem:[#allocation8 + $0xa8] sm:$0xf0] }
 0x116   :  { %2916 = vmatpush.bf16.msra.mxu0 %v6705_v32  ;;  %2904 = vmatpush.bf16.msrb.mxu3 %v6417_v35  ;;  %v9059_v61 = vld [vmem:[#allocation8 + $0x464] sm:$0xf0]  ;;  %v6293_v35 = vor.u32 %v8975_v21, %v6290_v22 }
 0x117   :  { %v6864_v62 = vld [vmem:[#allocation8 + $0x648] sm:$0xf]  ;;  %v6609_v8 = vor.u32 %v9059_v61, %v6608_v59 }
 0x118   :  { %2930 = vmatpush.bf16.msra.mxu2 %v6929_v47  ;;  %v9123_v63 = vld [vmem:[#allocation8 + $0x664] sm:$0xf0]  ;;  %2892 = vmatpush.bf16.msrb.mxu1 %v6129_v53  ;;  %v6514_v53 = vld [vmem:[#allocation8 + $0x3a8] sm:$0xf0] }
 0x119   :  { %v6064_v1 = vld [vmem:[#allocation8 + $0x8] sm:$0xf]  ;;  %v6865_v9 = vor.u32 %v9123_v63, %v6864_v62  ;;  %v6517_v62 = vor.u32 %v9031_v52, %v6514_v53  ;;  %v6386_v52 = vld [vmem:[#allocation8 + $0x2a8] sm:$0xf0] }
 0x11a   :  { %2917 = vmatpush.bf16.msra.mxu0 %v6673_v46  ;;  %2905 = vmatpush.bf16.msrb.mxu3 %v6385_v49  ;;  %v6320_v2 = vld [vmem:[#allocation8 + $0x208] sm:$0xf]  ;;  %v6549_v49 = vor.u32 %v9039_v37, %v6546_v38  ;;  %v8935_v37 = vld [vmem:[#allocation8 + $0x8c] sm:$0xf] }
 0x11b   :  { %v8987_v3 = vld [vmem:[#allocation8 + $0x224] sm:$0xf0]  ;;  %v8927_v53 = vld [vmem:[#allocation8 + $0x4c] sm:$0xf] }
 0x11c   :  { %v8923_v5 = vld [vmem:[#allocation8 + $0x24] sm:$0xf0]  ;;  %2931 = vmatpush.bf16.msra.mxu2 %v6897_v58  ;;  %v6321_v13 = vor.u32 %v8987_v3, %v6320_v2  ;;  %2893 = vmatpush.bf16.msrb.mxu1 %v6097_v0  ;;  %v6482_v2 = vld [vmem:[#allocation8 + $0x368] sm:$0xf0] }
 0x11d   :  { %v7568_v6 = vld [vmem:[#allocation8 + $0xbc8] sm:$0xf]  ;;  %v6065_v18 = vor.u32 %v8923_v5, %v6064_v1  ;;  %v9023_v1 = vld [vmem:[#allocation8 + $0x34c] sm:$0xf] }
 0x11e   :  { %v9299_v7 = vld [vmem:[#allocation8 + $0xbe4] sm:$0xf0]  ;;  %2918 = vmatpush.bf16.msra.mxu0 %v6641_v57  ;;  %2906 = vmatpush.bf16.msrb.mxu3 %v6353_v60  ;;  %v10039_v42 = vpop.f32.mrf.mxu0  ;;  %v10041_v56 = vpop.f32.mrf.mxu1  ;;  %v6226_v57 = vld [vmem:[#allocation8 + $0x168] sm:$0xf0] }
 0x11f   :  { %v7312_v11 = vld [vmem:[#allocation8 + $0x9c8] sm:$0xf]  ;;  %v7569_v19 = vor.u32 %v9299_v7, %v7568_v6  ;;  %v6229_v63 = vor.u32 %v8959_v54, %v6226_v57  ;;  %v8951_v3 = vld [vmem:[#allocation8 + $0x10c] sm:$0xf] }
 0x120   :  { %v9235_v12 = vld [vmem:[#allocation8 + $0x9e4] sm:$0xf0]  ;;  %2932 = vmatpush.bf16.msra.mxu2 %v6865_v9  ;;  %2894 = vmatpush.bf16.msrb.mxu1 %v6065_v18  ;;  %v6194_v6 = vld [vmem:[#allocation8 + $0x128] sm:$0xf0] }
 0x121   :  { %v6576_v14 = vld [vmem:[#allocation8 + $0x408] sm:$0xf]  ;;  %v7313_v23 = vor.u32 %v9235_v12, %v7312_v11  ;;  %v6485_v12 = vor.u32 %v9023_v1, %v6482_v2  ;;  %v9015_v18 = vld [vmem:[#allocation8 + $0x30c] sm:$0xf] }
 0x122   :  { %v9051_v16 = vld [vmem:[#allocation8 + $0x424] sm:$0xf0]  ;;  %2919 = vmatpush.bf16.msra.mxu0 %v6609_v8  ;;  %2907 = vmatpush.bf16.msrb.mxu3 %v6321_v13  ;;  %v6098_v54 = vld [vmem:[#allocation8 + $0x68] sm:$0xf0] }
 0x123   :  { %v6832_v17 = vld [vmem:[#allocation8 + $0x608] sm:$0xf]  ;;  %v6577_v29 = vor.u32 %v9051_v16, %v6576_v14  ;;  %2895 = vmatmul.bf16.vlgmr.msrb.gmra.mxu1 %v10007_v25  ;;  %v6197_v16 = vor.u32 %v8951_v3, %v6194_v6  ;;  %v9103_v2 = vld [vmem:[#allocation8 + $0x5cc] sm:$0xf] }
 0x124   :  { %v9115_v20 = vld [vmem:[#allocation8 + $0x624] sm:$0xf0]  ;;  %2939 = vmatpush.bf16.msra.mxu1 %v7313_v23  ;;  %v6802_v3 = vld [vmem:[#allocation8 + $0x5e8] sm:$0xf0] }
 0x125   :  { %v7280_v24 = vld [vmem:[#allocation8 + $0x988] sm:$0xf]  ;;  %v6833_v34 = vor.u32 %v9115_v20, %v6832_v17  ;;  %2908 = vmatmul.bf16.vlgmr.msrb.gmra.mxu3 %v10011_v30  ;;  %v10045_v13 = vpop.f32.mrf.mxu2  ;;  %v10047_v14 = vpop.f32.mrf.mxu3  ;;  %v8943_v20 = vld [vmem:[#allocation8 + $0xcc] sm:$0xf] }
 0x126   :  { %v7536_v27 = vld [vmem:[#allocation8 + $0xb88] sm:$0xf]  ;;  %2952 = vmatpush.bf16.msra.mxu3 %v7569_v19  ;;  %2920 = vmatpush.bf16.msra.mxu0 %v6577_v29  ;;  %v6450_v19 = vld [vmem:[#allocation8 + $0x328] sm:$0xf0]  ;;  %v229_v22 = vpop.f32.mrf.mxu0  ;;  %v242_v23 = vpop.f32.mrf.mxu1 }
 0x127   :  { %v9291_v28 = vld [vmem:[#allocation8 + $0xba4] sm:$0xf0]  ;;  %2933 = vmatpush.bf16.msra.mxu2 %v6833_v34  ;;  %v9095_v23 = vld [vmem:[#allocation8 + $0x58c] sm:$0xf] }
 0x128   :  { %v9227_v31 = vld [vmem:[#allocation8 + $0x9a4] sm:$0xf0]  ;;  %v7537_v36 = vor.u32 %v9291_v28, %v7536_v27 }
 0x129   :  { %v7600_v32 = vld [vmem:[#allocation8 + $0xc08] sm:$0xf]  ;;  %v7281_v40 = vor.u32 %v9227_v31, %v7280_v24  ;;  %2921 = vmatmul.bf16.vlgmr.msra.gmra.mxu0 %v10009_v26  ;;  %v6162_v24 = vld [vmem:[#allocation8 + $0xe8] sm:$0xf0] }
 0x12a   :  { %v9307_v33 = vld [vmem:[#allocation8 + $0xc24] sm:$0xf0]  ;;  %2953 = vmatpush.bf16.msra.mxu3 %v7537_v36  ;;  %2934 = vmatmul.bf16.vlgmr.msra.gmra.mxu2 %v10015_v41  ;;  %v6418_v36 = vld [vmem:[#allocation8 + $0x2e8] sm:$0xf0] }
 0x12b   :  { %v7601_v43 = vor.u32 %v9307_v33, %v7600_v32  ;;  %v7504_v45 = vld [vmem:[#allocation8 + $0xb48] sm:$0xf]  ;;  %2978 = vmatpush.bf16.msrb.mxu2 %v6293_v35  ;;  %2940 = vmatpush.bf16.msra.mxu1 %v7281_v40  ;;  %v6453_v32 = vor.u32 %v9015_v18, %v6450_v19  ;;  %v6165_v33 = vor.u32 %v8943_v20, %v6162_v24  ;;  %v9007_v35 = vld [vmem:[#allocation8 + $0x2cc] sm:$0xf] }
 0x12c   :  { %v9283_v46 = vld [vmem:[#allocation8 + $0xb64] sm:$0xf0]  ;;  %v6805_v18 = vor.u32 %v9103_v2, %v6802_v3  ;;  %v7314_v19 = vld [vmem:[#allocation8 + $0x9e8] sm:$0xf0] }
 0x12d   :  { %v7248_v47 = vld [vmem:[#allocation8 + $0x948] sm:$0xf]  ;;  %v7505_v51 = vor.u32 %v9283_v46, %v7504_v45  ;;  %2972 = vmatpush.bf16.msrb.mxu0 %v7601_v43  ;;  %v6421_v46 = vor.u32 %v9007_v35, %v6418_v36  ;;  %v9159_v20 = vld [vmem:[#allocation8 + $0x78c] sm:$0xf] }
 0x12e   :  { %v9219_v48 = vld [vmem:[#allocation8 + $0x964] sm:$0xf0]  ;;  %v10049_v57 = vpop.f32.mrf.mxu0  ;;  %v6770_v24 = vld [vmem:[#allocation8 + $0x5a8] sm:$0xf0] }
 0x12f   :  { %v7249_v55 = vor.u32 %v9219_v48, %v7248_v47  ;;  %v7472_v58 = vld [vmem:[#allocation8 + $0xb08] sm:$0xf]  ;;  %2979 = vmatpush.bf16.msrb.mxu2 %v6261_v50  ;;  %2954 = vmatpush.bf16.msra.mxu3 %v7505_v51  ;;  %v8999_v47 = vld [vmem:[#allocation8 + $0x28c] sm:$0xf]  ;;  %v255_v48 = vpop.f32.mrf.mxu2  ;;  %v6133_v50 = vor.u32 %v8935_v37, %v6130_v39 }
 0x130   :  { %v9275_v59 = vld [vmem:[#allocation8 + $0xb24] sm:$0xf0]  ;;  %v6389_v1 = vor.u32 %v8999_v47, %v6386_v52  ;;  %v9295_v37 = vld [vmem:[#allocation8 + $0xbcc] sm:$0xf] }
 0x131   :  { %v7216_v60 = vld [vmem:[#allocation8 + $0x908] sm:$0xf]  ;;  %2991 = vmatpush.bf16.msra.mxu0 %v6549_v49  ;;  %v7473_v0 = vor.u32 %v9275_v59, %v7472_v58  ;;  %2941 = vmatpush.bf16.msra.mxu1 %v7249_v55  ;;  %v268_v49 = vpop.f32.mrf.mxu3  ;;  %v10051_v58 = vpop.f32.mrf.mxu1  ;;  %v9223_v39 = vld [vmem:[#allocation8 + $0x98c] sm:$0xf] }
 0x132   :  { %v9211_v61 = vld [vmem:[#allocation8 + $0x924] sm:$0xf0]  ;;  %v9087_v47 = vld [vmem:[#allocation8 + $0x54c] sm:$0xf] }
 0x133   :  { %v7217_v5 = vor.u32 %v9211_v61, %v7216_v60  ;;  %v7440_v7 = vld [vmem:[#allocation8 + $0xac8] sm:$0xf]  ;;  %2980 = vmatpush.bf16.msrb.mxu2 %v6229_v63  ;;  %2955 = vmatpush.bf16.msra.mxu3 %v7473_v0  ;;  %v9167_v63 = vld [vmem:[#allocation8 + $0x7cc] sm:$0xf] }
 0x134   :  { %v9267_v8 = vld [vmem:[#allocation8 + $0xae4] sm:$0xf0]  ;;  %v7058_v0 = vld [vmem:[#allocation8 + $0x7e8] sm:$0xf0] }
 0x135   :  { %v7184_v9 = vld [vmem:[#allocation8 + $0x8c8] sm:$0xf]  ;;  %2992 = vmatpush.bf16.msra.mxu0 %v6517_v62  ;;  %v7441_v17 = vor.u32 %v9267_v8, %v7440_v7  ;;  %2942 = vmatpush.bf16.msra.mxu1 %v7217_v5  ;;  %v6101_v5 = vor.u32 %v8927_v53, %v6098_v54  ;;  %v8991_v7 = vld [vmem:[#allocation8 + $0x24c] sm:$0xf] }
 0x136   :  { %v9203_v11 = vld [vmem:[#allocation8 + $0x8e4] sm:$0xf0]  ;;  %v6354_v8 = vld [vmem:[#allocation8 + $0x268] sm:$0xf0] }
 0x137   :  { %v7185_v21 = vor.u32 %v9203_v11, %v7184_v9  ;;  %v7408_v27 = vld [vmem:[#allocation8 + $0xa88] sm:$0xf]  ;;  %2981 = vmatpush.bf16.msrb.mxu2 %v6197_v16  ;;  %2956 = vmatpush.bf16.msra.mxu3 %v7441_v17  ;;  %v7061_v11 = vor.u32 %v9167_v63, %v7058_v0  ;;  %v6066_v16 = vld [vmem:[#allocation8 + $0x28] sm:$0xf0]  ;;  %v6357_v22 = vor.u32 %v8991_v7, %v6354_v8 }
 0x138   :  { %v9259_v28 = vld [vmem:[#allocation8 + $0xaa4] sm:$0xf0]  ;;  %v9231_v17 = vld [vmem:[#allocation8 + $0x9cc] sm:$0xf] }
 0x139   :  { %v7152_v29 = vld [vmem:[#allocation8 + $0x888] sm:$0xf]  ;;  %2993 = vmatpush.bf16.msra.mxu0 %v6485_v12  ;;  %v7409_v34 = vor.u32 %v9259_v28, %v7408_v27  ;;  %2943 = vmatpush.bf16.msra.mxu1 %v7185_v21  ;;  %v8919_v12 = vld [vmem:[#allocation8 + $0xc] sm:$0xf]  ;;  %v10055_v27 = vpop.f32.mrf.mxu2  ;;  %v10057_v28 = vpop.f32.mrf.mxu3 }
 0x13a   :  { %v9195_v31 = vld [vmem:[#allocation8 + $0x8a4] sm:$0xf0]  ;;  %7624 = vmatmul.msk.bf16.vlgmr.msrb.gmra.mxu0 %vm214_vm1, %v10019_v15  ;;  %v7026_v21 = vld [vmem:[#allocation8 + $0x7a8] sm:$0xf0]  ;;  %v294_v35 = vpop.f32.mrf.mxu1 }
 0x13b   :  { %v7153_v38 = vor.u32 %v9195_v31, %v7152_v29  ;;  %v7376_v40 = vld [vmem:[#allocation8 + $0xa48] sm:$0xf]  ;;  %2982 = vmatpush.bf16.msrb.mxu2 %v6165_v33  ;;  %2957 = vmatpush.bf16.msra.mxu3 %v7409_v34  ;;  %v6069_v29 = vor.u32 %v8919_v12, %v6066_v16  ;;  %v8983_v31 = vld [vmem:[#allocation8 + $0x20c] sm:$0xf]  ;;  %v7317_v33 = vor.u32 %v9231_v17, %v7314_v19  ;;  %v281_v34 = vpop.f32.mrf.mxu0 }
 0x13c   :  { %v9251_v43 = vld [vmem:[#allocation8 + $0xa64] sm:$0xf0]  ;;  %v7029_v36 = vor.u32 %v9159_v20, %v7026_v21  ;;  %v6738_v48 = vld [vmem:[#allocation8 + $0x568] sm:$0xf0] }
 0x13d   :  { %v7120_v44 = vld [vmem:[#allocation8 + $0x848] sm:$0xf]  ;;  %2994 = vmatpush.bf16.msra.mxu0 %v6453_v32  ;;  %v7377_v51 = vor.u32 %v9251_v43, %v7376_v40  ;;  %2944 = vmatpush.bf16.msra.mxu1 %v7153_v38  ;;  %v6322_v32 = vld [vmem:[#allocation8 + $0x228] sm:$0xf0]  ;;  %v6773_v40 = vor.u32 %v9095_v23, %v6770_v24 }
 0x13e   :  { %v9187_v45 = vld [vmem:[#allocation8 + $0x864] sm:$0xf0]  ;;  %v7570_v38 = vld [vmem:[#allocation8 + $0xbe8] sm:$0xf0] }
 0x13f   :  { %v7121_v55 = vor.u32 %v9187_v45, %v7120_v44  ;;  %v7088_v59 = vld [vmem:[#allocation8 + $0x808] sm:$0xf]  ;;  %2983 = vmatpush.bf16.msrb.mxu2 %v6133_v50  ;;  %2958 = vmatpush.bf16.msra.mxu3 %v7377_v51  ;;  %v7282_v43 = vld [vmem:[#allocation8 + $0x9a8] sm:$0xf0]  ;;  %v7573_v49 = vor.u32 %v9295_v37, %v7570_v38 }
 0x140   :  { %v7344_v60 = vld [vmem:[#allocation8 + $0xa08] sm:$0xf]  ;;  %v9151_v44 = vld [vmem:[#allocation8 + $0x74c] sm:$0xf]  ;;  %v7285_v50 = vor.u32 %v9223_v39, %v7282_v43 }
 0x141   :  { %v9243_v61 = vld [vmem:[#allocation8 + $0xa24] sm:$0xf0]  ;;  %2995 = vmatpush.bf16.msra.mxu0 %v6421_v46  ;;  %2945 = vmatpush.bf16.msra.mxu1 %v7121_v55  ;;  %v6994_v45 = vld [vmem:[#allocation8 + $0x768] sm:$0xf0]  ;;  %v6325_v46 = vor.u32 %v8983_v31, %v6322_v32  ;;  %v6741_v55 = vor.u32 %v9087_v47, %v6738_v48  ;;  %v307_v0 = vpop.f32.mrf.mxu2 }
 0x142   :  { %v9179_v62 = vld [vmem:[#allocation8 + $0x824] sm:$0xf0]  ;;  %v7345_v6 = vor.u32 %v9243_v61, %v7344_v60  ;;  %v6997_v51 = vor.u32 %v9151_v44, %v6994_v45  ;;  %v9287_v52 = vld [vmem:[#allocation8 + $0xb8c] sm:$0xf]  ;;  %v2727_v21 = vpop.f32.mrf.mxu1 }
 0x143   :  { %v7089_v9 = vor.u32 %v9179_v62, %v7088_v59  ;;  %2984 = vmatpush.bf16.msrb.mxu2 %v6101_v5  ;;  %v7538_v53 = vld [vmem:[#allocation8 + $0xba8] sm:$0xf0]  ;;  %v2714_v17 = vpop.f32.mrf.mxu0 }
 0x144   :  { %2959 = vmatpush.bf16.msra.mxu3 %v7345_v6  ;;  %v9215_v54 = vld [vmem:[#allocation8 + $0x94c] sm:$0xf]  ;;  %v7541_v2 = vor.u32 %v9287_v52, %v7538_v53  ;;  %v2715_v20 = vadd.f32 %v2714_v17, %v10039_v42 }
 0x145   :  { %2996 = vmatpush.bf16.msra.mxu0 %v6389_v1  ;;  %2946 = vmatpush.bf16.msra.mxu1 %v7089_v9  ;;  %v7250_v59 = vld [vmem:[#allocation8 + $0x968] sm:$0xf0]  ;;  %v320_v1 = vpop.f32.mrf.mxu3 }
 0x146   :  { %v9143_v60 = vld [vmem:[#allocation8 + $0x70c] sm:$0xf]  ;;  %v7253_v3 = vor.u32 %v9215_v54, %v7250_v59 }
 0x147   :  { %2960 = vmatmul.bf16.vlgmr.msra.gmra.mxu3 %v10025_v10  ;;  %2985 = vmatpush.bf16.msrb.mxu2 %v6069_v29  ;;  %v6962_v61 = vld [vmem:[#allocation8 + $0x728] sm:$0xf0] }
 0x148   :  { %3017 = vmatpush.bf16.msrb.mxu3 %v7061_v11  ;;  %2947 = vmatmul.bf16.vlgmr.msra.gmra.mxu1 %v10023_v4  ;;  %v9079_v62 = vld [vmem:[#allocation8 + $0x50c] sm:$0xf]  ;;  %v6965_v5 = vor.u32 %v9143_v60, %v6962_v61 }
 0x149   :  { %3004 = vmatpush.bf16.msrb.mxu1 %v6805_v18  ;;  %2997 = vmatpush.bf16.msra.mxu0 %v6357_v22  ;;  %v6706_v63 = vld [vmem:[#allocation8 + $0x528] sm:$0xf0]  ;;  %v2740_v42 = vpop.f32.mrf.mxu2 }
 0x14a   :  { %2986 = vmatmul.bf16.vlgmr.msrb.gmra.mxu2 %v10007_v25  ;;  %v9279_v6 = vld [vmem:[#allocation8 + $0xb4c] sm:$0xf]  ;;  %v6709_v9 = vor.u32 %v9079_v62, %v6706_v63  ;;  %v2729_v61 = vpop.f32.mrf.mxu1 }
 0x14b   :  { %3030 = vmatpush.bf16.msra.mxu2 %v7317_v33  ;;  %v7506_v7 = vld [vmem:[#allocation8 + $0xb68] sm:$0xf0]  ;;  %v2728_v33 = vadd.f32 %v2727_v21, %v2715_v20  ;;  %v8964_v61 = vld [vmem:[#allocation8 + $0x16c] sm:$0xf0] }
 0x14c   :  { %3018 = vmatpush.bf16.msrb.mxu3 %v7029_v36  ;;  %v9207_v8 = vld [vmem:[#allocation8 + $0x90c] sm:$0xf]  ;;  %v7509_v22 = vor.u32 %v9279_v6, %v7506_v7 }
 0x14d   :  { %3005 = vmatpush.bf16.msrb.mxu1 %v6773_v40  ;;  %2998 = vmatpush.bf16.msra.mxu0 %v6325_v46  ;;  %v7218_v11 = vld [vmem:[#allocation8 + $0x928] sm:$0xf0]  ;;  %v2741_v48 = vadd.f32 %v2740_v42, %v2728_v33  ;;  %v2753_v62 = vpop.f32.mrf.mxu3  ;;  %v8972_v42 = vld [vmem:[#allocation8 + $0x1ac] sm:$0xf0] }
 0x14e   :  { %v9135_v12 = vld [vmem:[#allocation8 + $0x6cc] sm:$0xf]  ;;  %v7221_v23 = vor.u32 %v9207_v8, %v7218_v11 }
 0x14f   :  { %3031 = vmatpush.bf16.msra.mxu2 %v7285_v50  ;;  %v6930_v16 = vld [vmem:[#allocation8 + $0x6e8] sm:$0xf0] }
 0x150   :  { %3019 = vmatpush.bf16.msrb.mxu3 %v6997_v51  ;;  %2999 = vmatmul.bf16.vlgmr.msra.gmra.mxu0 %v10011_v30  ;;  %v9071_v18 = vld [vmem:[#allocation8 + $0x4cc] sm:$0xf]  ;;  %v6933_v24 = vor.u32 %v9135_v12, %v6930_v16  ;;  %v6296_v12 = vld [vmem:[#allocation8 + $0x1d0] sm:$0xf] }
 0x151   :  { %3043 = vmatpush.bf16.msrb.mxu0 %v7573_v49  ;;  %3006 = vmatpush.bf16.msrb.mxu1 %v6741_v55  ;;  %v6674_v19 = vld [vmem:[#allocation8 + $0x4e8] sm:$0xf0]  ;;  %v2716_v55 = vpop.f32.mrf.mxu0  ;;  %v8980_v16 = vld [vmem:[#allocation8 + $0x1ec] sm:$0xf0]  ;;  %v2742_v20 = vpop.f32.mrf.mxu2 }
 0x152   :  { %v9271_v29 = vld [vmem:[#allocation8 + $0xb0c] sm:$0xf]  ;;  %v6677_v34 = vor.u32 %v9071_v18, %v6674_v19  ;;  %v9100_v55 = vld [vmem:[#allocation8 + $0x5ac] sm:$0xf0] }
 0x153   :  { %3032 = vmatpush.bf16.msra.mxu2 %v7253_v3  ;;  %v7474_v31 = vld [vmem:[#allocation8 + $0xb28] sm:$0xf0]  ;;  %v7000_v20 = vld [vmem:[#allocation8 + $0x750] sm:$0xf] }
 0x154   :  { %3020 = vmatpush.bf16.msrb.mxu3 %v6965_v5  ;;  %v9199_v32 = vld [vmem:[#allocation8 + $0x8cc] sm:$0xf]  ;;  %v7477_v40 = vor.u32 %v9271_v29, %v7474_v31  ;;  %v10064_v5 = vadd.f32 %v2753_v62, %v2741_v48  ;;  %v6297_v31 = vor.u32 %v8980_v16, %v6296_v12  ;;  %v6200_v12 = vld [vmem:[#allocation8 + $0x110] sm:$0xf] }
 0x155   :  { %3044 = vmatpush.bf16.msrb.mxu0 %v7541_v2  ;;  %3007 = vmatpush.bf16.msrb.mxu1 %v6709_v9  ;;  %v7186_v35 = vld [vmem:[#allocation8 + $0x8e8] sm:$0xf0]  ;;  %v8956_v16 = vld [vmem:[#allocation8 + $0x12c] sm:$0xf0] }
 0x156   :  { %v9127_v36 = vld [vmem:[#allocation8 + $0x68c] sm:$0xf]  ;;  %v7189_v43 = vor.u32 %v9199_v32, %v7186_v35 }
 0x157   :  { %v6898_v37 = vld [vmem:[#allocation8 + $0x6a8] sm:$0xf0]  ;;  %3033 = vmatpush.bf16.msra.mxu2 %v7221_v23 }
 0x158   :  { %v9063_v38 = vld [vmem:[#allocation8 + $0x48c] sm:$0xf]  ;;  %3021 = vmatpush.bf16.msrb.mxu3 %v6933_v24  ;;  %v6901_v44 = vor.u32 %v9127_v36, %v6898_v37  ;;  %v9044_v36 = vld [vmem:[#allocation8 + $0x3ec] sm:$0xf0] }
 0x159   :  { %v6642_v39 = vld [vmem:[#allocation8 + $0x4a8] sm:$0xf0]  ;;  %3045 = vmatpush.bf16.msrb.mxu0 %v7509_v22  ;;  %3008 = vmatpush.bf16.msrb.mxu1 %v6677_v34  ;;  %v6552_v34 = vld [vmem:[#allocation8 + $0x3d0] sm:$0xf]  ;;  %v2792_v62 = vpop.f32.mrf.mxu2 }
 0x15a   :  { %v9263_v45 = vld [vmem:[#allocation8 + $0xacc] sm:$0xf]  ;;  %v6645_v49 = vor.u32 %v9063_v38, %v6642_v39  ;;  %v6808_v37 = vld [vmem:[#allocation8 + $0x5d0] sm:$0xf] }
 0x15b   :  { %v7442_v46 = vld [vmem:[#allocation8 + $0xae8] sm:$0xf0]  ;;  %3034 = vmatpush.bf16.msra.mxu2 %v7189_v43  ;;  %v9108_v38 = vld [vmem:[#allocation8 + $0x5ec] sm:$0xf0] }
 0x15c   :  { %v9191_v47 = vld [vmem:[#allocation8 + $0x88c] sm:$0xf]  ;;  %v7445_v59 = vor.u32 %v9263_v45, %v7442_v46  ;;  %3022 = vmatpush.bf16.msrb.mxu3 %v6901_v44  ;;  %v2755_v46 = vpop.f32.mrf.mxu3  ;;  %v6809_v48 = vor.u32 %v9108_v38, %v6808_v37 }
 0x15d   :  { %v7154_v50 = vld [vmem:[#allocation8 + $0x8a8] sm:$0xf0]  ;;  %3046 = vmatpush.bf16.msrb.mxu0 %v7477_v40  ;;  %3009 = vmatpush.bf16.msrb.mxu1 %v6645_v49  ;;  %v6264_v40 = vld [vmem:[#allocation8 + $0x190] sm:$0xf] }
 0x15e   :  { %v9119_v51 = vld [vmem:[#allocation8 + $0x64c] sm:$0xf]  ;;  %v7157_v63 = vor.u32 %v9191_v47, %v7154_v50  ;;  %v6553_v47 = vor.u32 %v9044_v36, %v6552_v34  ;;  %v7064_v49 = vld [vmem:[#allocation8 + $0x7d0] sm:$0xf] }
 0x15f   :  { %v6866_v52 = vld [vmem:[#allocation8 + $0x668] sm:$0xf0]  ;;  %v9172_v50 = vld [vmem:[#allocation8 + $0x7ec] sm:$0xf0]  ;;  %v2779_v38 = vpop.f32.mrf.mxu1 }
 0x160   :  { %v9055_v53 = vld [vmem:[#allocation8 + $0x44c] sm:$0xf]  ;;  %v6869_v0 = vor.u32 %v9119_v51, %v6866_v52  ;;  %3035 = vmatpush.bf16.msra.mxu2 %v7157_v63  ;;  %v6520_v51 = vld [vmem:[#allocation8 + $0x390] sm:$0xf]  ;;  %v6265_v52 = vor.u32 %v8972_v42, %v6264_v40  ;;  %v7065_v63 = vor.u32 %v9172_v50, %v7064_v49 }
 0x161   :  { %v6610_v54 = vld [vmem:[#allocation8 + $0x468] sm:$0xf0]  ;;  %3047 = vmatpush.bf16.msrb.mxu0 %v7445_v59  ;;  %v8948_v34 = vld [vmem:[#allocation8 + $0xec] sm:$0xf0]  ;;  %v2794_v36 = vpop.f32.mrf.mxu2 }
 0x162   :  { %v9255_v60 = vld [vmem:[#allocation8 + $0xa8c] sm:$0xf]  ;;  %v6613_v6 = vor.u32 %v9055_v53, %v6610_v54  ;;  %3023 = vmatpush.bf16.msrb.mxu3 %v6869_v0  ;;  %v9036_v53 = vld [vmem:[#allocation8 + $0x3ac] sm:$0xf0] }
 0x163   :  { %v7410_v1 = vld [vmem:[#allocation8 + $0xaa8] sm:$0xf0]  ;;  %v6776_v54 = vld [vmem:[#allocation8 + $0x590] sm:$0xf]  ;;  %v6521_v0 = vor.u32 %v9036_v53, %v6520_v51 }
 0x164   :  { %v9183_v2 = vld [vmem:[#allocation8 + $0x84c] sm:$0xf]  ;;  %v7413_v17 = vor.u32 %v9255_v60, %v7410_v1  ;;  %3010 = vmatpush.bf16.msrb.mxu1 %v6613_v6  ;;  %v6232_v60 = vld [vmem:[#allocation8 + $0x150] sm:$0xf]  ;;  %v6777_v1 = vor.u32 %v9100_v55, %v6776_v54 }
 0x165   :  { %v7122_v3 = vld [vmem:[#allocation8 + $0x868] sm:$0xf0]  ;;  %v6488_v6 = vld [vmem:[#allocation8 + $0x350] sm:$0xf] }
 0x166   :  { %v9047_v7 = vld [vmem:[#allocation8 + $0x40c] sm:$0xf]  ;;  %v7125_v21 = vor.u32 %v9183_v2, %v7122_v3  ;;  %3048 = vmatpush.bf16.msrb.mxu0 %v7413_v17  ;;  %v7032_v2 = vld [vmem:[#allocation8 + $0x790] sm:$0xf] }
 0x167   :  { %v9111_v8 = vld [vmem:[#allocation8 + $0x60c] sm:$0xf]  ;;  %v9164_v3 = vld [vmem:[#allocation8 + $0x7ac] sm:$0xf0] }
 0x168   :  { %v6834_v9 = vld [vmem:[#allocation8 + $0x628] sm:$0xf0]  ;;  %3036 = vmatpush.bf16.msra.mxu2 %v7125_v21  ;;  %v7033_v17 = vor.u32 %v9164_v3, %v7032_v2  ;;  %v9156_v21 = vld [vmem:[#allocation8 + $0x76c] sm:$0xf0] }
 0x169   :  { %v6578_v11 = vld [vmem:[#allocation8 + $0x428] sm:$0xf0]  ;;  %v6837_v22 = vor.u32 %v9111_v8, %v6834_v9  ;;  %v9028_v8 = vld [vmem:[#allocation8 + $0x36c] sm:$0xf0]  ;;  %v7001_v37 = vor.u32 %v9156_v21, %v7000_v20 }
 0x16a   :  { %v9303_v18 = vld [vmem:[#allocation8 + $0xc0c] sm:$0xf]  ;;  %v6581_v29 = vor.u32 %v9047_v7, %v6578_v11  ;;  %v6233_v7 = vor.u32 %v8964_v61, %v6232_v60  ;;  %v6744_v9 = vld [vmem:[#allocation8 + $0x550] sm:$0xf]  ;;  %v2805_v61 = vpop.f32.mrf.mxu3 }
 0x16b   :  { %v7602_v19 = vld [vmem:[#allocation8 + $0xc28] sm:$0xf0]  ;;  %3024 = vmatpush.bf16.msrb.mxu3 %v6837_v22  ;;  %v9092_v11 = vld [vmem:[#allocation8 + $0x56c] sm:$0xf0]  ;;  %v2806_v3 = vadd.f32 %v2805_v61, %v10041_v56 }
 0x16c   :  { %v9247_v23 = vld [vmem:[#allocation8 + $0xa4c] sm:$0xf]  ;;  %v7605_v35 = vor.u32 %v9303_v18, %v7602_v19  ;;  %3011 = vmatpush.bf16.msrb.mxu1 %v6581_v29  ;;  %v6489_v18 = vor.u32 %v9028_v8, %v6488_v6  ;;  %v6745_v19 = vor.u32 %v9092_v11, %v6744_v9  ;;  %v6456_v22 = vld [vmem:[#allocation8 + $0x310] sm:$0xf]  ;;  %v2818_v9 = vpop.f32.mrf.mxu2 }
 0x16d   :  { %v7378_v24 = vld [vmem:[#allocation8 + $0xa68] sm:$0xf0]  ;;  %v6712_v29 = vld [vmem:[#allocation8 + $0x510] sm:$0xf]  ;;  %v10076_v20 = vadd.f32 %v2818_v9, %v2806_v3 }
 0x16e   :  { %v9175_v32 = vld [vmem:[#allocation8 + $0x80c] sm:$0xf]  ;;  %v7381_v39 = vor.u32 %v9247_v23, %v7378_v24  ;;  %3025 = vmatmul.bf16.vlgmr.msrb.gmra.mxu3 %v10015_v41  ;;  %v6201_v23 = vor.u32 %v8956_v16, %v6200_v12  ;;  %v9020_v24 = vld [vmem:[#allocation8 + $0x32c] sm:$0xf0] }
 0x16f   :  { %v7090_v33 = vld [vmem:[#allocation8 + $0x828] sm:$0xf0]  ;;  %3069 = vmatpush.bf16.msra.mxu3 %v6297_v31  ;;  %3012 = vmatmul.bf16.vlgmr.msrb.gmra.mxu1 %v10009_v26  ;;  %v9084_v31 = vld [vmem:[#allocation8 + $0x52c] sm:$0xf0] }
 0x170   :  { %v7093_v43 = vor.u32 %v9175_v32, %v7090_v33  ;;  %v9239_v44 = vld [vmem:[#allocation8 + $0xa0c] sm:$0xf]  ;;  %3063 = vmatpush.bf16.msra.mxu1 %v7605_v35  ;;  %3049 = vmatpush.bf16.msrb.mxu0 %v7381_v39  ;;  %v2766_v32 = vpop.f32.mrf.mxu0  ;;  %v6168_v33 = vld [vmem:[#allocation8 + $0xd0] sm:$0xf]  ;;  %v6457_v39 = vor.u32 %v9020_v24, %v6456_v22  ;;  %v6713_v40 = vor.u32 %v9084_v31, %v6712_v29 }
 0x171   :  { %v7346_v45 = vld [vmem:[#allocation8 + $0xa28] sm:$0xf0]  ;;  %v2767_v35 = vadd.f32 %v2766_v32, %v10064_v5  ;;  %v6968_v42 = vld [vmem:[#allocation8 + $0x710] sm:$0xf]  ;;  %v6169_v46 = vor.u32 %v8948_v34, %v6168_v33 }
 0x172   :  { %v7349_v59 = vor.u32 %v9239_v44, %v7346_v45  ;;  %3037 = vmatpush.bf16.msra.mxu2 %v7093_v43  ;;  %v9148_v43 = vld [vmem:[#allocation8 + $0x72c] sm:$0xf0] }
 0x173   :  { %3070 = vmatpush.bf16.msra.mxu3 %v6265_v52  ;;  %v6424_v44 = vld [vmem:[#allocation8 + $0x2d0] sm:$0xf]  ;;  %v2780_v45 = vadd.f32 %v2779_v38, %v2767_v35  ;;  %v6969_v5 = vor.u32 %v9148_v43, %v6968_v42 }
 0x174   :  { %3082 = vmatpush.bf16.msrb.mxu1 %v6553_v47  ;;  %3050 = vmatpush.bf16.msrb.mxu0 %v7349_v59  ;;  %v9012_v47 = vld [vmem:[#allocation8 + $0x2ec] sm:$0xf0] }
 0x175   :  { %3038 = vmatmul.bf16.vlgmr.msra.gmra.mxu2 %v10023_v4  ;;  %v9076_v49 = vld [vmem:[#allocation8 + $0x4ec] sm:$0xf0]  ;;  %v10071_v52 = vadd.f32 %v2792_v62, %v2780_v45  ;;  %v6425_v53 = vor.u32 %v9012_v47, %v6424_v44  ;;  %v2807_v44 = vpop.f32.mrf.mxu3 }
 0x176   :  { %3095 = vmatpush.bf16.msrb.mxu2 %v6809_v48  ;;  %v6680_v48 = vld [vmem:[#allocation8 + $0x4d0] sm:$0xf] }
 0x177   :  { %3071 = vmatpush.bf16.msra.mxu3 %v6233_v7  ;;  %3051 = vmatmul.bf16.vlgmr.msrb.gmra.mxu0 %v10025_v10  ;;  %v6136_v50 = vld [vmem:[#allocation8 + $0x90] sm:$0xf]  ;;  %v6681_v54 = vor.u32 %v9076_v49, %v6680_v48  ;;  %vm3433_vm2 = vcmp.gt.f32.partialorder %v10071_v52, 0.0 }
 0x178   :  { %3108 = vmatpush.bf16.msra.mxu0 %v7065_v63  ;;  %3083 = vmatpush.bf16.msrb.mxu1 %v6521_v0  ;;  %v8940_v51 = vld [vmem:[#allocation8 + $0xac] sm:$0xf0]  ;;  %v2768_v7 = vpop.f32.mrf.mxu0 }
 0x179   :  { %v6936_v55 = vld [vmem:[#allocation8 + $0x6d0] sm:$0xf]  ;;  %v6137_v63 = vor.u32 %v8940_v51, %v6136_v50 }
 0x17a   :  { %3096 = vmatpush.bf16.msrb.mxu2 %v6777_v1  ;;  %v9140_v59 = vld [vmem:[#allocation8 + $0x6ec] sm:$0xf0] }
 0x17b   :  { %3072 = vmatpush.bf16.msra.mxu3 %v6201_v23  ;;  %v6392_v60 = vld [vmem:[#allocation8 + $0x290] sm:$0xf]  ;;  %v6937_v8 = vor.u32 %v9140_v59, %v6936_v55  ;;  %v2820_v59 = vpop.f32.mrf.mxu2 }
 0x17c   :  { %3109 = vmatpush.bf16.msra.mxu0 %v7033_v17  ;;  %3084 = vmatpush.bf16.msrb.mxu1 %v6489_v18  ;;  %v9004_v0 = vld [vmem:[#allocation8 + $0x2ac] sm:$0xf0] }
 0x17d   :  { %v6648_v1 = vld [vmem:[#allocation8 + $0x490] sm:$0xf]  ;;  %v6393_v11 = vor.u32 %v9004_v0, %v6392_v60  ;;  %v6298_v0 = vld [vmem:[#allocation8 + $0x1f0] sm:$0xf0] }
 0x17e   :  { %3097 = vmatpush.bf16.msrb.mxu2 %v6745_v19  ;;  %v9068_v2 = vld [vmem:[#allocation8 + $0x4ac] sm:$0xf0]  ;;  %v2781_v19 = vpop.f32.mrf.mxu1 }
 0x17f   :  { %3073 = vmatpush.bf16.msra.mxu3 %v6169_v46  ;;  %v6104_v6 = vld [vmem:[#allocation8 + $0x50] sm:$0xf]  ;;  %7625 = vmatmul.msk.bf16.vlgmr.msra.gmra.mxu1 %vm214_vm1, %v10019_v15  ;;  %v6649_v12 = vor.u32 %v9068_v2, %v6648_v1  ;;  %v9040_v1 = vld [vmem:[#allocation8 + $0x3d4] sm:$0xf] }
 0x180   :  { %3110 = vmatpush.bf16.msra.mxu0 %v7001_v37  ;;  %3085 = vmatpush.bf16.msrb.mxu1 %v6457_v39  ;;  %v8932_v62 = vld [vmem:[#allocation8 + $0x6c] sm:$0xf0]  ;;  %v6266_v19 = vld [vmem:[#allocation8 + $0x1b0] sm:$0xf0] }
 0x181   :  { %v6904_v16 = vld [vmem:[#allocation8 + $0x690] sm:$0xf]  ;;  %v6105_v56 = vor.u32 %v8932_v62, %v6104_v6  ;;  %v6554_v6 = vld [vmem:[#allocation8 + $0x3f0] sm:$0xf0] }
 0x182   :  { %3098 = vmatpush.bf16.msrb.mxu2 %v6713_v40  ;;  %v9132_v17 = vld [vmem:[#allocation8 + $0x6ac] sm:$0xf0] }
 0x183   :  { %v6360_v18 = vld [vmem:[#allocation8 + $0x250] sm:$0xf]  ;;  %3074 = vmatpush.bf16.msra.mxu3 %v6137_v63  ;;  %v6905_v31 = vor.u32 %v9132_v17, %v6904_v16  ;;  %v8976_v63 = vld [vmem:[#allocation8 + $0x1d4] sm:$0xf]  ;;  %v6557_v16 = vor.u32 %v9040_v1, %v6554_v6 }
 0x184   :  { %3111 = vmatpush.bf16.msra.mxu0 %v6969_v5  ;;  %3086 = vmatpush.bf16.msrb.mxu1 %v6425_v53  ;;  %v8996_v21 = vld [vmem:[#allocation8 + $0x26c] sm:$0xf0]  ;;  %v6170_v6 = vld [vmem:[#allocation8 + $0xf0] sm:$0xf0] }
 0x185   :  { %v6616_v22 = vld [vmem:[#allocation8 + $0x450] sm:$0xf]  ;;  %v6361_v34 = vor.u32 %v8996_v21, %v6360_v18  ;;  %v8968_v18 = vld [vmem:[#allocation8 + $0x194] sm:$0xf] }
 0x186   :  { %3099 = vmatpush.bf16.msrb.mxu2 %v6681_v54  ;;  %v9060_v23 = vld [vmem:[#allocation8 + $0x46c] sm:$0xf0] }
 0x187   :  { %v6072_v24 = vld [vmem:[#allocation8 + $0x10] sm:$0xf]  ;;  %v6617_v35 = vor.u32 %v9060_v23, %v6616_v22  ;;  %3075 = vmatpush.bf16.msra.mxu3 %v6105_v56  ;;  %v9032_v56 = vld [vmem:[#allocation8 + $0x394] sm:$0xf] }
 0x188   :  { %v8924_v29 = vld [vmem:[#allocation8 + $0x2c] sm:$0xf0]  ;;  %3112 = vmatpush.bf16.msra.mxu0 %v6937_v8  ;;  %3087 = vmatpush.bf16.msrb.mxu1 %v6393_v11  ;;  %v6522_v22 = vld [vmem:[#allocation8 + $0x3b0] sm:$0xf0] }
 0x189   :  { %v7320_v32 = vld [vmem:[#allocation8 + $0x9d0] sm:$0xf]  ;;  %v6073_v39 = vor.u32 %v8924_v29, %v6072_v24 }
 0x18a   :  { %v9236_v33 = vld [vmem:[#allocation8 + $0x9ec] sm:$0xf0]  ;;  %3100 = vmatpush.bf16.msrb.mxu2 %v6649_v12  ;;  %v6301_v12 = vor.u32 %v8976_v63, %v6298_v0 }
 0x18b   :  { %v6872_v36 = vld [vmem:[#allocation8 + $0x650] sm:$0xf]  ;;  %v7321_v45 = vor.u32 %v9236_v33, %v7320_v32  ;;  %3076 = vmatpush.bf16.msra.mxu3 %v6073_v39  ;;  %v6269_v32 = vor.u32 %v8968_v18, %v6266_v19  ;;  %v6525_v33 = vor.u32 %v9032_v56, %v6522_v22  ;;  %v6490_v39 = vld [vmem:[#allocation8 + $0x370] sm:$0xf0] }
 0x18c   :  { %v9124_v37 = vld [vmem:[#allocation8 + $0x66c] sm:$0xf0]  ;;  %3113 = vmatpush.bf16.msra.mxu0 %v6905_v31  ;;  %3088 = vmatpush.bf16.msrb.mxu1 %v6361_v34 }
 0x18d   :  { %v6328_v38 = vld [vmem:[#allocation8 + $0x210] sm:$0xf]  ;;  %v6873_v49 = vor.u32 %v9124_v37, %v6872_v36  ;;  %v6234_v36 = vld [vmem:[#allocation8 + $0x170] sm:$0xf0] }
 0x18e   :  { %v8988_v40 = vld [vmem:[#allocation8 + $0x22c] sm:$0xf0]  ;;  %3101 = vmatpush.bf16.msrb.mxu2 %v6617_v35  ;;  %3077 = vmatmul.bf16.vlgmr.msra.gmra.mxu3 %v10007_v25  ;;  %v8960_v35 = vld [vmem:[#allocation8 + $0x154] sm:$0xf] }
 0x18f   :  { %v6584_v42 = vld [vmem:[#allocation8 + $0x410] sm:$0xf]  ;;  %v6329_v53 = vor.u32 %v8988_v40, %v6328_v38  ;;  %3121 = vmatpush.bf16.msrb.mxu3 %v7321_v45  ;;  %v9024_v37 = vld [vmem:[#allocation8 + $0x354] sm:$0xf] }
 0x190   :  { %v9052_v43 = vld [vmem:[#allocation8 + $0x42c] sm:$0xf0]  ;;  %3114 = vmatpush.bf16.msra.mxu0 %v6873_v49 }
 0x191   :  { %v7576_v46 = vld [vmem:[#allocation8 + $0xbd0] sm:$0xf]  ;;  %v6585_v60 = vor.u32 %v9052_v43, %v6584_v42  ;;  %3089 = vmatpush.bf16.msrb.mxu1 %v6329_v53  ;;  %v2831_v43 = vpop.f32.mrf.mxu0  ;;  %v2844_v53 = vpop.f32.mrf.mxu1 }
 0x192   :  { %v9300_v47 = vld [vmem:[#allocation8 + $0xbec] sm:$0xf0] }
 0x193   :  { %v7288_v48 = vld [vmem:[#allocation8 + $0x990] sm:$0xf]  ;;  %v7577_v61 = vor.u32 %v9300_v47, %v7576_v46  ;;  %3102 = vmatpush.bf16.msrb.mxu2 %v6585_v60  ;;  %v2832_v46 = vadd.f32 %v2831_v43, %v10076_v20  ;;  %v6237_v47 = vor.u32 %v8960_v35, %v6234_v36  ;;  %v6810_v43 = vld [vmem:[#allocation8 + $0x5f0] sm:$0xf0] }
 0x194   :  { %v9228_v50 = vld [vmem:[#allocation8 + $0x9ac] sm:$0xf0]  ;;  %3090 = vmatmul.bf16.vlgmr.msrb.gmra.mxu1 %v10011_v30 }
 0x195   :  { %v7608_v51 = vld [vmem:[#allocation8 + $0xc10] sm:$0xf]  ;;  %v7289_v2 = vor.u32 %v9228_v50, %v7288_v48  ;;  %3134 = vmatpush.bf16.msra.mxu1 %v7577_v61  ;;  %v6493_v48 = vor.u32 %v9024_v37, %v6490_v39  ;;  %v8952_v50 = vld [vmem:[#allocation8 + $0x114] sm:$0xf]  ;;  %v2845_v61 = vadd.f32 %v2844_v53, %v2832_v46 }
 0x196   :  { %v9308_v5 = vld [vmem:[#allocation8 + $0xc2c] sm:$0xf0]  ;;  %3103 = vmatmul.bf16.vlgmr.msrb.gmra.mxu2 %v10009_v26  ;;  %v8928_v46 = vld [vmem:[#allocation8 + $0x54] sm:$0xf] }
 0x197   :  { %v6840_v54 = vld [vmem:[#allocation8 + $0x610] sm:$0xf]  ;;  %v7609_v3 = vor.u32 %v9308_v5, %v7608_v51  ;;  %3122 = vmatpush.bf16.msrb.mxu3 %v7289_v2  ;;  %v6202_v51 = vld [vmem:[#allocation8 + $0x130] sm:$0xf0] }
 0x198   :  { %v9116_v55 = vld [vmem:[#allocation8 + $0x62c] sm:$0xf0]  ;;  %v9016_v5 = vld [vmem:[#allocation8 + $0x314] sm:$0xf]  ;;  %v6205_v1 = vor.u32 %v8952_v50, %v6202_v51 }
 0x199   :  { %v7544_v62 = vld [vmem:[#allocation8 + $0xb90] sm:$0xf]  ;;  %v6841_v8 = vor.u32 %v9116_v55, %v6840_v54  ;;  %3154 = vmatpush.bf16.msra.mxu2 %v7609_v3  ;;  %v6458_v55 = vld [vmem:[#allocation8 + $0x330] sm:$0xf0]  ;;  %v2846_v37 = vpop.f32.mrf.mxu1 }
 0x19a   :  { %v9292_v7 = vld [vmem:[#allocation8 + $0xbac] sm:$0xf0]  ;;  %v6461_v20 = vor.u32 %v9016_v5, %v6458_v55  ;;  %v8944_v3 = vld [vmem:[#allocation8 + $0xd4] sm:$0xf] }
 0x19b   :  { %v7256_v9 = vld [vmem:[#allocation8 + $0x950] sm:$0xf]  ;;  %v7545_v17 = vor.u32 %v9292_v7, %v7544_v62  ;;  %3115 = vmatpush.bf16.msra.mxu0 %v6841_v8  ;;  %v9008_v62 = vld [vmem:[#allocation8 + $0x2d4] sm:$0xf]  ;;  %v2857_v7 = vpop.f32.mrf.mxu3  ;;  %v6173_v56 = vor.u32 %v8944_v3, %v6170_v6 }
 0x19c   :  { %v9220_v11 = vld [vmem:[#allocation8 + $0x96c] sm:$0xf0]  ;;  %v6362_v50 = vld [vmem:[#allocation8 + $0x270] sm:$0xf0] }
 0x19d   :  { %v7257_v21 = vor.u32 %v9220_v11, %v7256_v9  ;;  %v7512_v23 = vld [vmem:[#allocation8 + $0xb50] sm:$0xf]  ;;  %3173 = vmatpush.bf16.msrb.mxu2 %v6557_v16  ;;  %3135 = vmatpush.bf16.msra.mxu1 %v7545_v17  ;;  %v6426_v9 = vld [vmem:[#allocation8 + $0x2f0] sm:$0xf0]  ;;  %v2858_v16 = vadd.f32 %v2857_v7, %v2845_v61  ;;  %v2833_v17 = vpop.f32.mrf.mxu0 }
 0x19e   :  { %v9284_v24 = vld [vmem:[#allocation8 + $0xb6c] sm:$0xf0]  ;;  %3116 = vmatmul.bf16.vlgmr.msra.gmra.mxu0 %v10015_v41  ;;  %v6429_v22 = vor.u32 %v9008_v62, %v6426_v9  ;;  %v6074_v3 = vld [vmem:[#allocation8 + $0x30] sm:$0xf0] }
 0x19f   :  { %v7224_v29 = vld [vmem:[#allocation8 + $0x910] sm:$0xf]  ;;  %3160 = vmatpush.bf16.msrb.mxu0 %v6301_v12  ;;  %v7513_v34 = vor.u32 %v9284_v24, %v7512_v23  ;;  %3123 = vmatpush.bf16.msrb.mxu3 %v7257_v21  ;;  %v2870_v21 = vpop.f32.mrf.mxu2  ;;  %v8936_v24 = vld [vmem:[#allocation8 + $0x94] sm:$0xf] }
 0x1a0   :  { %v9212_v31 = vld [vmem:[#allocation8 + $0x92c] sm:$0xf0]  ;;  %v8984_v6 = vld [vmem:[#allocation8 + $0x214] sm:$0xf] }
 0x1a1   :  { %v7225_v38 = vor.u32 %v9212_v31, %v7224_v29  ;;  %v7480_v40 = vld [vmem:[#allocation8 + $0xb10] sm:$0xf]  ;;  %3174 = vmatpush.bf16.msrb.mxu2 %v6525_v33  ;;  %3136 = vmatpush.bf16.msra.mxu1 %v7513_v34  ;;  %v6138_v29 = vld [vmem:[#allocation8 + $0xb0] sm:$0xf0] }
 0x1a2   :  { %v9276_v42 = vld [vmem:[#allocation8 + $0xb2c] sm:$0xf0]  ;;  %v9000_v31 = vld [vmem:[#allocation8 + $0x294] sm:$0xf] }
 0x1a3   :  { %v7192_v44 = vld [vmem:[#allocation8 + $0x8d0] sm:$0xf]  ;;  %3161 = vmatpush.bf16.msrb.mxu0 %v6269_v32  ;;  %v7481_v49 = vor.u32 %v9276_v42, %v7480_v40  ;;  %3124 = vmatpush.bf16.msrb.mxu3 %v7225_v38  ;;  %v2871_v32 = vadd.f32 %v2870_v21, %v2858_v16  ;;  %v6394_v34 = vld [vmem:[#allocation8 + $0x2b0] sm:$0xf0]  ;;  %v6141_v40 = vor.u32 %v8936_v24, %v6138_v29  ;;  %v2859_v51 = vpop.f32.mrf.mxu3 }
 0x1a4   :  { %v9204_v45 = vld [vmem:[#allocation8 + $0x8ec] sm:$0xf0]  ;;  %v9104_v42 = vld [vmem:[#allocation8 + $0x5d4] sm:$0xf] }
 0x1a5   :  { %v7193_v54 = vor.u32 %v9204_v45, %v7192_v44  ;;  %v7448_v59 = vld [vmem:[#allocation8 + $0xad0] sm:$0xf]  ;;  %3175 = vmatpush.bf16.msrb.mxu2 %v6493_v48  ;;  %3137 = vmatpush.bf16.msra.mxu1 %v7481_v49  ;;  %v6397_v44 = vor.u32 %v9000_v31, %v6394_v34  ;;  %v8992_v49 = vld [vmem:[#allocation8 + $0x254] sm:$0xf]  ;;  %v2883_v5 = vpop.f32.mrf.mxu0  ;;  %v6813_v53 = vor.u32 %v9104_v42, %v6810_v43 }
 0x1a6   :  { %v9268_v60 = vld [vmem:[#allocation8 + $0xaec] sm:$0xf0]  ;;  %7626 = vmatmul.msk.bf16.vlgmr.msra.gmra.mxu2 %vm214_vm1, %v10019_v15  ;;  %v9232_v9 = vld [vmem:[#allocation8 + $0x9d4] sm:$0xf] }
 0x1a7   :  { %v7160_v63 = vld [vmem:[#allocation8 + $0x890] sm:$0xf]  ;;  %3162 = vmatpush.bf16.msrb.mxu0 %v6237_v47  ;;  %v7449_v2 = vor.u32 %v9268_v60, %v7448_v59  ;;  %3125 = vmatpush.bf16.msrb.mxu3 %v7193_v54  ;;  %v6106_v47 = vld [vmem:[#allocation8 + $0x70] sm:$0xf0]  ;;  %v10085_v60 = vadd.f32 %v2883_v5, %v2871_v32  ;;  %v2872_v62 = vpop.f32.mrf.mxu2 }
 0x1a8   :  { %v9196_v0 = vld [vmem:[#allocation8 + $0x8ac] sm:$0xf0]  ;;  %v9168_v59 = vld [vmem:[#allocation8 + $0x7d4] sm:$0xf]  ;;  %v6109_v61 = vor.u32 %v8928_v46, %v6106_v47 }
 0x1a9   :  { %v7161_v8 = vor.u32 %v9196_v0, %v7160_v63  ;;  %v7416_v11 = vld [vmem:[#allocation8 + $0xa90] sm:$0xf]  ;;  %3176 = vmatpush.bf16.msrb.mxu2 %v6461_v20  ;;  %3138 = vmatpush.bf16.msra.mxu1 %v7449_v2  ;;  %v7066_v63 = vld [vmem:[#allocation8 + $0x7f0] sm:$0xf0]  ;;  %v6365_v20 = vor.u32 %v8992_v49, %v6362_v50  ;;  %vm3434_vm3 = vcmp.gt.f32.partialorder %v10085_v60, 0.0 }
 0x1aa   :  { %v9260_v12 = vld [vmem:[#allocation8 + $0xaac] sm:$0xf0]  ;;  %v9096_v0 = vld [vmem:[#allocation8 + $0x594] sm:$0xf] }
 0x1ab   :  { %v7128_v18 = vld [vmem:[#allocation8 + $0x850] sm:$0xf]  ;;  %3163 = vmatpush.bf16.msrb.mxu0 %v6205_v1  ;;  %v7417_v23 = vor.u32 %v9260_v12, %v7416_v11  ;;  %3126 = vmatpush.bf16.msrb.mxu3 %v7161_v8  ;;  %v6778_v1 = vld [vmem:[#allocation8 + $0x5b0] sm:$0xf0]  ;;  %v7069_v12 = vor.u32 %v9168_v59, %v7066_v63 }
 0x1ac   :  { %v9188_v19 = vld [vmem:[#allocation8 + $0x86c] sm:$0xf0]  ;;  %v8920_v2 = vld [vmem:[#allocation8 + $0x14] sm:$0xf]  ;;  %v6781_v16 = vor.u32 %v9096_v0, %v6778_v1 }
 0x1ad   :  { %v7129_v33 = vor.u32 %v9188_v19, %v7128_v18  ;;  %v7384_v35 = vld [vmem:[#allocation8 + $0xa50] sm:$0xf]  ;;  %3177 = vmatpush.bf16.msrb.mxu2 %v6429_v22  ;;  %3139 = vmatpush.bf16.msra.mxu1 %v7417_v23  ;;  %v6330_v8 = vld [vmem:[#allocation8 + $0x230] sm:$0xf0]  ;;  %v6077_v19 = vor.u32 %v8920_v2, %v6074_v3  ;;  %v2885_v34 = vpop.f32.mrf.mxu0 }
 0x1ae   :  { %v9252_v36 = vld [vmem:[#allocation8 + $0xa6c] sm:$0xf0]  ;;  %v7322_v11 = vld [vmem:[#allocation8 + $0x9f0] sm:$0xf0]  ;;  %v6333_v22 = vor.u32 %v8984_v6, %v6330_v8 }
 0x1af   :  { %v7096_v38 = vld [vmem:[#allocation8 + $0x810] sm:$0xf]  ;;  %3164 = vmatpush.bf16.msrb.mxu0 %v6173_v56  ;;  %v7385_v45 = vor.u32 %v9252_v36, %v7384_v35  ;;  %3127 = vmatpush.bf16.msrb.mxu3 %v7129_v33  ;;  %v9296_v17 = vld [vmem:[#allocation8 + $0xbd4] sm:$0xf]  ;;  %v7325_v23 = vor.u32 %v9232_v9, %v7322_v11 }
 0x1b0   :  { %v9180_v39 = vld [vmem:[#allocation8 + $0x82c] sm:$0xf0]  ;;  %v7578_v18 = vld [vmem:[#allocation8 + $0xbf0] sm:$0xf0] }
 0x1b1   :  { %v7097_v48 = vor.u32 %v9180_v39, %v7096_v38  ;;  %v7352_v54 = vld [vmem:[#allocation8 + $0xa10] sm:$0xf]  ;;  %3178 = vmatpush.bf16.msrb.mxu2 %v6397_v44  ;;  %3140 = vmatpush.bf16.msra.mxu1 %v7385_v45  ;;  %v9160_v56 = vld [vmem:[#allocation8 + $0x794] sm:$0xf]  ;;  %v7581_v31 = vor.u32 %v9296_v17, %v7578_v18 }
 0x1b2   :  { %v9244_v55 = vld [vmem:[#allocation8 + $0xa2c] sm:$0xf0]  ;;  %v7034_v21 = vld [vmem:[#allocation8 + $0x7b0] sm:$0xf0] }
 0x1b3   :  { %3165 = vmatpush.bf16.msrb.mxu0 %v6141_v40  ;;  %3128 = vmatpush.bf16.msrb.mxu3 %v7097_v48  ;;  %v7353_v7 = vor.u32 %v9244_v55, %v7352_v54  ;;  %v9088_v24 = vld [vmem:[#allocation8 + $0x554] sm:$0xf]  ;;  %v7037_v35 = vor.u32 %v9160_v56, %v7034_v21  ;;  %v2909_v56 = vpop.f32.mrf.mxu3 }
 0x1b4   :  { %v6746_v29 = vld [vmem:[#allocation8 + $0x570] sm:$0xf0] }
 0x1b5   :  { %3179 = vmatpush.bf16.msrb.mxu2 %v6365_v20  ;;  %3141 = vmatpush.bf16.msra.mxu1 %v7353_v7  ;;  %v9224_v32 = vld [vmem:[#allocation8 + $0x994] sm:$0xf]  ;;  %v6749_v38 = vor.u32 %v9088_v24, %v6746_v29  ;;  %v2922_v8 = vpop.f32.mrf.mxu0 }
 0x1b6   :  { %3129 = vmatmul.bf16.vlgmr.msrb.gmra.mxu3 %v10023_v4  ;;  %v7290_v33 = vld [vmem:[#allocation8 + $0x9b0] sm:$0xf0] }
 0x1b7   :  { %3186 = vmatpush.bf16.msra.mxu3 %v6813_v53  ;;  %3166 = vmatpush.bf16.msrb.mxu0 %v6109_v61  ;;  %v9288_v36 = vld [vmem:[#allocation8 + $0xb94] sm:$0xf]  ;;  %v7293_v42 = vor.u32 %v9224_v32, %v7290_v33  ;;  %v2896_v61 = vpop.f32.mrf.mxu1 }
 0x1b8   :  { %v7546_v37 = vld [vmem:[#allocation8 + $0xbb0] sm:$0xf0]  ;;  %3142 = vmatmul.bf16.vlgmr.msra.gmra.mxu1 %v10025_v10 }
 0x1b9   :  { %3199 = vmatpush.bf16.msrb.mxu1 %v7069_v12  ;;  %v9152_v39 = vld [vmem:[#allocation8 + $0x754] sm:$0xf]  ;;  %3180 = vmatpush.bf16.msrb.mxu2 %v6333_v22  ;;  %v7549_v45 = vor.u32 %v9288_v36, %v7546_v37 }
 0x1ba   :  { %v7002_v40 = vld [vmem:[#allocation8 + $0x770] sm:$0xf0] }
 0x1bb   :  { %3187 = vmatpush.bf16.msra.mxu3 %v6781_v16  ;;  %3167 = vmatpush.bf16.msrb.mxu0 %v6077_v19  ;;  %v9080_v43 = vld [vmem:[#allocation8 + $0x514] sm:$0xf]  ;;  %v7005_v48 = vor.u32 %v9152_v39, %v7002_v40  ;;  %v2897_v16 = vadd.f32 %v2896_v61, %v10045_v13  ;;  %v2935_v40 = vpop.f32.mrf.mxu2 }
 0x1bc   :  { %v6714_v44 = vld [vmem:[#allocation8 + $0x530] sm:$0xf0]  ;;  %3181 = vmatmul.bf16.vlgmr.msrb.gmra.mxu2 %v10011_v30 }
 0x1bd   :  { %3225 = vmatpush.bf16.msra.mxu2 %v7581_v31  ;;  %v9216_v46 = vld [vmem:[#allocation8 + $0x954] sm:$0xf]  ;;  %3200 = vmatpush.bf16.msrb.mxu1 %v7037_v35  ;;  %v6717_v51 = vor.u32 %v9080_v43, %v6714_v44  ;;  %v2910_v24 = vadd.f32 %v2909_v56, %v2897_v16 }
 0x1be   :  { %v7258_v47 = vld [vmem:[#allocation8 + $0x970] sm:$0xf0]  ;;  %3168 = vmatmul.bf16.vlgmr.msrb.gmra.mxu0 %v10007_v25 }
 0x1bf   :  { %3212 = vmatpush.bf16.msra.mxu0 %v7325_v23  ;;  %v9280_v49 = vld [vmem:[#allocation8 + $0xb54] sm:$0xf]  ;;  %3188 = vmatpush.bf16.msra.mxu3 %v6749_v38  ;;  %v7261_v54 = vor.u32 %v9216_v46, %v7258_v47  ;;  %v2923_v13 = vadd.f32 %v2922_v8, %v2910_v24  ;;  %v2898_v39 = vpop.f32.mrf.mxu1 }
 0x1c0   :  { %v7514_v50 = vld [vmem:[#allocation8 + $0xb70] sm:$0xf0] }
 0x1c1   :  { %v9144_v5 = vld [vmem:[#allocation8 + $0x714] sm:$0xf]  ;;  %3226 = vmatpush.bf16.msra.mxu2 %v7549_v45  ;;  %v7517_v63 = vor.u32 %v9280_v49, %v7514_v50  ;;  %3201 = vmatpush.bf16.msrb.mxu1 %v7005_v48  ;;  %v10092_v45 = vadd.f32 %v2935_v40, %v2923_v13  ;;  %v2924_v49 = vpop.f32.mrf.mxu0 }
 0x1c2   :  { %v6970_v53 = vld [vmem:[#allocation8 + $0x730] sm:$0xf0]  ;;  %v9165_v49 = vld [vmem:[#allocation8 + $0x7b4] sm:$0xf0] }
 0x1c3   :  { %3213 = vmatpush.bf16.msra.mxu0 %v7293_v42  ;;  %v9072_v55 = vld [vmem:[#allocation8 + $0x4d4] sm:$0xf]  ;;  %v6973_v20 = vor.u32 %v9144_v5, %v6970_v53  ;;  %3189 = vmatpush.bf16.msra.mxu3 %v6717_v51  ;;  %v2937_v24 = vpop.f32.mrf.mxu2 }
 0x1c4   :  { %v6682_v59 = vld [vmem:[#allocation8 + $0x4f0] sm:$0xf0]  ;;  %v6432_v24 = vld [vmem:[#allocation8 + $0x2d8] sm:$0xf] }
 0x1c5   :  { %v9208_v0 = vld [vmem:[#allocation8 + $0x914] sm:$0xf]  ;;  %v6685_v6 = vor.u32 %v9072_v55, %v6682_v59  ;;  %3227 = vmatpush.bf16.msra.mxu2 %v7517_v63  ;;  %3202 = vmatpush.bf16.msrb.mxu1 %v6973_v20  ;;  %v2911_v20 = vpop.f32.mrf.mxu3 }
 0x1c6   :  { %v7226_v1 = vld [vmem:[#allocation8 + $0x930] sm:$0xf0]  ;;  %v9157_v20 = vld [vmem:[#allocation8 + $0x774] sm:$0xf0] }
 0x1c7   :  { %v9272_v2 = vld [vmem:[#allocation8 + $0xb14] sm:$0xf]  ;;  %3214 = vmatpush.bf16.msra.mxu0 %v7261_v54  ;;  %v7229_v9 = vor.u32 %v9208_v0, %v7226_v1  ;;  %3190 = vmatpush.bf16.msra.mxu3 %v6685_v6 }
 0x1c8   :  { %v7482_v3 = vld [vmem:[#allocation8 + $0xb30] sm:$0xf0] }
 0x1c9   :  { %v9136_v62 = vld [vmem:[#allocation8 + $0x6d4] sm:$0xf]  ;;  %v7485_v17 = vor.u32 %v9272_v2, %v7482_v3  ;;  %v10094_v13 = vpop.f32.mrf.mxu0 }
 0x1ca   :  { %v6938_v7 = vld [vmem:[#allocation8 + $0x6f0] sm:$0xf0] }
 0x1cb   :  { %v9064_v11 = vld [vmem:[#allocation8 + $0x494] sm:$0xf]  ;;  %v6941_v21 = vor.u32 %v9136_v62, %v6938_v7  ;;  %3215 = vmatpush.bf16.msra.mxu0 %v7229_v9  ;;  %3228 = vmatpush.bf16.msra.mxu2 %v7485_v17  ;;  %v6304_v62 = vld [vmem:[#allocation8 + $0x1d8] sm:$0xf] }
 0x1cc   :  { %v6650_v12 = vld [vmem:[#allocation8 + $0x4b0] sm:$0xf0]  ;;  %v8981_v9 = vld [vmem:[#allocation8 + $0x1f4] sm:$0xf0] }
 0x1cd   :  { %v9200_v18 = vld [vmem:[#allocation8 + $0x8d4] sm:$0xf]  ;;  %v6653_v29 = vor.u32 %v9064_v11, %v6650_v12  ;;  %3203 = vmatpush.bf16.msrb.mxu1 %v6941_v21  ;;  %v6560_v11 = vld [vmem:[#allocation8 + $0x3d8] sm:$0xf] }
 0x1ce   :  { %v7194_v19 = vld [vmem:[#allocation8 + $0x8f0] sm:$0xf0]  ;;  %v9045_v12 = vld [vmem:[#allocation8 + $0x3f4] sm:$0xf0] }
 0x1cf   :  { %v9264_v22 = vld [vmem:[#allocation8 + $0xad4] sm:$0xf]  ;;  %v7197_v33 = vor.u32 %v9200_v18, %v7194_v19  ;;  %3191 = vmatpush.bf16.msra.mxu3 %v6653_v29  ;;  %v6305_v29 = vor.u32 %v8981_v9, %v6304_v62  ;;  %v6464_v62 = vld [vmem:[#allocation8 + $0x318] sm:$0xf]  ;;  %v2948_v9 = vpop.f32.mrf.mxu1 }
 0x1d0   :  { %v7450_v23 = vld [vmem:[#allocation8 + $0xaf0] sm:$0xf0] }
 0x1d1   :  { %v9128_v31 = vld [vmem:[#allocation8 + $0x694] sm:$0xf]  ;;  %v7453_v36 = vor.u32 %v9264_v22, %v7450_v23  ;;  %3216 = vmatpush.bf16.msra.mxu0 %v7197_v33  ;;  %v6816_v22 = vld [vmem:[#allocation8 + $0x5d8] sm:$0xf] }
 0x1d2   :  { %v6906_v32 = vld [vmem:[#allocation8 + $0x6b0] sm:$0xf0]  ;;  %v9109_v23 = vld [vmem:[#allocation8 + $0x5f4] sm:$0xf0] }
 0x1d3   :  { %v9056_v34 = vld [vmem:[#allocation8 + $0x454] sm:$0xf]  ;;  %v6909_v42 = vor.u32 %v9128_v31, %v6906_v32  ;;  %3229 = vmatpush.bf16.msra.mxu2 %v7453_v36  ;;  %v6561_v31 = vor.u32 %v9045_v12, %v6560_v11  ;;  %v7072_v32 = vld [vmem:[#allocation8 + $0x7d8] sm:$0xf]  ;;  %v6817_v40 = vor.u32 %v9109_v23, %v6816_v22 }
 0x1d4   :  { %v6618_v35 = vld [vmem:[#allocation8 + $0x470] sm:$0xf0]  ;;  %v9173_v33 = vld [vmem:[#allocation8 + $0x7f4] sm:$0xf0] }
 0x1d5   :  { %v9192_v37 = vld [vmem:[#allocation8 + $0x894] sm:$0xf]  ;;  %v6621_v46 = vor.u32 %v9056_v34, %v6618_v35  ;;  %3204 = vmatpush.bf16.msrb.mxu1 %v6909_v42  ;;  %v6272_v34 = vld [vmem:[#allocation8 + $0x198] sm:$0xf]  ;;  %v7073_v42 = vor.u32 %v9173_v33, %v7072_v32 }
 0x1d6   :  { %v7162_v38 = vld [vmem:[#allocation8 + $0x8b0] sm:$0xf0]  ;;  %v8973_v36 = vld [vmem:[#allocation8 + $0x1b4] sm:$0xf0] }
 0x1d7   :  { %v9256_v43 = vld [vmem:[#allocation8 + $0xa94] sm:$0xf]  ;;  %v7165_v50 = vor.u32 %v9192_v37, %v7162_v38  ;;  %3192 = vmatpush.bf16.msra.mxu3 %v6621_v46  ;;  %v6528_v37 = vld [vmem:[#allocation8 + $0x398] sm:$0xf]  ;;  %v6273_v46 = vor.u32 %v8973_v36, %v6272_v34 }
 0x1d8   :  { %v7418_v44 = vld [vmem:[#allocation8 + $0xab0] sm:$0xf0]  ;;  %v9037_v38 = vld [vmem:[#allocation8 + $0x3b4] sm:$0xf0] }
 0x1d9   :  { %v9120_v47 = vld [vmem:[#allocation8 + $0x654] sm:$0xf]  ;;  %v7421_v54 = vor.u32 %v9256_v43, %v7418_v44  ;;  %3217 = vmatpush.bf16.msra.mxu0 %v7165_v50  ;;  %v6784_v43 = vld [vmem:[#allocation8 + $0x598] sm:$0xf] }
 0x1da   :  { %v6874_v48 = vld [vmem:[#allocation8 + $0x670] sm:$0xf0]  ;;  %v9101_v44 = vld [vmem:[#allocation8 + $0x5b4] sm:$0xf0] }
 0x1db   :  { %v9048_v51 = vld [vmem:[#allocation8 + $0x414] sm:$0xf]  ;;  %v6877_v63 = vor.u32 %v9120_v47, %v6874_v48  ;;  %3230 = vmatpush.bf16.msra.mxu2 %v7421_v54  ;;  %v6529_v47 = vor.u32 %v9037_v38, %v6528_v37  ;;  %v7040_v48 = vld [vmem:[#allocation8 + $0x798] sm:$0xf]  ;;  %v6785_v54 = vor.u32 %v9101_v44, %v6784_v43 }
 0x1dc   :  { %v6586_v5 = vld [vmem:[#allocation8 + $0x430] sm:$0xf0]  ;;  %v6240_v50 = vld [vmem:[#allocation8 + $0x158] sm:$0xf] }
 0x1dd   :  { %v9184_v53 = vld [vmem:[#allocation8 + $0x854] sm:$0xf]  ;;  %v6589_v2 = vor.u32 %v9048_v51, %v6586_v5  ;;  %3205 = vmatpush.bf16.msrb.mxu1 %v6877_v63  ;;  %v8965_v51 = vld [vmem:[#allocation8 + $0x174] sm:$0xf0] }
 0x1de   :  { %v7130_v55 = vld [vmem:[#allocation8 + $0x870] sm:$0xf0]  ;;  %v6496_v5 = vld [vmem:[#allocation8 + $0x358] sm:$0xf]  ;;  %v6241_v63 = vor.u32 %v8965_v51, %v6240_v50  ;;  %v2950_v50 = vpop.f32.mrf.mxu1 }
 0x1df   :  { %v9304_v59 = vld [vmem:[#allocation8 + $0xc14] sm:$0xf]  ;;  %v7133_v7 = vor.u32 %v9184_v53, %v7130_v55  ;;  %3193 = vmatpush.bf16.msra.mxu3 %v6589_v2  ;;  %v9029_v53 = vld [vmem:[#allocation8 + $0x374] sm:$0xf0]  ;;  %v7041_v55 = vor.u32 %v9165_v49, %v7040_v48 }
 0x1e0   :  { %v7610_v61 = vld [vmem:[#allocation8 + $0xc30] sm:$0xf0]  ;;  %v6208_v2 = vld [vmem:[#allocation8 + $0x118] sm:$0xf] }
 0x1e1   :  { %v9248_v0 = vld [vmem:[#allocation8 + $0xa54] sm:$0xf]  ;;  %v7613_v8 = vor.u32 %v9304_v59, %v7610_v61  ;;  %3218 = vmatpush.bf16.msra.mxu0 %v7133_v7  ;;  %v6752_v59 = vld [vmem:[#allocation8 + $0x558] sm:$0xf] }
 0x1e2   :  { %v7386_v1 = vld [vmem:[#allocation8 + $0xa70] sm:$0xf0]  ;;  %3194 = vmatmul.bf16.vlgmr.msra.gmra.mxu3 %v10009_v26  ;;  %v9093_v61 = vld [vmem:[#allocation8 + $0x574] sm:$0xf0] }
 0x1e3   :  { %v9112_v3 = vld [vmem:[#allocation8 + $0x614] sm:$0xf]  ;;  %v7389_v16 = vor.u32 %v9248_v0, %v7386_v1  ;;  %3245 = vmatpush.bf16.msrb.mxu3 %v7613_v8  ;;  %v6497_v0 = vor.u32 %v9029_v53, %v6496_v5  ;;  %v7008_v1 = vld [vmem:[#allocation8 + $0x758] sm:$0xf]  ;;  %v6753_v8 = vor.u32 %v9093_v61, %v6752_v59  ;;  %v2987_v53 = vpop.f32.mrf.mxu2 }
 0x1e4   :  { %v6842_v6 = vld [vmem:[#allocation8 + $0x630] sm:$0xf0]  ;;  %v9021_v7 = vld [vmem:[#allocation8 + $0x334] sm:$0xf0]  ;;  %v7009_v11 = vor.u32 %v9157_v20, %v7008_v1 }
 0x1e5   :  { %v9176_v17 = vld [vmem:[#allocation8 + $0x814] sm:$0xf]  ;;  %v6845_v56 = vor.u32 %v9112_v3, %v6842_v6  ;;  %3231 = vmatpush.bf16.msra.mxu2 %v7389_v16  ;;  %v2976_v3 = vpop.f32.mrf.mxu0  ;;  %v8957_v6 = vld [vmem:[#allocation8 + $0x134] sm:$0xf0] }
 0x1e6   :  { %v7098_v18 = vld [vmem:[#allocation8 + $0x830] sm:$0xf0]  ;;  %v6720_v12 = vld [vmem:[#allocation8 + $0x518] sm:$0xf] }
 0x1e7   :  { %v9240_v19 = vld [vmem:[#allocation8 + $0xa14] sm:$0xf]  ;;  %v7101_v35 = vor.u32 %v9176_v17, %v7098_v18  ;;  %3206 = vmatpush.bf16.msrb.mxu1 %v6845_v56  ;;  %3264 = vmatpush.bf16.msra.mxu3 %v6561_v31  ;;  %v9085_v16 = vld [vmem:[#allocation8 + $0x534] sm:$0xf0]  ;;  %v2949_v17 = vadd.f32 %v2948_v9, %v10092_v45  ;;  %v6209_v18 = vor.u32 %v8957_v6, %v6208_v2 }
 0x1e8   :  { %v7354_v21 = vld [vmem:[#allocation8 + $0xa30] sm:$0xf0]  ;;  %v6976_v56 = vld [vmem:[#allocation8 + $0x718] sm:$0xf]  ;;  %v6721_v31 = vor.u32 %v9085_v16, %v6720_v12 }
 0x1e9   :  { %v7357_v39 = vor.u32 %v9240_v19, %v7354_v21  ;;  %3219 = vmatpush.bf16.msra.mxu0 %v7101_v35  ;;  %v6465_v19 = vor.u32 %v9021_v7, %v6464_v62  ;;  %v9149_v21 = vld [vmem:[#allocation8 + $0x734] sm:$0xf0]  ;;  %v2961_v35 = vpop.f32.mrf.mxu3 }
 0x1ea   :  { %3207 = vmatmul.bf16.vlgmr.msrb.gmra.mxu1 %v10015_v41  ;;  %v6176_v22 = vld [vmem:[#allocation8 + $0xd8] sm:$0xf]  ;;  %v6977_v32 = vor.u32 %v9149_v21, %v6976_v56 }
 0x1eb   :  { %3251 = vmatpush.bf16.msra.mxu1 %v6305_v29  ;;  %3232 = vmatpush.bf16.msra.mxu2 %v7357_v39  ;;  %v8949_v23 = vld [vmem:[#allocation8 + $0xf4] sm:$0xf0] }
 0x1ec   :  { %3265 = vmatpush.bf16.msra.mxu3 %v6529_v47  ;;  %3220 = vmatmul.bf16.vlgmr.msra.gmra.mxu0 %v10023_v4  ;;  %v9013_v29 = vld [vmem:[#allocation8 + $0x2f4] sm:$0xf0]  ;;  %v6177_v45 = vor.u32 %v8949_v23, %v6176_v22 }
 0x1ed   :  { %3277 = vmatpush.bf16.msrb.mxu0 %v6817_v40  ;;  %v6688_v33 = vld [vmem:[#allocation8 + $0x4d8] sm:$0xf]  ;;  %v6433_v36 = vor.u32 %v9013_v29, %v6432_v24  ;;  %v2962_v40 = vadd.f32 %v2961_v35, %v2949_v17 }
 0x1ee   :  { %3233 = vmatmul.bf16.vlgmr.msra.gmra.mxu2 %v10025_v10  ;;  %v9077_v34 = vld [vmem:[#allocation8 + $0x4f4] sm:$0xf0] }
 0x1ef   :  { %3290 = vmatpush.bf16.msrb.mxu2 %v7073_v42  ;;  %3252 = vmatpush.bf16.msra.mxu1 %v6273_v46  ;;  %v6944_v37 = vld [vmem:[#allocation8 + $0x6d8] sm:$0xf]  ;;  %v3000_v42 = vpop.f32.mrf.mxu0  ;;  %v6689_v47 = vor.u32 %v9077_v34, %v6688_v33  ;;  %v10102_v48 = vadd.f32 %v10094_v13, %v2962_v40  ;;  %v8977_v40 = vld [vmem:[#allocation8 + $0x1dc] sm:$0xf] }
 0x1f0   :  { %3266 = vmatpush.bf16.msra.mxu3 %v6497_v0  ;;  %v9141_v38 = vld [vmem:[#allocation8 + $0x6f4] sm:$0xf0]  ;;  %v2988_v0 = vadd.f32 %v2987_v53, %v10047_v14 }
 0x1f1   :  { %3278 = vmatpush.bf16.msrb.mxu0 %v6785_v54  ;;  %v6144_v39 = vld [vmem:[#allocation8 + $0x98] sm:$0xf]  ;;  %v6945_v49 = vor.u32 %v9141_v38, %v6944_v37  ;;  %v2963_v14 = vpop.f32.mrf.mxu3  ;;  %v2989_v37 = vpop.f32.mrf.mxu2  ;;  %vm3435_vm4 = vcmp.gt.f32.partialorder %v10102_v48, 0.0 }
 0x1f2   :  { %v8941_v43 = vld [vmem:[#allocation8 + $0xb4] sm:$0xf0]  ;;  %7627 = vmatmul.msk.bf16.vlgmr.msrb.gmra.mxu3 %vm214_vm1, %v10019_v15  ;;  %v10107_v3 = vadd.f32 %v3000_v42, %v2988_v0 }
 0x1f3   :  { %3291 = vmatpush.bf16.msrb.mxu2 %v7041_v55  ;;  %3253 = vmatpush.bf16.msra.mxu1 %v6241_v63  ;;  %v6400_v44 = vld [vmem:[#allocation8 + $0x298] sm:$0xf]  ;;  %v6145_v54 = vor.u32 %v8941_v43, %v6144_v39 }
 0x1f4   :  { %3267 = vmatpush.bf16.msra.mxu3 %v6465_v19  ;;  %v9005_v46 = vld [vmem:[#allocation8 + $0x2b4] sm:$0xf0] }
 0x1f5   :  { %3279 = vmatpush.bf16.msrb.mxu0 %v6753_v8  ;;  %v6656_v51 = vld [vmem:[#allocation8 + $0x498] sm:$0xf]  ;;  %v6401_v55 = vor.u32 %v9005_v46, %v6400_v44  ;;  %v6306_v46 = vld [vmem:[#allocation8 + $0x1f8] sm:$0xf0] }
 0x1f6   :  { %v9069_v5 = vld [vmem:[#allocation8 + $0x4b4] sm:$0xf0] }
 0x1f7   :  { %3292 = vmatpush.bf16.msrb.mxu2 %v7009_v11  ;;  %3254 = vmatpush.bf16.msra.mxu1 %v6209_v18  ;;  %v6912_v59 = vld [vmem:[#allocation8 + $0x698] sm:$0xf]  ;;  %v6657_v2 = vor.u32 %v9069_v5, %v6656_v51  ;;  %v3002_v21 = vpop.f32.mrf.mxu0 }
 0x1f8   :  { %3268 = vmatpush.bf16.msra.mxu3 %v6433_v36  ;;  %v9133_v61 = vld [vmem:[#allocation8 + $0x6b4] sm:$0xf0] }
 0x1f9   :  { %3280 = vmatpush.bf16.msrb.mxu0 %v6721_v31  ;;  %v6112_v63 = vld [vmem:[#allocation8 + $0x58] sm:$0xf]  ;;  %v6913_v6 = vor.u32 %v9133_v61, %v6912_v59  ;;  %v6309_v59 = vor.u32 %v8977_v40, %v6306_v46  ;;  %v9017_v40 = vld [vmem:[#allocation8 + $0x31c] sm:$0xf] }
 0x1fa   :  { %v8933_v13 = vld [vmem:[#allocation8 + $0x74] sm:$0xf0]  ;;  %v8945_v46 = vld [vmem:[#allocation8 + $0xdc] sm:$0xf] }
 0x1fb   :  { %3293 = vmatpush.bf16.msrb.mxu2 %v6977_v32  ;;  %3255 = vmatpush.bf16.msra.mxu1 %v6177_v45  ;;  %v6368_v1 = vld [vmem:[#allocation8 + $0x258] sm:$0xf]  ;;  %v6113_v9 = vor.u32 %v8933_v13, %v6112_v63  ;;  %v8969_v63 = vld [vmem:[#allocation8 + $0x19c] sm:$0xf] }
 0x1fc   :  { %v8997_v20 = vld [vmem:[#allocation8 + $0x274] sm:$0xf0]  ;;  %3269 = vmatpush.bf16.msra.mxu3 %v6401_v55  ;;  %v6562_v55 = vld [vmem:[#allocation8 + $0x3f8] sm:$0xf0] }
 0x1fd   :  { %3281 = vmatpush.bf16.msrb.mxu0 %v6689_v47  ;;  %v6624_v62 = vld [vmem:[#allocation8 + $0x458] sm:$0xf]  ;;  %v6369_v11 = vor.u32 %v8997_v20, %v6368_v1  ;;  %v6274_v13 = vld [vmem:[#allocation8 + $0x1b8] sm:$0xf0] }
 0x1fe   :  { %v9061_v7 = vld [vmem:[#allocation8 + $0x474] sm:$0xf0] }
 0x1ff   :  { %3294 = vmatpush.bf16.msrb.mxu2 %v6945_v49  ;;  %v6880_v8 = vld [vmem:[#allocation8 + $0x658] sm:$0xf]  ;;  %3256 = vmatpush.bf16.msra.mxu1 %v6145_v54  ;;  %v6625_v22 = vor.u32 %v9061_v7, %v6624_v62  ;;  %v9041_v54 = vld [vmem:[#allocation8 + $0x3dc] sm:$0xf] }
 0x200   :  { %v9125_v12 = vld [vmem:[#allocation8 + $0x674] sm:$0xf0]  ;;  %3270 = vmatpush.bf16.msra.mxu3 %v6369_v11  ;;  %v9033_v7 = vld [vmem:[#allocation8 + $0x39c] sm:$0xf] }
 0x201   :  { %v6080_v16 = vld [vmem:[#allocation8 + $0x18] sm:$0xf]  ;;  %3282 = vmatpush.bf16.msrb.mxu0 %v6657_v2  ;;  %v6881_v31 = vor.u32 %v9125_v12, %v6880_v8  ;;  %v6565_v2 = vor.u32 %v9041_v54, %v6562_v55  ;;  %v6530_v8 = vld [vmem:[#allocation8 + $0x3b8] sm:$0xf0] }
 0x202   :  { %v8925_v17 = vld [vmem:[#allocation8 + $0x34] sm:$0xf0]  ;;  %v8961_v12 = vld [vmem:[#allocation8 + $0x15c] sm:$0xf] }
 0x203   :  { %v6336_v18 = vld [vmem:[#allocation8 + $0x218] sm:$0xf]  ;;  %3295 = vmatpush.bf16.msrb.mxu2 %v6913_v6  ;;  %3257 = vmatpush.bf16.msra.mxu1 %v6113_v9  ;;  %v6081_v34 = vor.u32 %v8925_v17, %v6080_v16  ;;  %v6277_v9 = vor.u32 %v8969_v63, %v6274_v13  ;;  %v6242_v17 = vld [vmem:[#allocation8 + $0x178] sm:$0xf0]  ;;  %v3039_v13 = vpop.f32.mrf.mxu2 }
 0x204   :  { %v8989_v19 = vld [vmem:[#allocation8 + $0x234] sm:$0xf0]  ;;  %v9009_v63 = vld [vmem:[#allocation8 + $0x2dc] sm:$0xf] }
 0x205   :  { %v7328_v56 = vld [vmem:[#allocation8 + $0x9d8] sm:$0xf]  ;;  %v6337_v35 = vor.u32 %v8989_v19, %v6336_v18  ;;  %3283 = vmatpush.bf16.msrb.mxu0 %v6625_v22  ;;  %v6533_v19 = vor.u32 %v9033_v7, %v6530_v8  ;;  %v3013_v22 = vpop.f32.mrf.mxu1  ;;  %v6146_v7 = vld [vmem:[#allocation8 + $0xb8] sm:$0xf0] }
 0x206   :  { %v9237_v23 = vld [vmem:[#allocation8 + $0x9f4] sm:$0xf0] }
 0x207   :  { %v7584_v24 = vld [vmem:[#allocation8 + $0xbd8] sm:$0xf]  ;;  %v7329_v38 = vor.u32 %v9237_v23, %v7328_v56  ;;  %3296 = vmatpush.bf16.msrb.mxu2 %v6881_v31  ;;  %3258 = vmatpush.bf16.msra.mxu1 %v6081_v34  ;;  %v9025_v23 = vld [vmem:[#allocation8 + $0x35c] sm:$0xf]  ;;  %v6245_v31 = vor.u32 %v8961_v12, %v6242_v17 }
 0x208   :  { %v9301_v29 = vld [vmem:[#allocation8 + $0xbf4] sm:$0xf0]  ;;  %3271 = vmatpush.bf16.msra.mxu3 %v6337_v35  ;;  %v6210_v35 = vld [vmem:[#allocation8 + $0x138] sm:$0xf0] }
 0x209   :  { %v6592_v32 = vld [vmem:[#allocation8 + $0x418] sm:$0xf]  ;;  %v7585_v39 = vor.u32 %v9301_v29, %v7584_v24  ;;  %v6498_v24 = vld [vmem:[#allocation8 + $0x378] sm:$0xf0]  ;;  %v3014_v29 = vadd.f32 %v3013_v22, %v10107_v3 }
 0x20a   :  { %v9053_v33 = vld [vmem:[#allocation8 + $0x434] sm:$0xf0]  ;;  %3259 = vmatmul.bf16.vlgmr.msra.gmra.mxu1 %v10007_v25  ;;  %v6501_v37 = vor.u32 %v9025_v23, %v6498_v24  ;;  %v6114_v22 = vld [vmem:[#allocation8 + $0x78] sm:$0xf0] }
 0x20b   :  { %v6848_v45 = vld [vmem:[#allocation8 + $0x618] sm:$0xf]  ;;  %v6593_v44 = vor.u32 %v9053_v33, %v6592_v32  ;;  %3303 = vmatpush.bf16.msrb.mxu1 %v7329_v38  ;;  %3272 = vmatmul.bf16.vlgmr.msra.gmra.mxu3 %v10011_v30  ;;  %v8953_v33 = vld [vmem:[#allocation8 + $0x11c] sm:$0xf] }
 0x20c   :  { %v9117_v36 = vld [vmem:[#allocation8 + $0x634] sm:$0xf0]  ;;  %3316 = vmatpush.bf16.msrb.mxu3 %v7585_v39 }
 0x20d   :  { %v7616_v42 = vld [vmem:[#allocation8 + $0xc18] sm:$0xf]  ;;  %v6849_v5 = vor.u32 %v9117_v36, %v6848_v45  ;;  %3284 = vmatpush.bf16.msrb.mxu0 %v6593_v44  ;;  %v6213_v44 = vor.u32 %v8953_v33, %v6210_v35 }
 0x20e   :  { %v9309_v43 = vld [vmem:[#allocation8 + $0xc34] sm:$0xf0] }
 0x20f   :  { %v7296_v47 = vld [vmem:[#allocation8 + $0x998] sm:$0xf]  ;;  %v7617_v53 = vor.u32 %v9309_v43, %v7616_v42  ;;  %3297 = vmatpush.bf16.msrb.mxu2 %v6849_v5  ;;  %v6466_v42 = vld [vmem:[#allocation8 + $0x338] sm:$0xf0]  ;;  %v3026_v43 = vpop.f32.mrf.mxu3 }
 0x210   :  { %v9229_v49 = vld [vmem:[#allocation8 + $0x9b4] sm:$0xf0]  ;;  %3285 = vmatmul.bf16.vlgmr.msrb.gmra.mxu0 %v10009_v26  ;;  %v6469_v54 = vor.u32 %v9017_v40, %v6466_v42  ;;  %v8993_v40 = vld [vmem:[#allocation8 + $0x25c] sm:$0xf] }
 0x211   :  { %v7552_v50 = vld [vmem:[#allocation8 + $0xb98] sm:$0xf]  ;;  %v7297_v61 = vor.u32 %v9229_v49, %v7296_v47  ;;  %3336 = vmatpush.bf16.msra.mxu0 %v7617_v53  ;;  %v3027_v47 = vadd.f32 %v3026_v43, %v3014_v29  ;;  %v6370_v42 = vld [vmem:[#allocation8 + $0x278] sm:$0xf0] }
 0x212   :  { %v9293_v51 = vld [vmem:[#allocation8 + $0xbb4] sm:$0xf0]  ;;  %3298 = vmatmul.bf16.vlgmr.msrb.gmra.mxu2 %v10015_v41 }
 0x213   :  { %v7553_v0 = vor.u32 %v9293_v51, %v7552_v50  ;;  %v7264_v1 = vld [vmem:[#allocation8 + $0x958] sm:$0xf]  ;;  %3342 = vmatpush.bf16.msra.mxu2 %v6309_v59  ;;  %3304 = vmatpush.bf16.msrb.mxu1 %v7297_v61  ;;  %v3052_v50 = vpop.f32.mrf.mxu0  ;;  %v6178_v51 = vld [vmem:[#allocation8 + $0xf8] sm:$0xf0]  ;;  %v3015_v61 = vpop.f32.mrf.mxu1 }
 0x214   :  { %v9221_v20 = vld [vmem:[#allocation8 + $0x974] sm:$0xf0]  ;;  %v6786_v61 = vld [vmem:[#allocation8 + $0x5b8] sm:$0xf0] }
 0x215   :  { %v7520_v6 = vld [vmem:[#allocation8 + $0xb58] sm:$0xf]  ;;  %v7265_v11 = vor.u32 %v9221_v20, %v7264_v1  ;;  %3317 = vmatpush.bf16.msrb.mxu3 %v7553_v0  ;;  %3355 = vmatpush.bf16.msrb.mxu0 %v6565_v2  ;;  %v6434_v0 = vld [vmem:[#allocation8 + $0x2f8] sm:$0xf0]  ;;  %v6181_v1 = vor.u32 %v8945_v46, %v6178_v51 }
 0x216   :  { %v9285_v62 = vld [vmem:[#allocation8 + $0xb74] sm:$0xf0]  ;;  %v8937_v2 = vld [vmem:[#allocation8 + $0x9c] sm:$0xf] }
 0x217   :  { %v7521_v16 = vor.u32 %v9285_v62, %v7520_v6  ;;  %v7232_v14 = vld [vmem:[#allocation8 + $0x918] sm:$0xf]  ;;  %3343 = vmatpush.bf16.msra.mxu2 %v6277_v9  ;;  %3305 = vmatpush.bf16.msrb.mxu1 %v7265_v11  ;;  %v3040_v6 = vadd.f32 %v3039_v13, %v3027_v47  ;;  %v6437_v11 = vor.u32 %v9009_v63, %v6434_v0  ;;  %v3028_v24 = vpop.f32.mrf.mxu3  ;;  %v8921_v46 = vld [vmem:[#allocation8 + $0x1c] sm:$0xf]  ;;  %v3041_v47 = vpop.f32.mrf.mxu2 }
 0x218   :  { %v9213_v18 = vld [vmem:[#allocation8 + $0x934] sm:$0xf0]  ;;  %v6082_v51 = vld [vmem:[#allocation8 + $0x38] sm:$0xf0] }
 0x219   :  { %v7488_v56 = vld [vmem:[#allocation8 + $0xb18] sm:$0xf]  ;;  %v7233_v32 = vor.u32 %v9213_v18, %v7232_v14  ;;  %3318 = vmatpush.bf16.msrb.mxu3 %v7521_v16  ;;  %3356 = vmatpush.bf16.msrb.mxu0 %v6533_v19  ;;  %v3053_v17 = vadd.f32 %v3052_v50, %v3040_v6  ;;  %v9001_v14 = vld [vmem:[#allocation8 + $0x29c] sm:$0xf]  ;;  %v6149_v19 = vor.u32 %v8937_v2, %v6146_v7 }
 0x21a   :  { %v9277_v21 = vld [vmem:[#allocation8 + $0xb34] sm:$0xf0]  ;;  %v6402_v18 = vld [vmem:[#allocation8 + $0x2b8] sm:$0xf0] }
 0x21b   :  { %v7489_v34 = vor.u32 %v9277_v21, %v7488_v56  ;;  %v7200_v45 = vld [vmem:[#allocation8 + $0x8d8] sm:$0xf]  ;;  %3344 = vmatpush.bf16.msra.mxu2 %v6245_v31  ;;  %3306 = vmatpush.bf16.msrb.mxu1 %v7233_v32  ;;  %v8929_v21 = vld [vmem:[#allocation8 + $0x5c] sm:$0xf]  ;;  %v6405_v35 = vor.u32 %v9001_v14, %v6402_v18 }
 0x21c   :  { %v9205_v36 = vld [vmem:[#allocation8 + $0x8f4] sm:$0xf0]  ;;  %v9161_v63 = vld [vmem:[#allocation8 + $0x79c] sm:$0xf] }
 0x21d   :  { %v7456_v38 = vld [vmem:[#allocation8 + $0xad8] sm:$0xf]  ;;  %v7201_v3 = vor.u32 %v9205_v36, %v7200_v45  ;;  %3319 = vmatpush.bf16.msrb.mxu3 %v7489_v34  ;;  %3357 = vmatpush.bf16.msrb.mxu0 %v6501_v37  ;;  %v3054_v34 = vpop.f32.mrf.mxu0  ;;  %v9105_v45 = vld [vmem:[#allocation8 + $0x5dc] sm:$0xf] }
 0x21e   :  { %v9269_v39 = vld [vmem:[#allocation8 + $0xaf4] sm:$0xf0]  ;;  %v6818_v36 = vld [vmem:[#allocation8 + $0x5f8] sm:$0xf0] }
 0x21f   :  { %v7457_v49 = vor.u32 %v9269_v39, %v7456_v38  ;;  %v7168_v5 = vld [vmem:[#allocation8 + $0x898] sm:$0xf]  ;;  %3345 = vmatpush.bf16.msra.mxu2 %v6213_v44  ;;  %3307 = vmatpush.bf16.msrb.mxu1 %v7201_v3  ;;  %v9169_v37 = vld [vmem:[#allocation8 + $0x7dc] sm:$0xf]  ;;  %v3065_v38 = vpop.f32.mrf.mxu1  ;;  %v6117_v44 = vor.u32 %v8929_v21, %v6114_v22  ;;  %v6821_v50 = vor.u32 %v9105_v45, %v6818_v36 }
 0x220   :  { %v9197_v53 = vld [vmem:[#allocation8 + $0x8b4] sm:$0xf0]  ;;  %7628 = vmatmul.msk.bf16.vlgmr.msra.gmra.mxu0 %vm214_vm1, %v10019_v15  ;;  %v7074_v39 = vld [vmem:[#allocation8 + $0x7f8] sm:$0xf0]  ;;  %v10116_v43 = vadd.f32 %v3065_v38, %v3053_v17 }
 0x221   :  { %v7424_v55 = vld [vmem:[#allocation8 + $0xa98] sm:$0xf]  ;;  %v7169_v20 = vor.u32 %v9197_v53, %v7168_v5  ;;  %3320 = vmatpush.bf16.msrb.mxu3 %v7457_v49  ;;  %3358 = vmatpush.bf16.msrb.mxu0 %v6469_v54  ;;  %v9233_v5 = vld [vmem:[#allocation8 + $0x9dc] sm:$0xf]  ;;  %v7077_v54 = vor.u32 %v9169_v37, %v7074_v39 }
 0x222   :  { %v9261_v59 = vld [vmem:[#allocation8 + $0xab4] sm:$0xf0]  ;;  %v7330_v53 = vld [vmem:[#allocation8 + $0x9f8] sm:$0xf0]  ;;  %vm3436_vm5 = vcmp.gt.f32.partialorder %v10116_v43, 0.0 }
 0x223   :  { %v7425_v62 = vor.u32 %v9261_v59, %v7424_v55  ;;  %v7136_v8 = vld [vmem:[#allocation8 + $0x858] sm:$0xf]  ;;  %3346 = vmatpush.bf16.msra.mxu2 %v6181_v1  ;;  %3308 = vmatpush.bf16.msrb.mxu1 %v7169_v20  ;;  %v6373_v55 = vor.u32 %v8993_v40, %v6370_v42  ;;  %v9097_v59 = vld [vmem:[#allocation8 + $0x59c] sm:$0xf]  ;;  %v6085_v20 = vor.u32 %v8921_v46, %v6082_v51 }
 0x224   :  { %v9189_v9 = vld [vmem:[#allocation8 + $0x874] sm:$0xf0]  ;;  %v7042_v0 = vld [vmem:[#allocation8 + $0x7b8] sm:$0xf0]  ;;  %v6789_v7 = vor.u32 %v9097_v59, %v6786_v61  ;;  %v10124_v61 = vpop.f32.mrf.mxu3 }
 0x225   :  { %v7392_v12 = vld [vmem:[#allocation8 + $0xa58] sm:$0xf]  ;;  %v7137_v56 = vor.u32 %v9189_v9, %v7136_v8  ;;  %3321 = vmatpush.bf16.msrb.mxu3 %v7425_v62  ;;  %3359 = vmatpush.bf16.msrb.mxu0 %v6437_v11  ;;  %v8985_v13 = vld [vmem:[#allocation8 + $0x21c] sm:$0xf]  ;;  %v7333_v62 = vor.u32 %v9233_v5, %v7330_v53  ;;  %v7045_v9 = vor.u32 %v9161_v63, %v7042_v0  ;;  %v10126_v0 = vpop.f32.mrf.mxu0 }
 0x226   :  { %v9253_v16 = vld [vmem:[#allocation8 + $0xa74] sm:$0xf0]  ;;  %v6338_v1 = vld [vmem:[#allocation8 + $0x238] sm:$0xf0] }
 0x227   :  { %v7104_v23 = vld [vmem:[#allocation8 + $0x818] sm:$0xf]  ;;  %v7393_v29 = vor.u32 %v9253_v16, %v7392_v12  ;;  %3347 = vmatpush.bf16.msra.mxu2 %v6149_v19  ;;  %3309 = vmatpush.bf16.msrb.mxu1 %v7137_v56  ;;  %v9297_v2 = vld [vmem:[#allocation8 + $0xbdc] sm:$0xf]  ;;  %v6341_v11 = vor.u32 %v8985_v13, %v6338_v1  ;;  %v3067_v18 = vpop.f32.mrf.mxu1 }
 0x228   :  { %v9181_v31 = vld [vmem:[#allocation8 + $0x834] sm:$0xf0]  ;;  %v7586_v6 = vld [vmem:[#allocation8 + $0xbf8] sm:$0xf0] }
 0x229   :  { %v7360_v32 = vld [vmem:[#allocation8 + $0xa18] sm:$0xf]  ;;  %v7105_v3 = vor.u32 %v9181_v31, %v7104_v23  ;;  %3322 = vmatpush.bf16.msrb.mxu3 %v7393_v29  ;;  %3360 = vmatpush.bf16.msrb.mxu0 %v6405_v35  ;;  %v9225_v8 = vld [vmem:[#allocation8 + $0x99c] sm:$0xf]  ;;  %v7589_v14 = vor.u32 %v9297_v2, %v7586_v6 }
 0x22a   :  { %v9245_v33 = vld [vmem:[#allocation8 + $0xa34] sm:$0xf0]  ;;  %v7298_v12 = vld [vmem:[#allocation8 + $0x9b8] sm:$0xf0] }
 0x22b   :  { %v7361_v49 = vor.u32 %v9245_v33, %v7360_v32  ;;  %3348 = vmatpush.bf16.msra.mxu2 %v6117_v44  ;;  %3310 = vmatpush.bf16.msrb.mxu1 %v7105_v3  ;;  %v9089_v16 = vld [vmem:[#allocation8 + $0x55c] sm:$0xf]  ;;  %v7301_v23 = vor.u32 %v9225_v8, %v7298_v12  ;;  %v10128_v12 = vpop.f32.mrf.mxu2 }
 0x22c   :  { %v6754_v17 = vld [vmem:[#allocation8 + $0x578] sm:$0xf0] }
 0x22d   :  { %3323 = vmatpush.bf16.msrb.mxu3 %v7361_v49  ;;  %3361 = vmatpush.bf16.msrb.mxu0 %v6373_v55  ;;  %v9153_v19 = vld [vmem:[#allocation8 + $0x75c] sm:$0xf]  ;;  %v6757_v24 = vor.u32 %v9089_v16, %v6754_v17 }
 0x22e   :  { %3311 = vmatmul.bf16.vlgmr.msrb.gmra.mxu1 %v10023_v4  ;;  %v7010_v56 = vld [vmem:[#allocation8 + $0x778] sm:$0xf0] }
 0x22f   :  { %3368 = vmatpush.bf16.msra.mxu1 %v6821_v50  ;;  %3349 = vmatpush.bf16.msra.mxu2 %v6085_v20  ;;  %v9289_v21 = vld [vmem:[#allocation8 + $0xb9c] sm:$0xf]  ;;  %v7013_v31 = vor.u32 %v9153_v19, %v7010_v56  ;;  %v10122_v49 = vpop.f32.mrf.mxu1 }
 0x230   :  { %3324 = vmatmul.bf16.vlgmr.msrb.gmra.mxu3 %v10025_v10  ;;  %v7554_v22 = vld [vmem:[#allocation8 + $0xbb8] sm:$0xf0] }
 0x231   :  { %3381 = vmatpush.bf16.msra.mxu3 %v7077_v54  ;;  %v9217_v29 = vld [vmem:[#allocation8 + $0x95c] sm:$0xf]  ;;  %3362 = vmatpush.bf16.msrb.mxu0 %v6341_v11  ;;  %v7557_v35 = vor.u32 %v9289_v21, %v7554_v22 }
 0x232   :  { %v7266_v32 = vld [vmem:[#allocation8 + $0x978] sm:$0xf0]  ;;  %3350 = vmatmul.bf16.vlgmr.msra.gmra.mxu2 %v10007_v25 }
 0x233   :  { %3394 = vmatpush.bf16.msrb.mxu2 %v7333_v62  ;;  %3369 = vmatpush.bf16.msra.mxu1 %v6789_v7  ;;  %v9081_v33 = vld [vmem:[#allocation8 + $0x51c] sm:$0xf]  ;;  %v7269_v39 = vor.u32 %v9217_v29, %v7266_v32 }
 0x234   :  { %v6722_v34 = vld [vmem:[#allocation8 + $0x538] sm:$0xf0]  ;;  %3363 = vmatmul.bf16.vlgmr.msrb.gmra.mxu0 %v10011_v30 }
 0x235   :  { %3382 = vmatpush.bf16.msra.mxu3 %v7045_v9  ;;  %3407 = vmatpush.bf16.msra.mxu0 %v7589_v14  ;;  %v9145_v45 = vld [vmem:[#allocation8 + $0x71c] sm:$0xf]  ;;  %v6725_v40 = vor.u32 %v9081_v33, %v6722_v34 }
 0x236   :  { %v6978_v36 = vld [vmem:[#allocation8 + $0x738] sm:$0xf0] }
 0x237   :  { %v9281_v37 = vld [vmem:[#allocation8 + $0xb5c] sm:$0xf]  ;;  %3395 = vmatpush.bf16.msrb.mxu2 %v7301_v23  ;;  %3370 = vmatpush.bf16.msra.mxu1 %v6757_v24  ;;  %v6981_v44 = vor.u32 %v9145_v45, %v6978_v36  ;;  %v3093_v22 = vpop.f32.mrf.mxu1 }
 0x238   :  { %v7522_v38 = vld [vmem:[#allocation8 + $0xb78] sm:$0xf0]  ;;  %v7984_v22 = vld [vmem:[#allocation9 + $0x2c0] sm:$0xf] }
 0x239   :  { %v9209_v42 = vld [vmem:[#allocation8 + $0x91c] sm:$0xf]  ;;  %3383 = vmatpush.bf16.msra.mxu3 %v7013_v31  ;;  %3408 = vmatpush.bf16.msra.mxu0 %v7557_v35  ;;  %v7525_v25 = vor.u32 %v9281_v37, %v7522_v38  ;;  %v3080_v38 = vpop.f32.mrf.mxu3 }
 0x23a   :  { %v7234_v3 = vld [vmem:[#allocation8 + $0x938] sm:$0xf0]  ;;  %v9364_v38 = vld [vmem:[#allocation9 + $0x1ac] sm:$0xf0] }
 0x23b   :  { %v9073_v46 = vld [vmem:[#allocation8 + $0x4dc] sm:$0xf]  ;;  %3396 = vmatpush.bf16.msrb.mxu2 %v7269_v39  ;;  %3371 = vmatpush.bf16.msra.mxu1 %v6725_v40  ;;  %v7237_v54 = vor.u32 %v9209_v42, %v7234_v3  ;;  %v3119_v39 = vpop.f32.mrf.mxu0  ;;  %v7744_v42 = vld [vmem:[#allocation9 + $0xe0] sm:$0xf] }
 0x23c   :  { %v6690_v47 = vld [vmem:[#allocation8 + $0x4f8] sm:$0xf0]  ;;  %v9396_v39 = vld [vmem:[#allocation9 + $0x2ac] sm:$0xf0] }
 0x23d   :  { %v9137_v50 = vld [vmem:[#allocation8 + $0x6dc] sm:$0xf]  ;;  %v6693_v55 = vor.u32 %v9073_v46, %v6690_v47  ;;  %3384 = vmatpush.bf16.msra.mxu3 %v6981_v44  ;;  %3409 = vmatpush.bf16.msra.mxu0 %v7525_v25  ;;  %v9340_v46 = vld [vmem:[#allocation9 + $0xec] sm:$0xf0] }
 0x23e   :  { %v6946_v51 = vld [vmem:[#allocation8 + $0x6f8] sm:$0xf0] }
 0x23f   :  { %v9273_v5 = vld [vmem:[#allocation8 + $0xb1c] sm:$0xf]  ;;  %v6949_v30 = vor.u32 %v9137_v50, %v6946_v51  ;;  %3397 = vmatpush.bf16.msrb.mxu2 %v7237_v54  ;;  %3372 = vmatpush.bf16.msra.mxu1 %v6693_v55 }
 0x240   :  { %v7490_v53 = vld [vmem:[#allocation8 + $0xb38] sm:$0xf0] }
 0x241   :  { %v9201_v59 = vld [vmem:[#allocation8 + $0x8dc] sm:$0xf]  ;;  %v7493_v20 = vor.u32 %v9273_v5, %v7490_v53  ;;  %3385 = vmatpush.bf16.msra.mxu3 %v6949_v30  ;;  %v3106_v53 = vpop.f32.mrf.mxu2  ;;  %v7872_v30 = vld [vmem:[#allocation9 + $0x1e0] sm:$0xf] }
 0x242   :  { %v7202_v63 = vld [vmem:[#allocation8 + $0x8f8] sm:$0xf0]  ;;  %v9392_v53 = vld [vmem:[#allocation9 + $0x28c] sm:$0xf0] }
 0x243   :  { %v9065_v13 = vld [vmem:[#allocation8 + $0x49c] sm:$0xf]  ;;  %v7205_v8 = vor.u32 %v9201_v59, %v7202_v63  ;;  %3410 = vmatpush.bf16.msra.mxu0 %v7493_v20  ;;  %v9372_v63 = vld [vmem:[#allocation9 + $0x1ec] sm:$0xf0]  ;;  %v8000_v20 = vld [vmem:[#allocation9 + $0x2e0] sm:$0xf] }
 0x244   :  { %v6658_v1 = vld [vmem:[#allocation8 + $0x4b8] sm:$0xf0] }
 0x245   :  { %v9129_v2 = vld [vmem:[#allocation8 + $0x69c] sm:$0xf]  ;;  %v6661_v9 = vor.u32 %v9065_v13, %v6658_v1  ;;  %3398 = vmatpush.bf16.msrb.mxu2 %v7205_v8  ;;  %v7745_v13 = vor.u32 %v9340_v46, %v7744_v42  ;;  %v9328_v42 = vld [vmem:[#allocation9 + $0x8c] sm:$0xf0] }
 0x246   :  { %v6914_v6 = vld [vmem:[#allocation8 + $0x6b8] sm:$0xf0] }
 0x247   :  { %v9265_v62 = vld [vmem:[#allocation8 + $0xadc] sm:$0xf]  ;;  %v6917_v16 = vor.u32 %v9129_v2, %v6914_v6  ;;  %3373 = vmatpush.bf16.msra.mxu1 %v6661_v9  ;;  %v9404_v2 = vld [vmem:[#allocation9 + $0x2ec] sm:$0xf0]  ;;  %v7728_v6 = vld [vmem:[#allocation9 + $0xc0] sm:$0xf] }
 0x248   :  { %v7458_v7 = vld [vmem:[#allocation8 + $0xaf8] sm:$0xf0] }
 0x249   :  { %v9193_v11 = vld [vmem:[#allocation8 + $0x89c] sm:$0xf]  ;;  %v7461_v19 = vor.u32 %v9265_v62, %v7458_v7  ;;  %3386 = vmatpush.bf16.msra.mxu3 %v6917_v16  ;;  %v9336_v62 = vld [vmem:[#allocation9 + $0xcc] sm:$0xf0] }
 0x24a   :  { %v7170_v17 = vld [vmem:[#allocation8 + $0x8b8] sm:$0xf0]  ;;  %v9436_v16 = vld [vmem:[#allocation9 + $0x3ec] sm:$0xf0] }
 0x24b   :  { %v9057_v14 = vld [vmem:[#allocation8 + $0x45c] sm:$0xf]  ;;  %v7173_v29 = vor.u32 %v9193_v11, %v7170_v17  ;;  %3411 = vmatpush.bf16.msra.mxu0 %v7461_v19  ;;  %v8128_v11 = vld [vmem:[#allocation9 + $0x3e0] sm:$0xf]  ;;  %v7873_v17 = vor.u32 %v9372_v63, %v7872_v30  ;;  %v7729_v19 = vor.u32 %v9336_v62, %v7728_v6  ;;  %v9424_v30 = vld [vmem:[#allocation9 + $0x38c] sm:$0xf0]  ;;  %v10140_v6 = vpop.f32.mrf.mxu0 }
 0x24c   :  { %v6626_v18 = vld [vmem:[#allocation8 + $0x478] sm:$0xf0] }
 0x24d   :  { %v9121_v56 = vld [vmem:[#allocation8 + $0x65c] sm:$0xf]  ;;  %v6629_v31 = vor.u32 %v9057_v14, %v6626_v18  ;;  %3399 = vmatpush.bf16.msrb.mxu2 %v7173_v29  ;;  %v8001_v14 = vor.u32 %v9404_v2, %v8000_v20  ;;  %v7856_v18 = vld [vmem:[#allocation9 + $0x1c0] sm:$0xf]  ;;  %v10136_v20 = vpop.f32.mrf.mxu1 }
 0x24e   :  { %v6882_v21 = vld [vmem:[#allocation8 + $0x678] sm:$0xf0]  ;;  %v7712_v29 = vld [vmem:[#allocation9 + $0xa0] sm:$0xf] }
 0x24f   :  { %v9257_v23 = vld [vmem:[#allocation8 + $0xa9c] sm:$0xf]  ;;  %v6885_v35 = vor.u32 %v9121_v56, %v6882_v21  ;;  %3374 = vmatpush.bf16.msra.mxu1 %v6629_v31  ;;  %v9368_v21 = vld [vmem:[#allocation9 + $0x1cc] sm:$0xf0]  ;;  %v7808_v2 = vld [vmem:[#allocation9 + $0x160] sm:$0xf] }
 0x250   :  { %v7426_v24 = vld [vmem:[#allocation8 + $0xab8] sm:$0xf0]  ;;  %v9332_v31 = vld [vmem:[#allocation9 + $0xac] sm:$0xf0] }
 0x251   :  { %v9185_v32 = vld [vmem:[#allocation8 + $0x85c] sm:$0xf]  ;;  %v7429_v40 = vor.u32 %v9257_v23, %v7426_v24  ;;  %3387 = vmatpush.bf16.msra.mxu3 %v6885_v35  ;;  %v9400_v23 = vld [vmem:[#allocation9 + $0x2cc] sm:$0xf0]  ;;  %v8129_v24 = vor.u32 %v9436_v16, %v8128_v11  ;;  %v7857_v35 = vor.u32 %v9368_v21, %v7856_v18  ;;  %v7664_v16 = vld [vmem:[#allocation9 + $0x40] sm:$0xf] }
 0x252   :  { %v7138_v33 = vld [vmem:[#allocation8 + $0x878] sm:$0xf0]  ;;  %v9420_v18 = vld [vmem:[#allocation9 + $0x36c] sm:$0xf0]  ;;  %v7792_v21 = vld [vmem:[#allocation9 + $0x140] sm:$0xf] }
 0x253   :  { %v9049_v34 = vld [vmem:[#allocation8 + $0x41c] sm:$0xf]  ;;  %v7141_v50 = vor.u32 %v9185_v32, %v7138_v33  ;;  %3412 = vmatpush.bf16.msra.mxu0 %v7429_v40  ;;  %v8112_v32 = vld [vmem:[#allocation9 + $0x3c0] sm:$0xf]  ;;  %v9432_v33 = vld [vmem:[#allocation9 + $0x3cc] sm:$0xf0] }
 0x254   :  { %v6594_v45 = vld [vmem:[#allocation8 + $0x438] sm:$0xf0]  ;;  %v7696_v40 = vld [vmem:[#allocation9 + $0x80] sm:$0xf] }
 0x255   :  { %v9113_v36 = vld [vmem:[#allocation8 + $0x61c] sm:$0xf]  ;;  %v6597_v51 = vor.u32 %v9049_v34, %v6594_v45  ;;  %3400 = vmatpush.bf16.msrb.mxu2 %v7141_v50  ;;  %v10132_v34 = vpop.f32.mrf.mxu2  ;;  %v7985_v45 = vor.u32 %v9400_v23, %v7984_v22  ;;  %v7697_v50 = vor.u32 %v9328_v42, %v7696_v40  ;;  %v9352_v23 = vld [vmem:[#allocation9 + $0x14c] sm:$0xf0] }
 0x256   :  { %v6850_v37 = vld [vmem:[#allocation8 + $0x638] sm:$0xf0]  ;;  %v9348_v42 = vld [vmem:[#allocation9 + $0x12c] sm:$0xf0] }
 0x257   :  { %v9305_v44 = vld [vmem:[#allocation8 + $0xc1c] sm:$0xf]  ;;  %v6853_v54 = vor.u32 %v9113_v36, %v6850_v37  ;;  %3375 = vmatpush.bf16.msra.mxu1 %v6597_v51  ;;  %v7840_v36 = vld [vmem:[#allocation9 + $0x1a0] sm:$0xf]  ;;  %v7713_v37 = vor.u32 %v9332_v31, %v7712_v29  ;;  %v9360_v51 = vld [vmem:[#allocation9 + $0x18c] sm:$0xf0] }
 0x258   :  { %v7618_v3 = vld [vmem:[#allocation8 + $0xc38] sm:$0xf0]  ;;  %v7841_v46 = vor.u32 %v9364_v38, %v7840_v36  ;;  %v9384_v29 = vld [vmem:[#allocation9 + $0x24c] sm:$0xf0]  ;;  %v3441_v31 = vmul.f32 0.2, %v10071_v52 }
 0x259   :  { %v9249_v47 = vld [vmem:[#allocation8 + $0xa5c] sm:$0xf]  ;;  %v7621_v59 = vor.u32 %v9305_v44, %v7618_v3  ;;  %3388 = vmatpush.bf16.msra.mxu3 %v6853_v54  ;;  %v8096_v44 = vld [vmem:[#allocation9 + $0x3a0] sm:$0xf]  ;;  %v9428_v3 = vld [vmem:[#allocation9 + $0x3ac] sm:$0xf0] }
 0x25a   :  { %v7394_v25 = vld [vmem:[#allocation8 + $0xa78] sm:$0xf0]  ;;  %3376 = vmatmul.bf16.vlgmr.msra.gmra.mxu1 %v10009_v26  ;;  %v7968_v26 = vld [vmem:[#allocation9 + $0x2a0] sm:$0xf]  ;;  %v9416_v36 = vld [vmem:[#allocation9 + $0x34c] sm:$0xf0] }
 0x25b   :  { %v9177_v5 = vld [vmem:[#allocation8 + $0x81c] sm:$0xf]  ;;  %v7397_v1 = vor.u32 %v9249_v47, %v7394_v25  ;;  %3427 = vmatpush.bf16.msrb.mxu1 %v7621_v59  ;;  %v7969_v47 = vor.u32 %v9396_v39, %v7968_v26  ;;  %v7824_v25 = vld [vmem:[#allocation9 + $0x180] sm:$0xf]  ;;  %v7793_v26 = vor.u32 %v9352_v23, %v7792_v21 }
 0x25c   :  { %v7106_v55 = vld [vmem:[#allocation8 + $0x838] sm:$0xf0]  ;;  %3389 = vmatmul.bf16.vlgmr.msra.gmra.mxu3 %v10015_v41  ;;  %v8113_v41 = vor.u32 %v9432_v33, %v8112_v32  ;;  %v7680_v54 = vld [vmem:[#allocation9 + $0x60] sm:$0xf] }
 0x25d   :  { %v9241_v7 = vld [vmem:[#allocation8 + $0xa1c] sm:$0xf]  ;;  %v7109_v9 = vor.u32 %v9177_v5, %v7106_v55  ;;  %5011 = vmatpush.bf16.msrb.mxu3 %v7745_v13  ;;  %3413 = vmatpush.bf16.msra.mxu0 %v7397_v1  ;;  %v7952_v5 = vld [vmem:[#allocation9 + $0x280] sm:$0xf]  ;;  %v9324_v55 = vld [vmem:[#allocation9 + $0x6c] sm:$0xf0]  ;;  %v3158_v63 = vpop.f32.mrf.mxu2  ;;  %v7825_v13 = vor.u32 %v9360_v51, %v7824_v25 }
 0x25e   :  { %v7362_v8 = vld [vmem:[#allocation8 + $0xa38] sm:$0xf0]  ;;  %v8080_v59 = vld [vmem:[#allocation9 + $0x380] sm:$0xf]  ;;  %v7953_v1 = vor.u32 %v9392_v53, %v7952_v5  ;;  %v7681_v62 = vor.u32 %v9324_v55, %v7680_v54  ;;  %v9312_v51 = vld [vmem:[#allocation9 + $0xc] sm:$0xf0] }
 0x25f   :  { %v7365_v56 = vor.u32 %v9241_v7, %v7362_v8  ;;  %3401 = vmatpush.bf16.msrb.mxu2 %v7109_v9  ;;  %5024 = vmatpush.bf16.msra.mxu1 %v7873_v17  ;;  %v9356_v7 = vld [vmem:[#allocation9 + $0x16c] sm:$0xf0]  ;;  %v7936_v8 = vld [vmem:[#allocation9 + $0x260] sm:$0xf]  ;;  %v8081_v11 = vor.u32 %v9424_v30, %v8080_v59  ;;  %v3443_v55 = vmul.f32 0.2, %v10102_v48  ;;  %v3079_v59 = vadd.f32 %v10124_v61, %v10049_v57 }
 0x260   :  { %v9388_v9 = vld [vmem:[#allocation9 + $0x26c] sm:$0xf0]  ;;  %v7648_v33 = vld [vmem:[#allocation9 + $0x20] sm:$0xf] }
 0x261   :  { %5012 = vmatpush.bf16.msrb.mxu3 %v7729_v19  ;;  %3414 = vmatpush.bf16.msra.mxu0 %v7365_v56  ;;  %v9320_v17 = vld [vmem:[#allocation9 + $0x4c] sm:$0xf0]  ;;  %v7809_v19 = vor.u32 %v9356_v7, %v7808_v2  ;;  %v7937_v56 = vor.u32 %v9388_v9, %v7936_v8  ;;  %v7776_v39 = vld [vmem:[#allocation9 + $0x120] sm:$0xf]  ;;  %v3449_v8 = vsel %vm3433_vm2, %v10071_v52, %v3441_v31 }
 0x262   :  { %3402 = vmatmul.bf16.vlgmr.msrb.gmra.mxu2 %v10023_v4  ;;  %v8097_v4 = vor.u32 %v9428_v3, %v8096_v44  ;;  %v7665_v22 = vor.u32 %v9320_v17, %v7664_v16  ;;  %v7904_v44 = vld [vmem:[#allocation9 + $0x220] sm:$0xf]  ;;  %v9380_v3 = vld [vmem:[#allocation9 + $0x22c] sm:$0xf0]  ;;  %v7777_v30 = vor.u32 %v9348_v42, %v7776_v39  ;;  %v10159_v52 = vpack.c.bf16 %v3449_v8, %v3449_v8 }
 0x263   :  { %5037 = vmatpush.bf16.msra.mxu2 %v8001_v14  ;;  %5025 = vmatpush.bf16.msra.mxu1 %v7857_v35  ;;  %v8064_v14 = vld [vmem:[#allocation9 + $0x360] sm:$0xf]  ;;  %v9316_v35 = vld [vmem:[#allocation9 + $0x2c] sm:$0xf0]  ;;  %v7905_v63 = vor.u32 %v9380_v3, %v7904_v44  ;;  %v3170_v8 = vadd.f32 %v10140_v6, %v10051_v58 }
 0x264   :  { %3415 = vmatmul.bf16.vlgmr.msra.gmra.mxu0 %v10025_v10  ;;  %v10138_v10 = vpop.f32.mrf.mxu3  ;;  %v8065_v32 = vor.u32 %v9420_v18, %v8064_v14  ;;  %v7649_v40 = vor.u32 %v9316_v35, %v7648_v33  ;;  %v8256_v5 = vld [vmem:[#allocation9 + $0x4e0] sm:$0xf]  ;;  %v9468_v53 = vld [vmem:[#allocation9 + $0x4ec] sm:$0xf0] }
 0x265   :  { %5050 = vmatpush.bf16.msrb.mxu0 %v8129_v24  ;;  %5013 = vmatpush.bf16.msrb.mxu3 %v7713_v37  ;;  %v7920_v24 = vld [vmem:[#allocation9 + $0x240] sm:$0xf]  ;;  %v3442_v37 = vmul.f32 0.2, %v10085_v60  ;;  %v10149_v38 = vpop.f32.mrf.mxu2  ;;  %v9412_v54 = vld [vmem:[#allocation9 + $0x32c] sm:$0xf0]  ;;  %v8257_v9 = vor.u32 %v9468_v53, %v8256_v5 }
 0x266   :  { %v9344_v2 = vld [vmem:[#allocation9 + $0x10c] sm:$0xf0]  ;;  %v8384_v16 = vld [vmem:[#allocation9 + $0x5e0] sm:$0xf] }
 0x267   :  { %5038 = vmatpush.bf16.msra.mxu2 %v7985_v45  ;;  %5026 = vmatpush.bf16.msra.mxu1 %v7841_v46  ;;  %v8048_v45 = vld [vmem:[#allocation9 + $0x340] sm:$0xf]  ;;  %v9376_v7 = vld [vmem:[#allocation9 + $0x20c] sm:$0xf0] }
 0x268   :  { %v8049_v25 = vor.u32 %v9416_v36, %v8048_v45  ;;  %v9500_v17 = vld [vmem:[#allocation9 + $0x5ec] sm:$0xf0]  ;;  %v8240_v57 = vld [vmem:[#allocation9 + $0x4c0] sm:$0xf]  ;;  %v3451_v36 = vsel %vm3435_vm4, %v10102_v48, %v3443_v55 }
 0x269   :  { %5051 = vmatpush.bf16.msrb.mxu0 %v8113_v41  ;;  %5014 = vmatpush.bf16.msrb.mxu3 %v7697_v50  ;;  %v3145_v41 = vpop.f32.mrf.mxu1  ;;  %v7632_v50 = vld [vmem:[#allocation9] sm:$0xf]  ;;  %v9464_v61 = vld [vmem:[#allocation9 + $0x4cc] sm:$0xf0]  ;;  %v8385_v31 = vor.u32 %v9500_v17, %v8384_v16  ;;  %v10173_v3 = vpack.c.bf16 %v3451_v36, %v3451_v36 }
 0x26a   :  { %7629 = vmatmul.msk.bf16.vlgmr.msrb.gmra.mxu1 %vm214_vm1, %v10019_v15  ;;  %v7921_v15 = vor.u32 %v9384_v29, %v7920_v24  ;;  %v8016_v14 = vld [vmem:[#allocation9 + $0x300] sm:$0xf]  ;;  %v9408_v18 = vld [vmem:[#allocation9 + $0x30c] sm:$0xf0] }
 0x26b   :  { %5039 = vmatpush.bf16.msra.mxu2 %v7969_v47  ;;  %5027 = vmatpush.bf16.msra.mxu1 %v7825_v13  ;;  %v3171_v47 = vpop.f32.mrf.mxu0  ;;  %v7760_v13 = vld [vmem:[#allocation9 + $0x100] sm:$0xf]  ;;  %v9532_v24 = vld [vmem:[#allocation9 + $0x6ec] sm:$0xf0]  ;;  %v8017_v33 = vor.u32 %v9408_v18, %v8016_v14 }
 0x26c   :  { %v3132_v46 = vpop.f32.mrf.mxu3  ;;  %v7761_v21 = vor.u32 %v9344_v2, %v7760_v13  ;;  %v8512_v23 = vld [vmem:[#allocation9 + $0x6e0] sm:$0xf]  ;;  %v9496_v45 = vld [vmem:[#allocation9 + $0x5cc] sm:$0xf0] }
 0x26d   :  { %5052 = vmatpush.bf16.msrb.mxu0 %v8097_v4  ;;  %5015 = vmatpush.bf16.msrb.mxu3 %v7681_v62  ;;  %v8032_v4 = vld [vmem:[#allocation9 + $0x320] sm:$0xf]  ;;  %v8513_v39 = vor.u32 %v9532_v24, %v8512_v23  ;;  %v9492_v47 = vld [vmem:[#allocation9 + $0x5ac] sm:$0xf0] }
 0x26e   :  { %v7888_v62 = vld [vmem:[#allocation9 + $0x200] sm:$0xf]  ;;  %v9524_v53 = vld [vmem:[#allocation9 + $0x6ac] sm:$0xf0] }
 0x26f   :  { %5040 = vmatpush.bf16.msra.mxu2 %v7953_v1  ;;  %5028 = vmatpush.bf16.msra.mxu1 %v7809_v19  ;;  %v7633_v1 = vor.u32 %v9312_v51, %v7632_v50  ;;  %v3444_v19 = vmul.f32 0.2, %v10116_v43  ;;  %v7889_v29 = vor.u32 %v9376_v7, %v7888_v62  ;;  %v8368_v35 = vld [vmem:[#allocation9 + $0x5c0] sm:$0xf]  ;;  %v9452_v13 = vld [vmem:[#allocation9 + $0x46c] sm:$0xf0] }
 0x270   :  { %v8369_v44 = vor.u32 %v9496_v45, %v8368_v35  ;;  %v8352_v46 = vld [vmem:[#allocation9 + $0x5a0] sm:$0xf]  ;;  %v9484_v16 = vld [vmem:[#allocation9 + $0x56c] sm:$0xf0] }
 0x271   :  { %5053 = vmatpush.bf16.msrb.mxu0 %v8081_v11  ;;  %5016 = vmatpush.bf16.msrb.mxu3 %v7665_v22  ;;  %v8033_v11 = vor.u32 %v9412_v54, %v8032_v4  ;;  %v3184_v22 = vpop.f32.mrf.mxu2  ;;  %v3452_v41 = vsel %vm3436_vm5, %v10116_v43, %v3444_v19  ;;  %v8480_v5 = vld [vmem:[#allocation9 + $0x6a0] sm:$0xf]  ;;  %v8353_v4 = vor.u32 %v9492_v47, %v8352_v46  ;;  %v3208_v7 = vpop.f32.mrf.mxu1  ;;  %v9448_v14 = vld [vmem:[#allocation9 + $0x44c] sm:$0xf0]  ;;  %v7746_v46 = vld [vmem:[#allocation9 + $0xf0] sm:$0xf0] }
 0x272   :  { %v10175_v43 = vpack.c.bf16 %v3452_v41, %v3452_v41  ;;  %v8464_v2 = vld [vmem:[#allocation9 + $0x680] sm:$0xf]  ;;  %v3183_v19 = vadd.f32 %v10149_v38, %v3170_v8  ;;  %v9480_v24 = vld [vmem:[#allocation9 + $0x54c] sm:$0xf0]  ;;  %v8002_v8 = vld [vmem:[#allocation9 + $0x2f0] sm:$0xf0] }
 0x273   :  { %5041 = vmatpush.bf16.msra.mxu2 %v7937_v56  ;;  %5029 = vmatpush.bf16.msra.mxu1 %v7793_v26  ;;  %v3092_v56 = vadd.f32 %v10122_v49, %v3079_v59  ;;  %v8241_v49 = vor.u32 %v9464_v61, %v8240_v57  ;;  %v8224_v26 = vld [vmem:[#allocation9 + $0x4a0] sm:$0xf]  ;;  %v3221_v57 = vpop.f32.mrf.mxu0 }
 0x274   :  { %v8336_v59 = vld [vmem:[#allocation9 + $0x580] sm:$0xf]  ;;  %v3195_v17 = vpop.f32.mrf.mxu3 }
 0x275   :  { %5054 = vmatpush.bf16.msrb.mxu0 %v8065_v32  ;;  %5017 = vmatpush.bf16.msrb.mxu3 %v7649_v40  ;;  %v3450_v32 = vsel %vm3434_vm3, %v10085_v60, %v3442_v37  ;;  %v3105_v40 = vadd.f32 %v10128_v12, %v3092_v56  ;;  %v8496_v60 = vld [vmem:[#allocation9 + $0x6c0] sm:$0xf]  ;;  %v9528_v37 = vld [vmem:[#allocation9 + $0x6cc] sm:$0xf0]  ;;  %v3196_v6 = vadd.f32 %v3195_v17, %v3183_v19 }
 0x276   :  { %v10171_v42 = vpack.c.bf16 %v3450_v32, %v3450_v32  ;;  %v8208_v12 = vld [vmem:[#allocation9 + $0x480] sm:$0xf]  ;;  %v8497_v50 = vor.u32 %v9528_v37, %v8496_v60  ;;  %v9440_v60 = vld [vmem:[#allocation9 + $0x40c] sm:$0xf0]  ;;  %v9338_v37 = vld [vmem:[#allocation9 + $0xe4] sm:$0xf] }
 0x277   :  { %5042 = vmatpush.bf16.msra.mxu2 %v7921_v15  ;;  %5030 = vmatpush.bf16.msra.mxu1 %v7777_v30  ;;  %v9460_v15 = vld [vmem:[#allocation9 + $0x4ac] sm:$0xf0]  ;;  %v3118_v51 = vadd.f32 %v10126_v0, %v3105_v40  ;;  %v8176_v61 = vld [vmem:[#allocation9 + $0x440] sm:$0xf] }
 0x278   :  { %v8225_v48 = vor.u32 %v9460_v15, %v8224_v26  ;;  %v9488_v30 = vld [vmem:[#allocation9 + $0x58c] sm:$0xf0]  ;;  %v8448_v56 = vld [vmem:[#allocation9 + $0x660] sm:$0xf]  ;;  %v3209_v26 = vadd.f32 %v3208_v7, %v3196_v6  ;;  %v9402_v7 = vld [vmem:[#allocation9 + $0x2e4] sm:$0xf] }
 0x279   :  { %5055 = vmatpush.bf16.msrb.mxu0 %v8049_v25  ;;  %5018 = vmatpush.bf16.msrb.mxu3 %v7633_v1  ;;  %v9456_v25 = vld [vmem:[#allocation9 + $0x48c] sm:$0xf0]  ;;  %v3131_v54 = vadd.f32 %v10138_v10, %v3118_v51  ;;  %v8481_v1 = vor.u32 %v9524_v53, %v8480_v5  ;;  %v8337_v62 = vor.u32 %v9488_v30, %v8336_v59  ;;  %v8304_v23 = vld [vmem:[#allocation9 + $0x540] sm:$0xf]  ;;  %v3234_v35 = vpop.f32.mrf.mxu2  ;;  %v3210_v45 = vpop.f32.mrf.mxu1  ;;  %v9334_v59 = vld [vmem:[#allocation9 + $0xc4] sm:$0xf] }
 0x27a   :  { %v8209_v55 = vor.u32 %v9456_v25, %v8208_v12  ;;  %v9520_v0 = vld [vmem:[#allocation9 + $0x68c] sm:$0xf0]  ;;  %v8305_v38 = vor.u32 %v9480_v24, %v8304_v23  ;;  %v8144_v40 = vld [vmem:[#allocation9 + $0x400] sm:$0xf]  ;;  %v9398_v6 = vld [vmem:[#allocation9 + $0x2c4] sm:$0xf] }
 0x27b   :  { %5043 = vmatpush.bf16.msra.mxu2 %v7905_v63  ;;  %5031 = vmatpush.bf16.msra.mxu1 %v7761_v21  ;;  %v8192_v63 = vld [vmem:[#allocation9 + $0x460] sm:$0xf]  ;;  %v8465_v18 = vor.u32 %v9520_v0, %v8464_v2  ;;  %v9516_v21 = vld [vmem:[#allocation9 + $0x66c] sm:$0xf0]  ;;  %v8145_v51 = vor.u32 %v9440_v60, %v8144_v40 }
 0x27c   :  { %5019 = vmatmul.bf16.vlgmr.msrb.gmra.mxu3 %v10159_v52  ;;  %v8193_v10 = vor.u32 %v9452_v13, %v8192_v63  ;;  %v8449_v32 = vor.u32 %v9516_v21, %v8448_v56  ;;  %v3197_v41 = vpop.f32.mrf.mxu3  ;;  %v8416_v47 = vld [vmem:[#allocation9 + $0x620] sm:$0xf]  ;;  %v9508_v12 = vld [vmem:[#allocation9 + $0x62c] sm:$0xf0]  ;;  %v7730_v13 = vld [vmem:[#allocation9 + $0xd0] sm:$0xf0]  ;;  %v8005_v21 = vor.u32 %v9402_v7, %v8002_v8 }
 0x27d   :  { %5063 = vmatpush.bf16.msra.mxu3 %v8257_v9  ;;  %5056 = vmatpush.bf16.msrb.mxu0 %v8033_v11  ;;  %v3144_v9 = vadd.f32 %v10136_v20, %v3131_v54  ;;  %v8320_v11 = vld [vmem:[#allocation9 + $0x560] sm:$0xf]  ;;  %v8177_v20 = vor.u32 %v9448_v14, %v8176_v61  ;;  %v9472_v53 = vld [vmem:[#allocation9 + $0x50c] sm:$0xf0]  ;;  %v9370_v54 = vld [vmem:[#allocation9 + $0x1e4] sm:$0xf]  ;;  %v8417_v30 = vor.u32 %v9508_v12, %v8416_v47 }
 0x27e   :  { %5032 = vmatmul.bf16.vlgmr.msra.gmra.mxu1 %v10171_v42  ;;  %v8321_v22 = vor.u32 %v9484_v16, %v8320_v11  ;;  %v8272_v5 = vld [vmem:[#allocation9 + $0x500] sm:$0xf]  ;;  %v9504_v2 = vld [vmem:[#allocation9 + $0x60c] sm:$0xf0]  ;;  %v7733_v17 = vor.u32 %v9334_v59, %v7730_v13  ;;  %v7858_v61 = vld [vmem:[#allocation9 + $0x1d0] sm:$0xf0] }
 0x27f   :  { %5044 = vmatpush.bf16.msra.mxu2 %v7889_v29  ;;  %5076 = vmatpush.bf16.msrb.mxu1 %v8385_v31  ;;  %v3157_v58 = vadd.f32 %v10132_v34, %v3144_v9  ;;  %v8160_v29 = vld [vmem:[#allocation9 + $0x420] sm:$0xf]  ;;  %v9444_v31 = vld [vmem:[#allocation9 + $0x42c] sm:$0xf0]  ;;  %v8273_v0 = vor.u32 %v9472_v53, %v8272_v5  ;;  %v9330_v14 = vld [vmem:[#allocation9 + $0xa4] sm:$0xf] }
 0x280   :  { %v8161_v15 = vor.u32 %v9444_v31, %v8160_v29  ;;  %v8288_v34 = vld [vmem:[#allocation9 + $0x520] sm:$0xf]  ;;  %v7714_v56 = vld [vmem:[#allocation9 + $0xb0] sm:$0xf0]  ;;  %v9390_v5 = vld [vmem:[#allocation9 + $0x284] sm:$0xf] }
 0x281   :  { %5064 = vmatpush.bf16.msra.mxu3 %v8241_v49  ;;  %5057 = vmatpush.bf16.msrb.mxu0 %v8017_v33  ;;  %v8432_v49 = vld [vmem:[#allocation9 + $0x640] sm:$0xf]  ;;  %v9512_v33 = vld [vmem:[#allocation9 + $0x64c] sm:$0xf0]  ;;  %v3445_v36 = vmul.f32 0.2, %v3157_v58  ;;  %v7717_v31 = vor.u32 %v9330_v14, %v7714_v56 }
 0x282   :  { %5045 = vmatmul.bf16.vlgmr.msra.gmra.mxu2 %v10173_v3  ;;  %vm3437_vm6 = vcmp.gt.f32.partialorder %v3157_v58, 0.0  ;;  %v7682_v47 = vld [vmem:[#allocation9 + $0x70] sm:$0xf0]  ;;  %v9354_v59 = vld [vmem:[#allocation9 + $0x164] sm:$0xf] }
 0x283   :  { %5089 = vmatpush.bf16.msrb.mxu2 %v8513_v39  ;;  %5077 = vmatpush.bf16.msrb.mxu1 %v8369_v44  ;;  %v9476_v39 = vld [vmem:[#allocation9 + $0x52c] sm:$0xf0]  ;;  %v3223_v44 = vpop.f32.mrf.mxu0  ;;  %v3453_v63 = vsel %vm3437_vm6, %v3157_v58, %v3445_v36  ;;  %v8624_v36 = vld [vmem:[#allocation9 + $0x7c0] sm:$0xf]  ;;  %v7954_v53 = vld [vmem:[#allocation9 + $0x290] sm:$0xf0] }
 0x284   :  { %5058 = vmatmul.bf16.vlgmr.msrb.gmra.mxu0 %v10175_v43  ;;  %v8289_v25 = vor.u32 %v9476_v39, %v8288_v34  ;;  %v10187_v11 = vpack.c.bf16 %v3453_v63, %v3453_v63  ;;  %v3247_v16 = vpop.f32.mrf.mxu3  ;;  %v9564_v58 = vld [vmem:[#allocation9 + $0x7ec] sm:$0xf0]  ;;  %v9394_v34 = vld [vmem:[#allocation9 + $0x2a4] sm:$0xf]  ;;  %v7970_v39 = vld [vmem:[#allocation9 + $0x2b0] sm:$0xf0] }
 0x285   :  { %5065 = vmatpush.bf16.msra.mxu3 %v8225_v48  ;;  %v8433_v48 = vor.u32 %v9512_v33, %v8432_v49  ;;  %v7842_v49 = vld [vmem:[#allocation9 + $0x1b0] sm:$0xf0]  ;;  %v9326_v33 = vld [vmem:[#allocation9 + $0x84] sm:$0xf]  ;;  %v7973_v12 = vor.u32 %v9394_v34, %v7970_v39  ;;  %v8576_v56 = vld [vmem:[#allocation9 + $0x760] sm:$0xf] }
 0x286   :  { %v9358_v44 = vld [vmem:[#allocation9 + $0x184] sm:$0xf]  ;;  %v7938_v8 = vld [vmem:[#allocation9 + $0x270] sm:$0xf0] }
 0x287   :  { %5090 = vmatpush.bf16.msrb.mxu2 %v8497_v50  ;;  %5078 = vmatpush.bf16.msrb.mxu1 %v8353_v4  ;;  %v3222_v50 = vadd.f32 %v3221_v57, %v3209_v26  ;;  %v7749_v4 = vor.u32 %v9338_v37, %v7746_v46  ;;  %v9366_v57 = vld [vmem:[#allocation9 + $0x1c4] sm:$0xf]  ;;  %v9560_v26 = vld [vmem:[#allocation9 + $0x7cc] sm:$0xf0]  ;;  %v8258_v34 = vld [vmem:[#allocation9 + $0x4f0] sm:$0xf0] }
 0x288   :  { %v7861_v29 = vor.u32 %v9366_v57, %v7858_v61  ;;  %v8625_v41 = vor.u32 %v9560_v26, %v8624_v36  ;;  %v9322_v46 = vld [vmem:[#allocation9 + $0x64] sm:$0xf]  ;;  %v7794_v61 = vld [vmem:[#allocation9 + $0x150] sm:$0xf0]  ;;  %v8560_v36 = vld [vmem:[#allocation9 + $0x740] sm:$0xf] }
 0x289   :  { %5066 = vmatpush.bf16.msra.mxu3 %v8209_v55  ;;  %v7874_v55 = vld [vmem:[#allocation9 + $0x1f0] sm:$0xf0]  ;;  %v3235_v9 = vadd.f32 %v3234_v35, %v3222_v50  ;;  %v9556_v50 = vld [vmem:[#allocation9 + $0x7ac] sm:$0xf0]  ;;  %v9318_v63 = vld [vmem:[#allocation9 + $0x44] sm:$0xf] }
 0x28a   :  { %v9386_v7 = vld [vmem:[#allocation9 + $0x264] sm:$0xf]  ;;  %v9544_v26 = vld [vmem:[#allocation9 + $0x74c] sm:$0xf0] }
 0x28b   :  { %5091 = vmatpush.bf16.msrb.mxu2 %v8481_v1  ;;  %5079 = vmatpush.bf16.msrb.mxu1 %v8337_v62  ;;  %v8400_v1 = vld [vmem:[#allocation9 + $0x600] sm:$0xf]  ;;  %v3236_v62 = vpop.f32.mrf.mxu2  ;;  %v3248_v19 = vadd.f32 %v3247_v16, %v3235_v9  ;;  %v9350_v57 = vld [vmem:[#allocation9 + $0x144] sm:$0xf] }
 0x28c   :  { %v3249_v60 = vpop.f32.mrf.mxu3  ;;  %v9552_v62 = vld [vmem:[#allocation9 + $0x78c] sm:$0xf0]  ;;  %v9314_v14 = vld [vmem:[#allocation9 + $0x24] sm:$0xf] }
 0x28d   :  { %5067 = vmatpush.bf16.msra.mxu3 %v8193_v10  ;;  %v7877_v10 = vor.u32 %v9370_v54, %v7874_v55  ;;  %vm3438_vm7 = vcmp.gt.f32.partialorder %v3248_v19, 0.0  ;;  %v3446_v24 = vmul.f32 0.2, %v3248_v19  ;;  %v7685_v55 = vor.u32 %v9322_v46, %v7682_v47  ;;  %v10195_v13 = vpop.f32.mrf.mxu0  ;;  %v9378_v39 = vld [vmem:[#allocation9 + $0x224] sm:$0xf] }
 0x28e   :  { %v9498_v46 = vld [vmem:[#allocation9 + $0x5e4] sm:$0xf]  ;;  %v8386_v47 = vld [vmem:[#allocation9 + $0x5f0] sm:$0xf0] }
 0x28f   :  { %5092 = vmatpush.bf16.msrb.mxu2 %v8465_v18  ;;  %5080 = vmatpush.bf16.msrb.mxu1 %v8321_v22  ;;  %v8401_v18 = vor.u32 %v9504_v2, %v8400_v1  ;;  %v8640_v22 = vld [vmem:[#allocation9 + $0x7e0] sm:$0xf]  ;;  %v3454_v35 = vsel %vm3438_vm7, %v3248_v19, %v3446_v24  ;;  %v7666_v1 = vld [vmem:[#allocation9 + $0x50] sm:$0xf0]  ;;  %v7957_v2 = vor.u32 %v9390_v5, %v7954_v53  ;;  %v9346_v24 = vld [vmem:[#allocation9 + $0x124] sm:$0xf] }
 0x290   :  { %v8641_v23 = vor.u32 %v9564_v58, %v8640_v22  ;;  %v7941_v19 = vor.u32 %v9386_v7, %v7938_v8  ;;  %v9382_v58 = vld [vmem:[#allocation9 + $0x244] sm:$0xf]  ;;  %v8544_v53 = vld [vmem:[#allocation9 + $0x720] sm:$0xf] }
 0x291   :  { %5068 = vmatpush.bf16.msra.mxu3 %v8177_v20  ;;  %v7986_v20 = vld [vmem:[#allocation9 + $0x2d0] sm:$0xf0] }
 0x292   :  { %v7989_v45 = vor.u32 %v9398_v6, %v7986_v20  ;;  %5102 = vmatpush.bf16.msra.mxu0 %v8641_v23  ;;  %v7922_v6 = vld [vmem:[#allocation9 + $0x250] sm:$0xf0]  ;;  %v7797_v23 = vor.u32 %v9350_v57, %v7794_v61  ;;  %v9536_v57 = vld [vmem:[#allocation9 + $0x70c] sm:$0xf0] }
 0x293   :  { %5093 = vmatpush.bf16.msrb.mxu2 %v8449_v32  ;;  %5081 = vmatpush.bf16.msrb.mxu1 %v8305_v38  ;;  %v9362_v32 = vld [vmem:[#allocation9 + $0x1a4] sm:$0xf]  ;;  %v7698_v38 = vld [vmem:[#allocation9 + $0x90] sm:$0xf0] }
 0x294   :  { %v7845_v40 = vor.u32 %v9362_v32, %v7842_v49  ;;  %v7701_v37 = vor.u32 %v9326_v33, %v7698_v38  ;;  %v10197_v16 = vpop.f32.mrf.mxu3  ;;  %v7778_v32 = vld [vmem:[#allocation9 + $0x130] sm:$0xf0]  ;;  %v9310_v49 = vld [vmem:[#allocation9 + $0x4] sm:$0xf] }
 0x295   :  { %5069 = vmatpush.bf16.msra.mxu3 %v8161_v15  ;;  %v10190_v15 = vpack.c.bf16 %v3454_v35, %v3454_v35  ;;  %v7634_v33 = vld [vmem:[#allocation9 + $0x10] sm:$0xf0]  ;;  %v3288_v35 = vpop.f32.mrf.mxu0  ;;  %v9466_v38 = vld [vmem:[#allocation9 + $0x4e4] sm:$0xf]  ;;  %v7781_v60 = vor.u32 %v9346_v24, %v7778_v32 }
 0x296   :  { %5103 = vmatpush.bf16.msra.mxu0 %v8625_v41  ;;  %v7906_v41 = vld [vmem:[#allocation9 + $0x230] sm:$0xf0] }
 0x297   :  { %5094 = vmatpush.bf16.msrb.mxu2 %v8433_v48  ;;  %5082 = vmatpush.bf16.msrb.mxu1 %v8289_v25  ;;  %v7826_v48 = vld [vmem:[#allocation9 + $0x190] sm:$0xf0]  ;;  %v8608_v25 = vld [vmem:[#allocation9 + $0x7a0] sm:$0xf]  ;;  %v7909_v5 = vor.u32 %v9378_v39, %v7906_v41 }
 0x298   :  { %v7829_v54 = vor.u32 %v9358_v44, %v7826_v48  ;;  %v7637_v44 = vor.u32 %v9310_v49, %v7634_v33  ;;  %v7762_v48 = vld [vmem:[#allocation9 + $0x110] sm:$0xf0] }
 0x299   :  { %5070 = vmatpush.bf16.msra.mxu3 %v8145_v51  ;;  %v10193_v51 = vpop.f32.mrf.mxu1  ;;  %v8226_v61 = vld [vmem:[#allocation9 + $0x4b0] sm:$0xf0] }
 0x29a   :  { %v8210_v24 = vld [vmem:[#allocation9 + $0x490] sm:$0xf0] }
 0x29b   :  { %5095 = vmatpush.bf16.msrb.mxu2 %v8417_v30  ;;  %5083 = vmatpush.bf16.msrb.mxu1 %v8273_v0  ;;  %v7810_v30 = vld [vmem:[#allocation9 + $0x170] sm:$0xf0]  ;;  %v8592_v0 = vld [vmem:[#allocation9 + $0x780] sm:$0xf] }
 0x29c   :  { %5071 = vmatmul.bf16.vlgmr.msra.gmra.mxu3 %v10187_v11  ;;  %v8593_v9 = vor.u32 %v9552_v62, %v8592_v0  ;;  %v8370_v0 = vld [vmem:[#allocation9 + $0x5d0] sm:$0xf0] }
 0x29d   :  { %5115 = vmatpush.bf16.msrb.mxu3 %v7749_v4  ;;  %v8609_v4 = vor.u32 %v9556_v50, %v8608_v25  ;;  %v8261_v25 = vor.u32 %v9466_v38, %v8258_v34  ;;  %v9462_v50 = vld [vmem:[#allocation9 + $0x4c4] sm:$0xf]  ;;  %v10201_v8 = vpop.f32.mrf.mxu0  ;;  %v8114_v32 = vld [vmem:[#allocation9 + $0x3d0] sm:$0xf0] }
 0x29e   :  { %5084 = vmatmul.bf16.vlgmr.msrb.gmra.mxu1 %v10190_v15  ;;  %v9486_v38 = vld [vmem:[#allocation9 + $0x584] sm:$0xf]  ;;  %v8098_v39 = vld [vmem:[#allocation9 + $0x3b0] sm:$0xf0] }
 0x29f   :  { %5128 = vmatpush.bf16.msra.mxu1 %v7877_v10  ;;  %5096 = vmatpush.bf16.msrb.mxu2 %v8401_v18  ;;  %v7813_v10 = vor.u32 %v9354_v59, %v7810_v30  ;;  %v7650_v18 = vld [vmem:[#allocation9 + $0x30] sm:$0xf0]  ;;  %v9426_v34 = vld [vmem:[#allocation9 + $0x3a4] sm:$0xf] }
 0x2a0   :  { %5104 = vmatpush.bf16.msra.mxu0 %v8609_v4  ;;  %v9540_v4 = vld [vmem:[#allocation9 + $0x72c] sm:$0xf0]  ;;  %v7890_v59 = vld [vmem:[#allocation9 + $0x210] sm:$0xf0] }
 0x2a1   :  { %5116 = vmatpush.bf16.msrb.mxu3 %v7733_v17  ;;  %v7669_v17 = vor.u32 %v9318_v63, %v7666_v1  ;;  %v3262_v22 = vpop.f32.mrf.mxu1  ;;  %v8545_v30 = vor.u32 %v9540_v4, %v8544_v53  ;;  %v8389_v1 = vor.u32 %v9498_v46, %v8386_v47  ;;  %v9446_v46 = vld [vmem:[#allocation9 + $0x444] sm:$0xf]  ;;  %v8178_v47 = vld [vmem:[#allocation9 + $0x450] sm:$0xf0] }
 0x2a2   :  { %v3261_v22 = vadd.f32 %v10193_v51, %v10055_v27  ;;  %v8181_v4 = vor.u32 %v9446_v46, %v8178_v47  ;;  %v9522_v47 = vld [vmem:[#allocation9 + $0x6a4] sm:$0xf] }
 0x2a3   :  { %5141 = vmatpush.bf16.msra.mxu2 %v8005_v21  ;;  %5129 = vmatpush.bf16.msra.mxu1 %v7861_v29  ;;  %v9548_v21 = vld [vmem:[#allocation9 + $0x76c] sm:$0xf0]  ;;  %v10199_v29 = vpop.f32.mrf.mxu2 }
 0x2a4   :  { %5105 = vmatpush.bf16.msra.mxu0 %v8593_v9  ;;  %v8577_v20 = vor.u32 %v9548_v21, %v8576_v56  ;;  %v9458_v9 = vld [vmem:[#allocation9 + $0x4a4] sm:$0xf]  ;;  %v3274_v49 = vadd.f32 %v10197_v16, %v3261_v22  ;;  %v7752_v22 = vld [vmem:[#allocation9 + $0xe8] sm:$0xf] }
 0x2a5   :  { %5117 = vmatpush.bf16.msrb.mxu3 %v7717_v31  ;;  %v7653_v31 = vor.u32 %v9314_v14, %v7650_v18  ;;  %v9434_v18 = vld [vmem:[#allocation9 + $0x3e4] sm:$0xf]  ;;  %v3340_v51 = vpop.f32.mrf.mxu0 }
 0x2a6   :  { %v3287_v41 = vadd.f32 %v10195_v13, %v3274_v49  ;;  %v8498_v51 = vld [vmem:[#allocation9 + $0x6d0] sm:$0xf0] }
 0x2a7   :  { %5142 = vmatpush.bf16.msra.mxu2 %v7989_v45  ;;  %5130 = vmatpush.bf16.msra.mxu1 %v7845_v40  ;;  %v7925_v45 = vor.u32 %v9382_v58, %v7922_v6  ;;  %v8561_v40 = vor.u32 %v9544_v26, %v8560_v36  ;;  %v8229_v58 = vor.u32 %v9458_v9, %v8226_v61  ;;  %v9490_v6 = vld [vmem:[#allocation9 + $0x5a4] sm:$0xf]  ;;  %v8194_v26 = vld [vmem:[#allocation9 + $0x470] sm:$0xf0] }
 0x2a8   :  { %5106 = vmatpush.bf16.msra.mxu0 %v8577_v20  ;;  %v8354_v20 = vld [vmem:[#allocation9 + $0x5b0] sm:$0xf0]  ;;  %v9450_v36 = vld [vmem:[#allocation9 + $0x464] sm:$0xf] }
 0x2a9   :  { %5118 = vmatpush.bf16.msrb.mxu3 %v7701_v37  ;;  %v9342_v37 = vld [vmem:[#allocation9 + $0x104] sm:$0xf]  ;;  %v8357_v35 = vor.u32 %v9490_v6, %v8354_v20  ;;  %v8050_v6 = vld [vmem:[#allocation9 + $0x350] sm:$0xf0] }
 0x2aa   :  { %v7765_v63 = vor.u32 %v9342_v37, %v7762_v48  ;;  %v8197_v37 = vor.u32 %v9450_v36, %v8194_v26  ;;  %v8322_v48 = vld [vmem:[#allocation9 + $0x570] sm:$0xf0]  ;;  %v7880_v36 = vld [vmem:[#allocation9 + $0x1e8] sm:$0xf]  ;;  %v9373_v26 = vld [vmem:[#allocation9 + $0x1f4] sm:$0xf0] }
 0x2ab   :  { %5143 = vmatpush.bf16.msra.mxu2 %v7973_v12  ;;  %5131 = vmatpush.bf16.msra.mxu1 %v7829_v54  ;;  %v3275_v12 = vpop.f32.mrf.mxu3  ;;  %v8242_v54 = vld [vmem:[#allocation9 + $0x4d0] sm:$0xf0]  ;;  %v3301_v62 = vpop.f32.mrf.mxu2  ;;  %v7881_v46 = vor.u32 %v9373_v26, %v7880_v36 }
 0x2ac   :  { %5107 = vmatpush.bf16.msra.mxu0 %v8561_v40  ;;  %v8245_v7 = vor.u32 %v9462_v50, %v8242_v54  ;;  %v3312_v40 = vpop.f32.mrf.mxu1  ;;  %v9422_v12 = vld [vmem:[#allocation9 + $0x384] sm:$0xf]  ;;  %v3300_v50 = vadd.f32 %v10199_v29, %v3287_v41 }
 0x2ad   :  { %5119 = vmatpush.bf16.msrb.mxu3 %v7685_v55  ;;  %v9374_v55 = vld [vmem:[#allocation9 + $0x204] sm:$0xf] }
 0x2ae   :  { %v3313_v13 = vadd.f32 %v3312_v40, %v3300_v50  ;;  %v9478_v54 = vld [vmem:[#allocation9 + $0x544] sm:$0xf]  ;;  %v7736_v40 = vld [vmem:[#allocation9 + $0xc8] sm:$0xf] }
 0x2af   :  { %5144 = vmatpush.bf16.msra.mxu2 %v7957_v2  ;;  %5132 = vmatpush.bf16.msra.mxu1 %v7813_v10  ;;  %v9494_v2 = vld [vmem:[#allocation9 + $0x5c4] sm:$0xf]  ;;  %v7893_v10 = vor.u32 %v9374_v55, %v7890_v59  ;;  %v8306_v55 = vld [vmem:[#allocation9 + $0x550] sm:$0xf0]  ;;  %v7864_v50 = vld [vmem:[#allocation9 + $0x1c8] sm:$0xf] }
 0x2b0   :  { %5108 = vmatpush.bf16.msra.mxu0 %v8545_v30  ;;  %v8373_v21 = vor.u32 %v9494_v2, %v8370_v0  ;;  %v9442_v59 = vld [vmem:[#allocation9 + $0x424] sm:$0xf]  ;;  %v8066_v0 = vld [vmem:[#allocation9 + $0x370] sm:$0xf0]  ;;  %v8309_v9 = vor.u32 %v9478_v54, %v8306_v55  ;;  %v7720_v54 = vld [vmem:[#allocation9 + $0xa8] sm:$0xf] }
 0x2b1   :  { %5120 = vmatpush.bf16.msrb.mxu3 %v7669_v17  ;;  %v8528_v17 = vld [vmem:[#allocation9 + $0x700] sm:$0xf]  ;;  %v9418_v2 = vld [vmem:[#allocation9 + $0x364] sm:$0xf]  ;;  %v9333_v55 = vld [vmem:[#allocation9 + $0xb4] sm:$0xf0] }
 0x2b2   :  { %v8529_v14 = vor.u32 %v9536_v57, %v8528_v17  ;;  %v8069_v29 = vor.u32 %v9418_v2, %v8066_v0  ;;  %v8290_v17 = vld [vmem:[#allocation9 + $0x530] sm:$0xf0]  ;;  %v9530_v57 = vld [vmem:[#allocation9 + $0x6e4] sm:$0xf]  ;;  %v7721_v0 = vor.u32 %v9333_v55, %v7720_v54  ;;  %v9405_v54 = vld [vmem:[#allocation9 + $0x2f4] sm:$0xf0] }
 0x2b3   :  { %5145 = vmatpush.bf16.msra.mxu2 %v7941_v19  ;;  %5133 = vmatpush.bf16.msra.mxu1 %v7797_v23  ;;  %v8130_v19 = vld [vmem:[#allocation9 + $0x3f0] sm:$0xf0]  ;;  %v9454_v23 = vld [vmem:[#allocation9 + $0x484] sm:$0xf]  ;;  %v3325_v30 = vpop.f32.mrf.mxu3  ;;  %v7640_v55 = vld [vmem:[#allocation9 + $0x8] sm:$0xf] }
 0x2b4   :  { %v8133_v56 = vor.u32 %v9434_v18, %v8130_v19  ;;  %5109 = vmatpush.bf16.msra.mxu0 %v8529_v14  ;;  %v8213_v27 = vor.u32 %v9454_v23, %v8210_v24  ;;  %v3326_v62 = vadd.f32 %v3325_v30, %v3313_v13  ;;  %v8514_v19 = vld [vmem:[#allocation9 + $0x6f0] sm:$0xf0]  ;;  %v9341_v23 = vld [vmem:[#allocation9 + $0xf4] sm:$0xf0]  ;;  %v9410_v41 = vld [vmem:[#allocation9 + $0x324] sm:$0xf] }
 0x2b5   :  { %5121 = vmatpush.bf16.msrb.mxu3 %v7653_v31  ;;  %v9430_v31 = vld [vmem:[#allocation9 + $0x3c4] sm:$0xf]  ;;  %v10213_v14 = vpop.f32.mrf.mxu2 }
 0x2b6   :  { %v8117_v33 = vor.u32 %v9430_v31, %v8114_v32  ;;  %v3339_v61 = vadd.f32 %v10201_v8, %v3326_v62  ;;  %v9470_v32 = vld [vmem:[#allocation9 + $0x504] sm:$0xf]  ;;  %v8517_v8 = vor.u32 %v9530_v57, %v8514_v19  ;;  %v8466_v62 = vld [vmem:[#allocation9 + $0x690] sm:$0xf0] }
 0x2b7   :  { %5146 = vmatpush.bf16.msra.mxu2 %v7925_v45  ;;  %5134 = vmatpush.bf16.msra.mxu1 %v7781_v60  ;;  %v8338_v45 = vld [vmem:[#allocation9 + $0x590] sm:$0xf0]  ;;  %v8101_v60 = vor.u32 %v9426_v34, %v8098_v39  ;;  %v9406_v13 = vld [vmem:[#allocation9 + $0x304] sm:$0xf] }
 0x2b8   :  { %5154 = vmatpush.bf16.msrb.mxu0 %v8133_v56  ;;  %v8341_v16 = vor.u32 %v9486_v38, %v8338_v45  ;;  %v9438_v56 = vld [vmem:[#allocation9 + $0x404] sm:$0xf]  ;;  %vm3439_vm8 = vcmp.gt.f32.partialorder %v3339_v61, 0.0  ;;  %v3447_v20 = vmul.f32 0.2, %v3339_v61  ;;  %v7753_v45 = vor.u32 %v9341_v23, %v7752_v22 }
 0x2b9   :  { %5122 = vmatpush.bf16.msrb.mxu3 %v7637_v44  ;;  %v9482_v44 = vld [vmem:[#allocation9 + $0x564] sm:$0xf]  ;;  %v8450_v19 = vld [vmem:[#allocation9 + $0x670] sm:$0xf0]  ;;  %v7688_v22 = vld [vmem:[#allocation9 + $0x68] sm:$0xf] }
 0x2ba   :  { %v8325_v53 = vor.u32 %v9482_v44, %v8322_v48  ;;  %v3455_v49 = vsel %vm3439_vm8, %v3339_v61, %v3447_v20  ;;  %v9518_v2 = vld [vmem:[#allocation9 + $0x684] sm:$0xf] }
 0x2bb   :  { %5147 = vmatpush.bf16.msra.mxu2 %v7909_v5  ;;  %5135 = vmatpush.bf16.msra.mxu1 %v7765_v63  ;;  %v10210_v63 = vpop.f32.mrf.mxu0  ;;  %v10215_v38 = vpack.c.bf16 %v3455_v49, %v3455_v49  ;;  %v3327_v34 = vpop.f32.mrf.mxu3  ;;  %v9514_v61 = vld [vmem:[#allocation9 + $0x664] sm:$0xf]  ;;  %v8434_v49 = vld [vmem:[#allocation9 + $0x650] sm:$0xf0] }
 0x2bc   :  { %5123 = vmatmul.bf16.vlgmr.msrb.gmra.mxu3 %v10159_v52  ;;  %5155 = vmatpush.bf16.msrb.mxu0 %v8117_v33  ;;  %v8453_v23 = vor.u32 %v9514_v61, %v8450_v19  ;;  %v8418_v34 = vld [vmem:[#allocation9 + $0x630] sm:$0xf0]  ;;  %v9401_v19 = vld [vmem:[#allocation9 + $0x2d4] sm:$0xf0] }
 0x2bd   :  { %5167 = vmatpush.bf16.msra.mxu3 %v8261_v25  ;;  %v8082_v25 = vld [vmem:[#allocation9 + $0x390] sm:$0xf0]  ;;  %5097 = vmatmul.bf16.vlgmr.msrb.gmra.mxu2 %v10215_v38 }
 0x2be   :  { %5136 = vmatmul.bf16.vlgmr.msra.gmra.mxu1 %v10171_v42  ;;  %v8085_v5 = vor.u32 %v9422_v12, %v8082_v25  ;;  %v8482_v12 = vld [vmem:[#allocation9 + $0x6b0] sm:$0xf0]  ;;  %v3353_v25 = vpop.f32.mrf.mxu2 }
 0x2bf   :  { %5180 = vmatpush.bf16.msrb.mxu1 %v8389_v1  ;;  %5148 = vmatpush.bf16.msra.mxu2 %v7893_v10  ;;  %v8162_v1 = vld [vmem:[#allocation9 + $0x430] sm:$0xf0]  ;;  %v9474_v10 = vld [vmem:[#allocation9 + $0x524] sm:$0xf]  ;;  %v8485_v30 = vor.u32 %v9522_v47, %v8482_v12 }
 0x2c0   :  { %5156 = vmatpush.bf16.msrb.mxu0 %v8101_v60  ;;  %v8165_v18 = vor.u32 %v9442_v59, %v8162_v1  ;;  %v8293_v31 = vor.u32 %v9474_v10, %v8290_v17  ;;  %v9337_v60 = vld [vmem:[#allocation9 + $0xd4] sm:$0xf0]  ;;  %v8469_v17 = vor.u32 %v9518_v2, %v8466_v62  ;;  %v9502_v47 = vld [vmem:[#allocation9 + $0x604] sm:$0xf]  ;;  %v8402_v12 = vld [vmem:[#allocation9 + $0x610] sm:$0xf0] }
 0x2c1   :  { %5168 = vmatpush.bf16.msra.mxu3 %v8245_v7  ;;  %v3314_v7 = vpop.f32.mrf.mxu1  ;;  %v9329_v10 = vld [vmem:[#allocation9 + $0x94] sm:$0xf0]  ;;  %v8405_v2 = vor.u32 %v9502_v47, %v8402_v12  ;;  %v8216_v12 = vld [vmem:[#allocation9 + $0x488] sm:$0xf] }
 0x2c2   :  { %v7848_v7 = vld [vmem:[#allocation9 + $0x1a8] sm:$0xf] }
 0x2c3   :  { %5181 = vmatpush.bf16.msrb.mxu1 %v8373_v21  ;;  %v8146_v21 = vld [vmem:[#allocation9 + $0x410] sm:$0xf0]  ;;  %v3366_v39 = vpop.f32.mrf.mxu0  ;;  %5193 = vmatpush.bf16.msrb.mxu2 %v8517_v8  ;;  %v7816_v8 = vld [vmem:[#allocation9 + $0x168] sm:$0xf] }
 0x2c4   :  { %5157 = vmatpush.bf16.msrb.mxu0 %v8085_v5  ;;  %v8149_v33 = vor.u32 %v9438_v56, %v8146_v21  ;;  %v7737_v5 = vor.u32 %v9337_v60, %v7736_v40  ;;  %v7832_v56 = vld [vmem:[#allocation9 + $0x188] sm:$0xf]  ;;  %v9361_v21 = vld [vmem:[#allocation9 + $0x194] sm:$0xf0] }
 0x2c5   :  { %5169 = vmatpush.bf16.msra.mxu3 %v8229_v58  ;;  %v9414_v58 = vld [vmem:[#allocation9 + $0x344] sm:$0xf]  ;;  %v7800_v39 = vld [vmem:[#allocation9 + $0x148] sm:$0xf] }
 0x2c6   :  { %v8053_v24 = vor.u32 %v9414_v58, %v8050_v6  ;;  %v9325_v58 = vld [vmem:[#allocation9 + $0x74] sm:$0xf0]  ;;  %v3352_v6 = vadd.f32 %v10213_v14, %v10057_v28 }
 0x2c7   :  { %5182 = vmatpush.bf16.msrb.mxu1 %v8357_v35  ;;  %v8274_v35 = vld [vmem:[#allocation9 + $0x510] sm:$0xf0] }
 0x2c8   :  { %5158 = vmatpush.bf16.msrb.mxu0 %v8069_v29  ;;  %v9365_v29 = vld [vmem:[#allocation9 + $0x1b4] sm:$0xf0] }
 0x2c9   :  { %5170 = vmatpush.bf16.msra.mxu3 %v8213_v27  ;;  %v9526_v27 = vld [vmem:[#allocation9 + $0x6c4] sm:$0xf]  ;;  %v7849_v57 = vor.u32 %v9365_v29, %v7848_v7  ;;  %v7768_v29 = vld [vmem:[#allocation9 + $0x108] sm:$0xf] }
 0x2ca   :  { %v8501_v48 = vor.u32 %v9526_v27, %v8498_v51  ;;  %v9321_v27 = vld [vmem:[#allocation9 + $0x54] sm:$0xf0]  ;;  %v3365_v51 = vadd.f32 %v10210_v63, %v3352_v6 }
 0x2cb   :  { %5183 = vmatpush.bf16.msrb.mxu1 %v8341_v16  ;;  %v8034_v16 = vld [vmem:[#allocation9 + $0x330] sm:$0xf0]  ;;  %v9465_v6 = vld [vmem:[#allocation9 + $0x4d4] sm:$0xf0] }
 0x2cc   :  { %5159 = vmatpush.bf16.msrb.mxu0 %v8053_v24  ;;  %v8037_v44 = vor.u32 %v9410_v41, %v8034_v16  ;;  %5194 = vmatpush.bf16.msrb.mxu2 %v8501_v48  ;;  %v7833_v24 = vor.u32 %v9361_v21, %v7832_v56  ;;  %v9353_v41 = vld [vmem:[#allocation9 + $0x154] sm:$0xf0]  ;;  %v7656_v16 = vld [vmem:[#allocation9 + $0x28] sm:$0xf] }
 0x2cd   :  { %5171 = vmatpush.bf16.msra.mxu3 %v8197_v37  ;;  %v8277_v37 = vor.u32 %v9470_v32, %v8274_v35  ;;  %v7689_v32 = vor.u32 %v9325_v58, %v7688_v22  ;;  %v7672_v35 = vld [vmem:[#allocation9 + $0x48] sm:$0xf]  ;;  %5149 = vmatmul.bf16.vlgmr.msra.gmra.mxu2 %v10173_v3  ;;  %v9501_v21 = vld [vmem:[#allocation9 + $0x5f4] sm:$0xf0] }
 0x2ce   :  { %v7673_v26 = vor.u32 %v9321_v27, %v7672_v35  ;;  %v8392_v56 = vld [vmem:[#allocation9 + $0x5e8] sm:$0xf]  ;;  %v9397_v35 = vld [vmem:[#allocation9 + $0x2b4] sm:$0xf0] }
 0x2cf   :  { %5184 = vmatpush.bf16.msrb.mxu1 %v8325_v53  ;;  %v9369_v53 = vld [vmem:[#allocation9 + $0x1d4] sm:$0xf0]  ;;  %v8248_v58 = vld [vmem:[#allocation9 + $0x4c8] sm:$0xf] }
 0x2d0   :  { %5160 = vmatpush.bf16.msrb.mxu0 %v8037_v44  ;;  %v7865_v1 = vor.u32 %v9369_v53, %v7864_v50  ;;  %5195 = vmatpush.bf16.msrb.mxu2 %v8485_v30  ;;  %v9349_v53 = vld [vmem:[#allocation9 + $0x134] sm:$0xf0]  ;;  %v8264_v30 = vld [vmem:[#allocation9 + $0x4e8] sm:$0xf] }
 0x2d1   :  { %5172 = vmatpush.bf16.msra.mxu3 %v8181_v4  ;;  %v8018_v4 = vld [vmem:[#allocation9 + $0x310] sm:$0xf0]  ;;  %v8376_v27 = vld [vmem:[#allocation9 + $0x5c8] sm:$0xf] }
 0x2d2   :  { %v8021_v59 = vor.u32 %v9406_v13, %v8018_v4  ;;  %v8008_v13 = vld [vmem:[#allocation9 + $0x2e8] sm:$0xf] }
 0x2d3   :  { %5185 = vmatpush.bf16.msrb.mxu1 %v8309_v9  ;;  %v7704_v9 = vld [vmem:[#allocation9 + $0x88] sm:$0xf]  ;;  %v8009_v62 = vor.u32 %v9405_v54, %v8008_v13  ;;  %v9554_v13 = vld [vmem:[#allocation9 + $0x7a4] sm:$0xf] }
 0x2d4   :  { %5161 = vmatpush.bf16.msrb.mxu0 %v8021_v59  ;;  %5196 = vmatpush.bf16.msrb.mxu2 %v8469_v17  ;;  %v9313_v59 = vld [vmem:[#allocation9 + $0x14] sm:$0xf0]  ;;  %v7944_v54 = vld [vmem:[#allocation9 + $0x268] sm:$0xf] }
 0x2d5   :  { %5173 = vmatpush.bf16.msra.mxu3 %v8165_v18  ;;  %v7705_v18 = vor.u32 %v9329_v10, %v7704_v9  ;;  %v7641_v7 = vor.u32 %v9313_v59, %v7640_v55  ;;  %v9345_v9 = vld [vmem:[#allocation9 + $0x114] sm:$0xf0]  ;;  %v7992_v10 = vld [vmem:[#allocation9 + $0x2c8] sm:$0xf] }
 0x2d6   :  { %v9389_v59 = vld [vmem:[#allocation9 + $0x274] sm:$0xf0] }
 0x2d7   :  { %5186 = vmatpush.bf16.msrb.mxu1 %v8293_v31  ;;  %v3377_v20 = vpop.f32.mrf.mxu1  ;;  %v9510_v31 = vld [vmem:[#allocation9 + $0x644] sm:$0xf] }
 0x2d8   :  { %5197 = vmatpush.bf16.msrb.mxu2 %v8453_v23  ;;  %v8437_v28 = vor.u32 %v9510_v31, %v8434_v49  ;;  %v3378_v36 = vadd.f32 %v3377_v20, %v3365_v51  ;;  %v7769_v23 = vor.u32 %v9345_v9, %v7768_v29  ;;  %v8642_v31 = vld [vmem:[#allocation9 + $0x7f0] sm:$0xf0]  ;;  %v7993_v49 = vor.u32 %v9401_v19, %v7992_v10  ;;  %v9550_v10 = vld [vmem:[#allocation9 + $0x784] sm:$0xf]  ;;  %v8328_v19 = vld [vmem:[#allocation9 + $0x568] sm:$0xf] }
 0x2d9   :  { %5174 = vmatpush.bf16.msra.mxu3 %v8149_v33  ;;  %v9357_v33 = vld [vmem:[#allocation9 + $0x174] sm:$0xf0]  ;;  %v7945_v29 = vor.u32 %v9389_v59, %v7944_v54  ;;  %v9339_v54 = vld [vmem:[#allocation9 + $0xec] sm:$0xf] }
 0x2da   :  { %v7817_v14 = vor.u32 %v9357_v33, %v7816_v8  ;;  %v8393_v8 = vor.u32 %v9501_v21, %v8392_v56  ;;  %v7976_v33 = vld [vmem:[#allocation9 + $0x2a8] sm:$0xf]  ;;  %v9485_v56 = vld [vmem:[#allocation9 + $0x574] sm:$0xf0] }
 0x2db   :  { %5187 = vmatpush.bf16.msrb.mxu1 %v8277_v37  ;;  %v9317_v37 = vld [vmem:[#allocation9 + $0x34] sm:$0xf0]  ;;  %v8184_v21 = vld [vmem:[#allocation9 + $0x448] sm:$0xf] }
 0x2dc   :  { %5175 = vmatmul.bf16.vlgmr.msra.gmra.mxu3 %v10187_v11  ;;  %5198 = vmatpush.bf16.msrb.mxu2 %v8437_v28  ;;  %v7657_v50 = vor.u32 %v9317_v37, %v7656_v16  ;;  %v8249_v28 = vor.u32 %v9465_v6, %v8248_v58  ;;  %v8626_v16 = vld [vmem:[#allocation9 + $0x7d0] sm:$0xf0]  ;;  %v7960_v37 = vld [vmem:[#allocation9 + $0x288] sm:$0xf] }
 0x2dd   :  { %5219 = vmatpush.bf16.msrb.mxu3 %v7753_v45  ;;  %v9506_v45 = vld [vmem:[#allocation9 + $0x624] sm:$0xf] }
 0x2de   :  { %5188 = vmatmul.bf16.vlgmr.msrb.gmra.mxu1 %v10190_v15  ;;  %v8421_v63 = vor.u32 %v9506_v45, %v8418_v34  ;;  %v8232_v45 = vld [vmem:[#allocation9 + $0x4a8] sm:$0xf] }
 0x2df   :  { %5232 = vmatpush.bf16.msra.mxu1 %v7881_v46  ;;  %v3390_v40 = vpop.f32.mrf.mxu3  ;;  %v3379_v48 = vpop.f32.mrf.mxu1  ;;  %v7801_v46 = vor.u32 %v9353_v41, %v7800_v39  ;;  %v7977_v41 = vor.u32 %v9397_v35, %v7976_v33  ;;  %v9381_v35 = vld [vmem:[#allocation9 + $0x234] sm:$0xf0] }
 0x2e0   :  { %v3391_v44 = vadd.f32 %v3390_v40, %v3378_v36  ;;  %5199 = vmatpush.bf16.msrb.mxu2 %v8421_v63  ;;  %v9461_v36 = vld [vmem:[#allocation9 + $0x4b4] sm:$0xf0]  ;;  %v8360_v63 = vld [vmem:[#allocation9 + $0x5a8] sm:$0xf] }
 0x2e1   :  { %5220 = vmatpush.bf16.msrb.mxu3 %v7737_v5  ;;  %v3416_v60 = vpop.f32.mrf.mxu0  ;;  %v7784_v5 = vld [vmem:[#allocation9 + $0x128] sm:$0xf]  ;;  %v9393_v48 = vld [vmem:[#allocation9 + $0x294] sm:$0xf0] }
 0x2e3   :  { %5233 = vmatpush.bf16.msra.mxu1 %v7865_v1  ;;  %v9469_v1 = vld [vmem:[#allocation9 + $0x4f4] sm:$0xf0] }
 0x2e4   :  { %5200 = vmatpush.bf16.msrb.mxu2 %v8405_v2  ;;  %v8200_v2 = vld [vmem:[#allocation9 + $0x468] sm:$0xf] }
 0x2e5   :  { %5221 = vmatpush.bf16.msrb.mxu3 %v7721_v0  ;;  %v3403_v25 = vpop.f32.mrf.mxu2  ;;  %v7785_v0 = vor.u32 %v9349_v53, %v7784_v5  ;;  %v7961_v5 = vor.u32 %v9393_v48, %v7960_v37  ;;  %v9377_v37 = vld [vmem:[#allocation9 + $0x214] sm:$0xf0] }
 0x2e6   :  { %v3404_v4 = vadd.f32 %v3403_v25, %v3391_v44  ;;  %v8233_v44 = vor.u32 %v9461_v36, %v8232_v45  ;;  %v9457_v25 = vld [vmem:[#allocation9 + $0x494] sm:$0xf0] }
 0x2e7   :  { %5234 = vmatpush.bf16.msra.mxu1 %v7849_v57  ;;  %v3392_v17 = vpop.f32.mrf.mxu3  ;;  %v3429_v22 = vpop.f32.mrf.mxu1  ;;  %5201 = vmatmul.bf16.vlgmr.msrb.gmra.mxu2 %v10215_v38  ;;  %v8217_v55 = vor.u32 %v9457_v25, %v8216_v12  ;;  %v9445_v45 = vld [vmem:[#allocation9 + $0x434] sm:$0xf0] }
 0x2e8   :  { %v3417_v61 = vadd.f32 %v3416_v60, %v3404_v4  ;;  %5245 = vmatpush.bf16.msra.mxu2 %v8009_v62  ;;  %v9558_v60 = vld [vmem:[#allocation9 + $0x7c4] sm:$0xf]  ;;  %v8610_v4 = vld [vmem:[#allocation9 + $0x7b0] sm:$0xf0]  ;;  %v9533_v25 = vld [vmem:[#allocation9 + $0x6f4] sm:$0xf0] }
 0x2e9   :  { %5222 = vmatpush.bf16.msrb.mxu3 %v7705_v18  ;;  %v3418_v57 = vpop.f32.mrf.mxu0  ;;  %v8265_v18 = vor.u32 %v9469_v1, %v8264_v30  ;;  %v8344_v30 = vld [vmem:[#allocation9 + $0x588] sm:$0xf]  ;;  %v9489_v1 = vld [vmem:[#allocation9 + $0x594] sm:$0xf0]  ;;  %v8613_v62 = vor.u32 %v9554_v13, %v8610_v4  ;;  %v8594_v17 = vld [vmem:[#allocation9 + $0x790] sm:$0xf0] }
 0x2ea   :  { %v3430_v20 = vadd.f32 %v3429_v22, %v3417_v61  ;;  %v8345_v9 = vor.u32 %v9489_v1, %v8344_v30  ;;  %v7928_v57 = vld [vmem:[#allocation9 + $0x248] sm:$0xf]  ;;  %v9449_v22 = vld [vmem:[#allocation9 + $0x454] sm:$0xf0]  ;;  %v9538_v1 = vld [vmem:[#allocation9 + $0x724] sm:$0xf] }
 0x2eb   :  { %5235 = vmatpush.bf16.msra.mxu1 %v7833_v24  ;;  %v9562_v24 = vld [vmem:[#allocation9 + $0x7e4] sm:$0xf]  ;;  %v8185_v33 = vor.u32 %v9449_v22, %v8184_v21  ;;  %v7882_v21 = vld [vmem:[#allocation9 + $0x1f8] sm:$0xf0] }
 0x2ec   :  { %vm3440_vm9 = vcmp.gt.f32.partialorder %v3430_v20, 0.0  ;;  %v3448_v51 = vmul.f32 0.2, %v3430_v20  ;;  %v8645_v34 = vor.u32 %v9562_v24, %v8642_v31  ;;  %5246 = vmatpush.bf16.msra.mxu2 %v7993_v49  ;;  %v8329_v24 = vor.u32 %v9485_v56, %v8328_v19  ;;  %v9546_v31 = vld [vmem:[#allocation9 + $0x764] sm:$0xf] }
 0x2ed   :  { %5223 = vmatpush.bf16.msrb.mxu3 %v7689_v32  ;;  %v3405_v32 = vpop.f32.mrf.mxu2  ;;  %v7912_v49 = vld [vmem:[#allocation9 + $0x228] sm:$0xf]  ;;  %v9529_v19 = vld [vmem:[#allocation9 + $0x6d4] sm:$0xf0]  ;;  %v9371_v56 = vld [vmem:[#allocation9 + $0x1ec] sm:$0xf] }
 0x2ee   :  { %v8578_v32 = vld [vmem:[#allocation9 + $0x770] sm:$0xf0] }
 0x2ef   :  { %5236 = vmatpush.bf16.msra.mxu1 %v7817_v14  ;;  %v9497_v14 = vld [vmem:[#allocation9 + $0x5d4] sm:$0xf0]  ;;  %v3431_v47 = vpop.f32.mrf.mxu1 }
 0x2f0   :  { %v8377_v40 = vor.u32 %v9497_v14, %v8376_v27  ;;  %5247 = vmatpush.bf16.msra.mxu2 %v7977_v41  ;;  %v8312_v27 = vld [vmem:[#allocation9 + $0x548] sm:$0xf]  ;;  %v7913_v41 = vor.u32 %v9381_v35, %v7912_v49 }
 0x2f1   :  { %5224 = vmatpush.bf16.msrb.mxu3 %v7673_v26  ;;  %v3456_v26 = vsel %vm3440_vm9, %v3430_v20, %v3448_v51  ;;  %v8597_v20 = vor.u32 %v9550_v10, %v8594_v17  ;;  %v9481_v51 = vld [vmem:[#allocation9 + $0x554] sm:$0xf0]  ;;  %v8168_v14 = vld [vmem:[#allocation9 + $0x428] sm:$0xf] }
 0x2f2   :  { %v10226_v39 = vpack.c.bf16 %v3456_v26, %v3456_v26  ;;  %v8581_v26 = vor.u32 %v9546_v31, %v8578_v32  ;;  %v8169_v48 = vor.u32 %v9445_v45, %v8168_v14  ;;  %v8520_v47 = vld [vmem:[#allocation9 + $0x6e8] sm:$0xf]  ;;  %v9473_v10 = vld [vmem:[#allocation9 + $0x514] sm:$0xf0]  ;;  %v7885_v32 = vor.u32 %v9371_v56, %v7882_v21  ;;  %v7866_v14 = vld [vmem:[#allocation9 + $0x1d8] sm:$0xf0] }
 0x2f3   :  { %5237 = vmatpush.bf16.msra.mxu1 %v7801_v46  ;;  %v9493_v46 = vld [vmem:[#allocation9 + $0x5b4] sm:$0xf0]  ;;  %v8504_v17 = vld [vmem:[#allocation9 + $0x6c8] sm:$0xf]  ;;  %v7818_v56 = vld [vmem:[#allocation9 + $0x178] sm:$0xf0] }
 0x2f4   :  { %5110 = vmatmul.bf16.vlgmr.msra.gmra.mxu0 %v10226_v39  ;;  %v8361_v53 = vor.u32 %v9493_v46, %v8360_v63  ;;  %5248 = vmatpush.bf16.msra.mxu2 %v7961_v5  ;;  %v8296_v63 = vld [vmem:[#allocation9 + $0x528] sm:$0xf]  ;;  %v9477_v46 = vld [vmem:[#allocation9 + $0x534] sm:$0xf0]  ;;  %v8505_v31 = vor.u32 %v9529_v19, %v8504_v17  ;;  %v9355_v19 = vld [vmem:[#allocation9 + $0x16c] sm:$0xf] }
 0x2f5   :  { %5225 = vmatpush.bf16.msrb.mxu3 %v7657_v50  ;;  %5206 = vmatpush.bf16.msra.mxu0 %v8645_v34  ;;  %v8629_v50 = vor.u32 %v9558_v60, %v8626_v16  ;;  %v9542_v34 = vld [vmem:[#allocation9 + $0x744] sm:$0xf]  ;;  %v8562_v60 = vld [vmem:[#allocation9 + $0x750] sm:$0xf0]  ;;  %v7896_v16 = vld [vmem:[#allocation9 + $0x208] sm:$0xf]  ;;  %v8297_v30 = vor.u32 %v9477_v46, %v8296_v63 }
 0x2f6   :  { %v9441_v5 = vld [vmem:[#allocation9 + $0x414] sm:$0xf0]  ;;  %v8565_v4 = vor.u32 %v9542_v34, %v8562_v60  ;;  %v7897_v59 = vor.u32 %v9377_v37, %v7896_v16  ;;  %v8136_v49 = vld [vmem:[#allocation9 + $0x3e8] sm:$0xf]  ;;  %v9363_v63 = vld [vmem:[#allocation9 + $0x1ac] sm:$0xf] }
 0x2f7   :  { %5238 = vmatpush.bf16.msra.mxu1 %v7785_v0  ;;  %v9453_v0 = vld [vmem:[#allocation9 + $0x474] sm:$0xf0]  ;;  %v8120_v60 = vld [vmem:[#allocation9 + $0x3c8] sm:$0xf]  ;;  %v7850_v46 = vld [vmem:[#allocation9 + $0x1b8] sm:$0xf0] }
 0x2f8   :  { %v8201_v61 = vor.u32 %v9453_v0, %v8200_v2  ;;  %5249 = vmatpush.bf16.msra.mxu2 %v7945_v29  ;;  %v8546_v2 = vld [vmem:[#allocation9 + $0x730] sm:$0xf0]  ;;  %v9433_v16 = vld [vmem:[#allocation9 + $0x3d4] sm:$0xf0]  ;;  %v8472_v37 = vld [vmem:[#allocation9 + $0x688] sm:$0xf] }
 0x2f9   :  { %5226 = vmatpush.bf16.msrb.mxu3 %v7641_v7  ;;  %5207 = vmatpush.bf16.msra.mxu0 %v8629_v50  ;;  %v10230_v7 = vld [vmem:[#allocation11] sm:$0xf]  ;;  %v8152_v50 = vld [vmem:[#allocation9 + $0x408] sm:$0xf]  ;;  %v8549_v22 = vor.u32 %v9538_v1, %v8546_v2  ;;  %v9323_v1 = vld [vmem:[#allocation9 + $0x6c] sm:$0xf] }
 0x2fa   :  { %v3723_v6 = vperm.slane %v10230_v7, 0  ;;  %v8153_v29 = vor.u32 %v9441_v5, %v8152_v50  ;;  %v7853_v5 = vor.u32 %v9363_v63, %v7850_v46  ;;  %v7690_v2 = vld [vmem:[#allocation9 + $0x78] sm:$0xf0]  ;;  %v8440_v17 = vld [vmem:[#allocation9 + $0x648] sm:$0xf] }
 0x2fb   :  { %5239 = vmatpush.bf16.msra.mxu1 %v7769_v23  ;;  %v5033_v58 = vpop.f32.mrf.mxu1  ;;  %v9319_v21 = vld [vmem:[#allocation9 + $0x4c] sm:$0xf]  ;;  %v8010_v46 = vld [vmem:[#allocation9 + $0x2f8] sm:$0xf0] }
 0x2fc   :  { %5227 = vmatmul.bf16.vlgmr.msrb.gmra.mxu3 %v10159_v52  ;;  %v9403_v63 = vld [vmem:[#allocation9 + $0x2ec] sm:$0xf] }
 0x2fd   :  { %5271 = vmatpush.bf16.msra.mxu3 %v8265_v18  ;;  %v9385_v18 = vld [vmem:[#allocation9 + $0x254] sm:$0xf0]  ;;  %5208 = vmatpush.bf16.msra.mxu0 %v8613_v62  ;;  %v8521_v62 = vor.u32 %v9533_v25, %v8520_v47  ;;  %v9327_v47 = vld [vmem:[#allocation9 + $0x8c] sm:$0xf]  ;;  %v8121_v25 = vor.u32 %v9433_v16, %v8120_v60 }
 0x2fe   :  { %5240 = vmatmul.bf16.vlgmr.msra.gmra.mxu1 %v10171_v42  ;;  %v7929_v23 = vor.u32 %v9385_v18, %v7928_v57  ;;  %v9505_v60 = vld [vmem:[#allocation9 + $0x614] sm:$0xf0] }
 0x2ff   :  { %5284 = vmatpush.bf16.msrb.mxu1 %v8393_v8 }
 0x300   :  { %5250 = vmatpush.bf16.msra.mxu2 %v7929_v23  ;;  %v9534_v23 = vld [vmem:[#allocation9 + $0x704] sm:$0xf] }
 0x301   :  { %5272 = vmatpush.bf16.msra.mxu3 %v8249_v28  ;;  %v5059_v8 = vpop.f32.mrf.mxu0  ;;  %v5020_v28 = vpop.f32.mrf.mxu3  ;;  %5209 = vmatpush.bf16.msra.mxu0 %v8597_v20 }
 0x302   :  { %v5021_v36 = vadd.f32 %v5020_v28, %v3723_v6  ;;  %v7738_v6 = vld [vmem:[#allocation9 + $0xd8] sm:$0xf0]  ;;  %v9367_v28 = vld [vmem:[#allocation9 + $0x1cc] sm:$0xf] }
 0x303   :  { %5285 = vmatpush.bf16.msrb.mxu1 %v8377_v40  ;;  %v8313_v40 = vor.u32 %v9481_v51, %v8312_v27  ;;  %v5035_v13 = vpop.f32.mrf.mxu1  ;;  %v9525_v51 = vld [vmem:[#allocation9 + $0x6b4] sm:$0xf0] }
 0x304   :  { %5162 = vmatmul.bf16.vlgmr.msrb.gmra.mxu0 %v10175_v43  ;;  %5251 = vmatpush.bf16.msra.mxu2 %v7913_v41  ;;  %v9429_v13 = vld [vmem:[#allocation9 + $0x3b4] sm:$0xf0] }
 0x305   :  { %5273 = vmatpush.bf16.msra.mxu3 %v8233_v44  ;;  %v5034_v44 = vadd.f32 %v5033_v58, %v5021_v36  ;;  %v5046_v12 = vpop.f32.mrf.mxu2  ;;  %5210 = vmatpush.bf16.msra.mxu0 %v8581_v26  ;;  %v9335_v58 = vld [vmem:[#allocation9 + $0xcc] sm:$0xf]  ;;  %v7722_v26 = vld [vmem:[#allocation9 + $0xb8] sm:$0xf0] }
 0x306   :  { %v7741_v27 = vor.u32 %v9335_v58, %v7738_v6  ;;  %v9331_v36 = vld [vmem:[#allocation9 + $0xac] sm:$0xf] }
 0x307   :  { %5286 = vmatpush.bf16.msrb.mxu1 %v8361_v53  ;;  %v5047_v53 = vadd.f32 %v5046_v12, %v5034_v44  ;;  %v7725_v44 = vor.u32 %v9331_v36, %v7722_v26  ;;  %v7706_v12 = vld [vmem:[#allocation9 + $0x98] sm:$0xf0]  ;;  %v8056_v36 = vld [vmem:[#allocation9 + $0x348] sm:$0xf] }
 0x308   :  { %5252 = vmatpush.bf16.msra.mxu2 %v7897_v59  ;;  %v9359_v59 = vld [vmem:[#allocation9 + $0x18c] sm:$0xf] }
 0x309   :  { %5274 = vmatpush.bf16.msra.mxu3 %v8217_v55  ;;  %v7754_v55 = vld [vmem:[#allocation9 + $0xf8] sm:$0xf0]  ;;  %v5061_v0 = vpop.f32.mrf.mxu0  ;;  %v10234_v57 = vadd.f32 %v5059_v8, %v5047_v53  ;;  %5211 = vmatpush.bf16.msra.mxu0 %v8565_v4  ;;  %v9437_v8 = vld [vmem:[#allocation9 + $0x3f4] sm:$0xf0]  ;;  %v8104_v53 = vld [vmem:[#allocation9 + $0x3a8] sm:$0xf] }
 0x30a   :  { %v7757_v18 = vor.u32 %v9339_v54, %v7754_v55  ;;  %v8137_v34 = vor.u32 %v9437_v8, %v8136_v49  ;;  %v8456_v4 = vld [vmem:[#allocation9 + $0x668] sm:$0xf]  ;;  %v7709_v54 = vor.u32 %v9327_v47, %v7706_v12  ;;  %v9517_v55 = vld [vmem:[#allocation9 + $0x674] sm:$0xf0]  ;;  %v8105_v0 = vor.u32 %v9429_v13, %v8104_v53  ;;  %v9351_v8 = vld [vmem:[#allocation9 + $0x14c] sm:$0xf] }
 0x30b   :  { %5287 = vmatpush.bf16.msrb.mxu1 %v8345_v9  ;;  %v8280_v9 = vld [vmem:[#allocation9 + $0x508] sm:$0xf]  ;;  %5253 = vmatmul.bf16.vlgmr.msra.gmra.mxu2 %v10173_v3  ;;  %v9509_v49 = vld [vmem:[#allocation9 + $0x634] sm:$0xf0]  ;;  %v9311_v47 = vld [vmem:[#allocation9 + $0xc] sm:$0xf] }
 0x30c   :  { %v8281_v20 = vor.u32 %v9473_v10, %v8280_v9  ;;  %5297 = vmatpush.bf16.msrb.mxu2 %v8521_v62  ;;  %v8457_v62 = vor.u32 %v9517_v55, %v8456_v4  ;;  %v8088_v9 = vld [vmem:[#allocation9 + $0x388] sm:$0xf]  ;;  %v9425_v10 = vld [vmem:[#allocation9 + $0x394] sm:$0xf0] }
 0x30d   :  { %5275 = vmatpush.bf16.msra.mxu3 %v8201_v61  ;;  %v5022_v61 = vpop.f32.mrf.mxu3  ;;  %v5048_v35 = vpop.f32.mrf.mxu2  ;;  %5212 = vmatpush.bf16.msra.mxu0 %v8549_v22  ;;  %v7674_v22 = vld [vmem:[#allocation9 + $0x58] sm:$0xf0]  ;;  %v8089_v58 = vor.u32 %v9425_v10, %v8088_v9  ;;  %v8040_v13 = vld [vmem:[#allocation9 + $0x328] sm:$0xf]  ;;  %v9413_v4 = vld [vmem:[#allocation9 + $0x334] sm:$0xf0] }
 0x30e   :  { %v7693_v61 = vor.u32 %v9323_v1, %v7690_v2  ;;  %v9399_v1 = vld [vmem:[#allocation9 + $0x2cc] sm:$0xf]  ;;  %v8394_v10 = vld [vmem:[#allocation9 + $0x5f8] sm:$0xf0] }
 0x30f   :  { %5288 = vmatpush.bf16.msrb.mxu1 %v8329_v24  ;;  %v8530_v24 = vld [vmem:[#allocation9 + $0x710] sm:$0xf0]  ;;  %v9499_v9 = vld [vmem:[#allocation9 + $0x5ec] sm:$0xf] }
 0x310   :  { %v8533_v45 = vor.u32 %v9534_v23, %v8530_v24  ;;  %5298 = vmatpush.bf16.msrb.mxu2 %v8505_v31  ;;  %v8072_v23 = vld [vmem:[#allocation9 + $0x368] sm:$0xf]  ;;  %v9421_v24 = vld [vmem:[#allocation9 + $0x374] sm:$0xf0] }
 0x311   :  { %5276 = vmatpush.bf16.msra.mxu3 %v8185_v33  ;;  %v8488_v33 = vld [vmem:[#allocation9 + $0x6a8] sm:$0xf] }
 0x312   :  { %v8489_v41 = vor.u32 %v9525_v51, %v8488_v33  ;;  %5213 = vmatpush.bf16.msra.mxu0 %v8533_v45  ;;  %v8424_v31 = vld [vmem:[#allocation9 + $0x628] sm:$0xf]  ;;  %v7802_v33 = vld [vmem:[#allocation9 + $0x158] sm:$0xf0]  ;;  %v9315_v51 = vld [vmem:[#allocation9 + $0x2c] sm:$0xf]  ;;  %v8073_v45 = vor.u32 %v9421_v24, %v8072_v23 }
 0x313   :  { %5289 = vmatpush.bf16.msrb.mxu1 %v8313_v40  ;;  %v7869_v40 = vor.u32 %v9367_v28, %v7866_v14  ;;  %v7658_v28 = vld [vmem:[#allocation9 + $0x38] sm:$0xf0]  ;;  %v8425_v26 = vor.u32 %v9509_v49, %v8424_v31  ;;  %v9395_v23 = vld [vmem:[#allocation9 + $0x2ac] sm:$0xf] }
 0x314   :  { %5299 = vmatpush.bf16.msrb.mxu2 %v8489_v41  ;;  %v9417_v41 = vld [vmem:[#allocation9 + $0x354] sm:$0xf0]  ;;  %v7978_v31 = vld [vmem:[#allocation9 + $0x2b8] sm:$0xf0] }
 0x315   :  { %5277 = vmatpush.bf16.msra.mxu3 %v8169_v48  ;;  %v9521_v48 = vld [vmem:[#allocation9 + $0x694] sm:$0xf0]  ;;  %5214 = vmatmul.bf16.vlgmr.msra.gmra.mxu0 %v10226_v39  ;;  %v8057_v12 = vor.u32 %v9417_v41, %v8056_v36  ;;  %v8378_v49 = vld [vmem:[#allocation9 + $0x5d8] sm:$0xf0]  ;;  %v9391_v36 = vld [vmem:[#allocation9 + $0x28c] sm:$0xf] }
 0x316   :  { %5258 = vmatpush.bf16.msrb.mxu0 %v8137_v34  ;;  %v8473_v50 = vor.u32 %v9521_v48, %v8472_v37  ;;  %v7805_v34 = vor.u32 %v9351_v8, %v7802_v33  ;;  %v7661_v37 = vor.u32 %v9315_v51, %v7658_v28  ;;  %v7786_v48 = vld [vmem:[#allocation9 + $0x138] sm:$0xf0]  ;;  %v9459_v33 = vld [vmem:[#allocation9 + $0x4ac] sm:$0xf]  ;;  %v7981_v51 = vor.u32 %v9395_v23, %v7978_v31 }
 0x317   :  { %5290 = vmatpush.bf16.msrb.mxu1 %v8297_v30  ;;  %v7834_v30 = vld [vmem:[#allocation9 + $0x198] sm:$0xf0]  ;;  %v9491_v41 = vld [vmem:[#allocation9 + $0x5ac] sm:$0xf] }
 0x318   :  { %5300 = vmatpush.bf16.msrb.mxu2 %v8473_v50  ;;  %v8266_v50 = vld [vmem:[#allocation9 + $0x4f8] sm:$0xf0] }
 0x319   :  { %5278 = vmatpush.bf16.msra.mxu3 %v8153_v29  ;;  %v7837_v29 = vor.u32 %v9359_v59, %v7834_v30  ;;  %v9343_v59 = vld [vmem:[#allocation9 + $0x10c] sm:$0xf]  ;;  %v7770_v30 = vld [vmem:[#allocation9 + $0x118] sm:$0xf0] }
 0x31a   :  { %5259 = vmatpush.bf16.msrb.mxu0 %v8121_v25  ;;  %v9467_v25 = vld [vmem:[#allocation9 + $0x4ec] sm:$0xf]  ;;  %v8170_v31 = vld [vmem:[#allocation9 + $0x438] sm:$0xf0] }
 0x31b   :  { %5291 = vmatpush.bf16.msrb.mxu1 %v8281_v20  ;;  %v7821_v20 = vor.u32 %v9355_v19, %v7818_v56  ;;  %v7773_v19 = vor.u32 %v9343_v59, %v7770_v30  ;;  %v8024_v56 = vld [vmem:[#allocation9 + $0x308] sm:$0xf]  ;;  %v9383_v59 = vld [vmem:[#allocation9 + $0x24c] sm:$0xf] }
 0x31c   :  { %5279 = vmatmul.bf16.vlgmr.msra.gmra.mxu3 %v10187_v11  ;;  %5301 = vmatpush.bf16.msrb.mxu2 %v8457_v62  ;;  %v8269_v62 = vor.u32 %v9467_v25, %v8266_v50  ;;  %v9487_v25 = vld [vmem:[#allocation9 + $0x58c] sm:$0xf]  ;;  %v8346_v50 = vld [vmem:[#allocation9 + $0x598] sm:$0xf0] }
 0x31d   :  { %5323 = vmatpush.bf16.msrb.mxu3 %v7757_v18  ;;  %v9513_v18 = vld [vmem:[#allocation9 + $0x654] sm:$0xf0] }
 0x31e   :  { %5292 = vmatmul.bf16.vlgmr.msrb.gmra.mxu1 %v10190_v15  ;;  %5260 = vmatpush.bf16.msrb.mxu0 %v8105_v0  ;;  %v8441_v6 = vor.u32 %v9513_v18, %v8440_v17  ;;  %v8041_v17 = vor.u32 %v9413_v4, %v8040_v13  ;;  %v8250_v18 = vld [vmem:[#allocation9 + $0x4d8] sm:$0xf0]  ;;  %v8349_v4 = vor.u32 %v9487_v25, %v8346_v50  ;;  %v9471_v25 = vld [vmem:[#allocation9 + $0x50c] sm:$0xf] }
 0x31f   :  { %5336 = vmatpush.bf16.msra.mxu1 %v7885_v32  ;;  %v7677_v32 = vor.u32 %v9319_v21, %v7674_v22  ;;  %v5072_v35 = vpop.f32.mrf.mxu3  ;;  %v9409_v21 = vld [vmem:[#allocation9 + $0x314] sm:$0xf0]  ;;  %v8282_v50 = vld [vmem:[#allocation9 + $0x518] sm:$0xf0] }
 0x320   :  { %v5073_v14 = vadd.f32 %v5072_v35, %v10234_v57  ;;  %5302 = vmatpush.bf16.msrb.mxu2 %v8441_v6  ;;  %v7642_v57 = vld [vmem:[#allocation9 + $0x18] sm:$0xf0]  ;;  %v8648_v6 = vld [vmem:[#allocation9 + $0x7e8] sm:$0xf]  ;;  %v8025_v8 = vor.u32 %v9409_v21, %v8024_v56  ;;  %v9549_v56 = vld [vmem:[#allocation9 + $0x774] sm:$0xf0] }
 0x321   :  { %5324 = vmatpush.bf16.msrb.mxu3 %v7741_v27  ;;  %v5085_v27 = vpop.f32.mrf.mxu1  ;;  %v7645_v55 = vor.u32 %v9311_v47, %v7642_v57  ;;  %v8234_v35 = vld [vmem:[#allocation9 + $0x4b8] sm:$0xf0]  ;;  %v9387_v47 = vld [vmem:[#allocation9 + $0x26c] sm:$0xf] }
 0x322   :  { %5261 = vmatpush.bf16.msrb.mxu0 %v8089_v58  ;;  %v10241_v16 = vadd.f32 %v5085_v27, %v5073_v14  ;;  %v8397_v58 = vor.u32 %v9499_v9, %v8394_v10  ;;  %v8632_v14 = vld [vmem:[#allocation9 + $0x7c8] sm:$0xf]  ;;  %v3724_v10 = vperm.slane %v10230_v7, 1  ;;  %v9379_v21 = vld [vmem:[#allocation9 + $0x22c] sm:$0xf] }
 0x323   :  { %5337 = vmatpush.bf16.msra.mxu1 %v7869_v40  ;;  %v8408_v40 = vld [vmem:[#allocation9 + $0x608] sm:$0xf] }
 0x324   :  { %5303 = vmatpush.bf16.msrb.mxu2 %v8425_v26  ;;  %v8237_v26 = vor.u32 %v9459_v33, %v8234_v35  ;;  %v8568_v7 = vld [vmem:[#allocation9 + $0x748] sm:$0xf]  ;;  %v9545_v35 = vld [vmem:[#allocation9 + $0x754] sm:$0xf0] }
 0x325   :  { %5325 = vmatpush.bf16.msrb.mxu3 %v7725_v44  ;;  %v9347_v44 = vld [vmem:[#allocation9 + $0x12c] sm:$0xf] }
 0x326   :  { %5262 = vmatpush.bf16.msrb.mxu0 %v8073_v45  ;;  %v7789_v53 = vor.u32 %v9347_v44, %v7786_v48  ;;  %v9561_v45 = vld [vmem:[#allocation9 + $0x7d4] sm:$0xf0] }
 0x327   :  { %5338 = vmatpush.bf16.msra.mxu1 %v7853_v5  ;;  %v8409_v5 = vor.u32 %v9505_v60, %v8408_v40  ;;  %v5074_v2 = vpop.f32.mrf.mxu3  ;;  %v8362_v40 = vld [vmem:[#allocation9 + $0x5b8] sm:$0xf0]  ;;  %v9455_v60 = vld [vmem:[#allocation9 + $0x48c] sm:$0xf] }
 0x328   :  { %v8365_v48 = vor.u32 %v9491_v41, %v8362_v40  ;;  %v9483_v2 = vld [vmem:[#allocation9 + $0x56c] sm:$0xf]  ;;  %v8154_v40 = vld [vmem:[#allocation9 + $0x418] sm:$0xf0] }
 0x329   :  { %5326 = vmatpush.bf16.msrb.mxu3 %v7709_v54  ;;  %v8013_v54 = vor.u32 %v9403_v63, %v8010_v46  ;;  %v5087_v0 = vpop.f32.mrf.mxu1  ;;  %5304 = vmatpush.bf16.msrb.mxu2 %v8409_v5  ;;  %v8616_v63 = vld [vmem:[#allocation9 + $0x7a8] sm:$0xf]  ;;  %v9557_v46 = vld [vmem:[#allocation9 + $0x7b4] sm:$0xf0]  ;;  %v9451_v5 = vld [vmem:[#allocation9 + $0x46c] sm:$0xf] }
 0x32a   :  { %5263 = vmatpush.bf16.msrb.mxu0 %v8057_v12  ;;  %v7946_v12 = vld [vmem:[#allocation9 + $0x278] sm:$0xf0]  ;;  %v9439_v41 = vld [vmem:[#allocation9 + $0x40c] sm:$0xf] }
 0x32b   :  { %5339 = vmatpush.bf16.msra.mxu1 %v7837_v29  ;;  %v7994_v29 = vld [vmem:[#allocation9 + $0x2d8] sm:$0xf0]  ;;  %v7949_v13 = vor.u32 %v9387_v47, %v7946_v12  ;;  %v9541_v47 = vld [vmem:[#allocation9 + $0x734] sm:$0xf0]  ;;  %v8157_v12 = vor.u32 %v9439_v41, %v8154_v40 }
 0x32c   :  { %v7997_v22 = vor.u32 %v9399_v1, %v7994_v29  ;;  %5305 = vmatmul.bf16.vlgmr.msrb.gmra.mxu2 %v10215_v38  ;;  %v7930_v1 = vld [vmem:[#allocation9 + $0x258] sm:$0xf0] }
 0x32d   :  { %5327 = vmatpush.bf16.msrb.mxu3 %v7693_v61  ;;  %v9463_v61 = vld [vmem:[#allocation9 + $0x4cc] sm:$0xf]  ;;  %5349 = vmatpush.bf16.msra.mxu2 %v8013_v54  ;;  %v8600_v54 = vld [vmem:[#allocation9 + $0x788] sm:$0xf]  ;;  %v8330_v0 = vld [vmem:[#allocation9 + $0x578] sm:$0xf0] }
 0x32e   :  { %v8253_v24 = vor.u32 %v9463_v61, %v8250_v18  ;;  %5264 = vmatpush.bf16.msrb.mxu0 %v8041_v17  ;;  %v8186_v29 = vld [vmem:[#allocation9 + $0x458] sm:$0xf0]  ;;  %v7933_v61 = vor.u32 %v9383_v59, %v7930_v1  ;;  %v8333_v18 = vor.u32 %v9483_v2, %v8330_v0  ;;  %v8285_v59 = vor.u32 %v9471_v25, %v8282_v50  ;;  %v9537_v1 = vld [vmem:[#allocation9 + $0x714] sm:$0xf0]  ;;  %v9435_v0 = vld [vmem:[#allocation9 + $0x3ec] sm:$0xf] }
 0x32f   :  { %5340 = vmatpush.bf16.msra.mxu1 %v7821_v20  ;;  %v9565_v20 = vld [vmem:[#allocation9 + $0x7f4] sm:$0xf0]  ;;  %v8090_v41 = vld [vmem:[#allocation9 + $0x398] sm:$0xf0]  ;;  %v9419_v50 = vld [vmem:[#allocation9 + $0x36c] sm:$0xf] }
 0x330   :  { %v8649_v27 = vor.u32 %v9565_v20, %v8648_v6  ;;  %v9479_v6 = vld [vmem:[#allocation9 + $0x54c] sm:$0xf]  ;;  %v8314_v20 = vld [vmem:[#allocation9 + $0x558] sm:$0xf0] }
 0x331   :  { %5328 = vmatpush.bf16.msrb.mxu3 %v7677_v32  ;;  %v9495_v32 = vld [vmem:[#allocation9 + $0x5cc] sm:$0xf]  ;;  %5350 = vmatpush.bf16.msra.mxu2 %v7997_v22  ;;  %v8317_v33 = vor.u32 %v9479_v6, %v8314_v20  ;;  %v8474_v6 = vld [vmem:[#allocation9 + $0x698] sm:$0xf0] }
 0x332   :  { %v8381_v28 = vor.u32 %v9495_v32, %v8378_v49  ;;  %5265 = vmatpush.bf16.msrb.mxu0 %v8025_v8 }
 0x333   :  { %5341 = vmatpush.bf16.msra.mxu1 %v7805_v34  ;;  %v7962_v34 = vld [vmem:[#allocation9 + $0x298] sm:$0xf0] }
 0x334   :  { %v7965_v44 = vor.u32 %v9391_v36, %v7962_v34  ;;  %v9531_v36 = vld [vmem:[#allocation9 + $0x6ec] sm:$0xf]  ;;  %v8522_v34 = vld [vmem:[#allocation9 + $0x6f8] sm:$0xf0] }
 0x335   :  { %5329 = vmatpush.bf16.msrb.mxu3 %v7661_v37  ;;  %v8218_v37 = vld [vmem:[#allocation9 + $0x498] sm:$0xf0]  ;;  %5351 = vmatpush.bf16.msra.mxu2 %v7981_v51 }
 0x336   :  { %5310 = vmatpush.bf16.msra.mxu0 %v8649_v27  ;;  %v8221_v57 = vor.u32 %v9455_v60, %v8218_v37  ;;  %v9375_v27 = vld [vmem:[#allocation9 + $0x20c] sm:$0xf]  ;;  %v7898_v51 = vld [vmem:[#allocation9 + $0x218] sm:$0xf0]  ;;  %v8569_v37 = vor.u32 %v9545_v35, %v8568_v7 }
 0x337   :  { %5342 = vmatpush.bf16.msra.mxu1 %v7789_v53  ;;  %5266 = vmatmul.bf16.vlgmr.msrb.gmra.mxu0 %v10175_v43  ;;  %v8617_v53 = vor.u32 %v9557_v46, %v8616_v63  ;;  %v8552_v46 = vld [vmem:[#allocation9 + $0x728] sm:$0xf]  ;;  %v8106_v7 = vld [vmem:[#allocation9 + $0x3b8] sm:$0xf0] }
 0x338   :  { %v8458_v35 = vld [vmem:[#allocation9 + $0x678] sm:$0xf0] }
 0x339   :  { %5330 = vmatpush.bf16.msrb.mxu3 %v7645_v55  ;;  %5352 = vmatpush.bf16.msra.mxu2 %v7965_v44  ;;  %v9553_v55 = vld [vmem:[#allocation9 + $0x794] sm:$0xf0]  ;;  %v9581_v44 = vld [vmem:[#allocation12 + $0x74] sm:$0xf0] }
 0x33a   :  { %v8601_v17 = vor.u32 %v9553_v55, %v8600_v54  ;;  %v8704_v54 = vld [vmem:[#allocation12 + $0x60] sm:$0xf]  ;;  %v9579_v55 = vld [vmem:[#allocation12 + $0x64] sm:$0xf0] }
 0x33b   :  { %5343 = vmatpush.bf16.msra.mxu1 %v7773_v19  ;;  %v5137_v9 = vpop.f32.mrf.mxu1  ;;  %v8584_v19 = vld [vmem:[#allocation9 + $0x768] sm:$0xf] }
 0x33c   :  { %5331 = vmatmul.bf16.vlgmr.msrb.gmra.mxu3 %v10159_v52  ;;  %v8633_v52 = vor.u32 %v9561_v45, %v8632_v14  ;;  %v8585_v49 = vor.u32 %v9549_v56, %v8584_v19  ;;  %v9475_v14 = vld [vmem:[#allocation9 + $0x52c] sm:$0xf]  ;;  %v8298_v45 = vld [vmem:[#allocation9 + $0x538] sm:$0xf0] }
 0x33d   :  { %5375 = vmatpush.bf16.msra.mxu3 %v8269_v62  ;;  %v9447_v62 = vld [vmem:[#allocation9 + $0x44c] sm:$0xf]  ;;  %5353 = vmatpush.bf16.msra.mxu2 %v7949_v13  ;;  %v8301_v63 = vor.u32 %v9475_v14, %v8298_v45  ;;  %v8768_v14 = vld [vmem:[#allocation12 + $0xe0] sm:$0xf] }
 0x33e   :  { %5344 = vmatmul.bf16.vlgmr.msra.gmra.mxu1 %v10171_v42  ;;  %v8202_v42 = vld [vmem:[#allocation9 + $0x478] sm:$0xf0]  ;;  %5311 = vmatpush.bf16.msra.mxu0 %v8633_v52  ;;  %v8189_v22 = vor.u32 %v9447_v62, %v8186_v29  ;;  %v8712_v52 = vld [vmem:[#allocation12 + $0x70] sm:$0xf]  ;;  %v9523_v29 = vld [vmem:[#allocation9 + $0x6ac] sm:$0xf] }
 0x33f   :  { %5388 = vmatpush.bf16.msrb.mxu1 %v8397_v58  ;;  %v8205_v30 = vor.u32 %v9451_v5, %v8202_v42  ;;  %v7914_v58 = vld [vmem:[#allocation9 + $0x238] sm:$0xf0]  ;;  %v5124_v23 = vpop.f32.mrf.mxu3  ;;  %v9527_v42 = vld [vmem:[#allocation9 + $0x6cc] sm:$0xf]  ;;  %v8713_v13 = vor.u32 %v9581_v44, %v8712_v52 }
 0x340   :  { %v5125_v32 = vadd.f32 %v5124_v23, %v3724_v10  ;;  %v7917_v8 = vor.u32 %v9379_v21, %v7914_v58  ;;  %v8138_v62 = vld [vmem:[#allocation9 + $0x3f8] sm:$0xf0]  ;;  %v8705_v10 = vor.u32 %v9579_v55, %v8704_v54  ;;  %v9431_v21 = vld [vmem:[#allocation9 + $0x3cc] sm:$0xf]  ;;  %v10254_v44 = vpop.f32.mrf.mxu2  ;;  %v8664_v55 = vld [vmem:[#allocation12 + $0x10] sm:$0xf] }
 0x341   :  { %5376 = vmatpush.bf16.msra.mxu3 %v8253_v24  ;;  %v9443_v24 = vld [vmem:[#allocation9 + $0x42c] sm:$0xf]  ;;  %5354 = vmatpush.bf16.msra.mxu2 %v7933_v61  ;;  %v8696_v61 = vld [vmem:[#allocation12 + $0x50] sm:$0xf]  ;;  %v8141_v19 = vor.u32 %v9435_v0, %v8138_v62 }
 0x342   :  { %5312 = vmatpush.bf16.msra.mxu0 %v8617_v53  ;;  %v8506_v53 = vld [vmem:[#allocation9 + $0x6d8] sm:$0xf0]  ;;  %v9519_v58 = vld [vmem:[#allocation9 + $0x68c] sm:$0xf] }
 0x343   :  { %5389 = vmatpush.bf16.msrb.mxu1 %v8381_v28  ;;  %v8173_v28 = vor.u32 %v9443_v24, %v8170_v31  ;;  %v5139_v60 = vpop.f32.mrf.mxu1  ;;  %v8509_v2 = vor.u32 %v9527_v42, %v8506_v53  ;;  %v9575_v23 = vld [vmem:[#allocation12 + $0x44] sm:$0xf0]  ;;  %v8776_v31 = vld [vmem:[#allocation12 + $0xf0] sm:$0xf] }
 0x344   :  { %v9595_v45 = vld [vmem:[#allocation12 + $0xe4] sm:$0xf0] }
 0x345   :  { %5377 = vmatpush.bf16.msra.mxu3 %v8237_v26  ;;  %v10248_v26 = vadd.f32 %v5137_v9, %v5125_v32  ;;  %5355 = vmatpush.bf16.msra.mxu2 %v7917_v8  ;;  %v8490_v9 = vld [vmem:[#allocation9 + $0x6b8] sm:$0xf0]  ;;  %v8769_v40 = vor.u32 %v9595_v45, %v8768_v14  ;;  %v9511_v60 = vld [vmem:[#allocation9 + $0x64c] sm:$0xf] }
 0x346   :  { %5313 = vmatpush.bf16.msra.mxu0 %v8601_v17  ;;  %v8493_v56 = vor.u32 %v9523_v29, %v8490_v9  ;;  %v9597_v32 = vld [vmem:[#allocation12 + $0xf4] sm:$0xf0]  ;;  %v9507_v53 = vld [vmem:[#allocation9 + $0x62c] sm:$0xf] }
 0x347   :  { %5390 = vmatpush.bf16.msrb.mxu1 %v8365_v48  ;;  %v7901_v48 = vor.u32 %v9375_v27, %v7898_v51  ;;  %v5126_v5 = vpop.f32.mrf.mxu3  ;;  %v8777_v8 = vor.u32 %v9597_v32, %v8776_v31  ;;  %v8680_v51 = vld [vmem:[#allocation12 + $0x30] sm:$0xf]  ;;  %v9415_v62 = vld [vmem:[#allocation9 + $0x34c] sm:$0xf]  ;;  %v8058_v29 = vld [vmem:[#allocation9 + $0x358] sm:$0xf0] }
 0x348   :  { %v8074_v5 = vld [vmem:[#allocation9 + $0x378] sm:$0xf0]  ;;  %v9563_v45 = vld [vmem:[#allocation9 + $0x7ec] sm:$0xf] }
 0x349   :  { %5378 = vmatpush.bf16.msra.mxu3 %v8221_v57  ;;  %v8525_v57 = vor.u32 %v9531_v36, %v8522_v34  ;;  %5356 = vmatpush.bf16.msra.mxu2 %v7901_v48  ;;  %v9423_v34 = vld [vmem:[#allocation9 + $0x38c] sm:$0xf]  ;;  %v8672_v48 = vld [vmem:[#allocation12 + $0x20] sm:$0xf]  ;;  %v8042_v31 = vld [vmem:[#allocation9 + $0x338] sm:$0xf0] }
 0x34a   :  { %5314 = vmatpush.bf16.msra.mxu0 %v8585_v49  ;;  %v9427_v49 = vld [vmem:[#allocation9 + $0x3ac] sm:$0xf] }
 0x34b   :  { %5391 = vmatpush.bf16.msrb.mxu1 %v8349_v4  ;;  %v8553_v4 = vor.u32 %v9541_v47, %v8552_v46  ;;  %v8093_v47 = vor.u32 %v9423_v34, %v8090_v41 }
 0x34c   :  { %5357 = vmatmul.bf16.vlgmr.msra.gmra.mxu2 %v10173_v3  ;;  %v8688_v3 = vld [vmem:[#allocation12 + $0x40] sm:$0xf] }
 0x34d   :  { %5379 = vmatpush.bf16.msra.mxu3 %v8205_v30  ;;  %v8536_v30 = vld [vmem:[#allocation9 + $0x708] sm:$0xf]  ;;  %5401 = vmatpush.bf16.msrb.mxu2 %v8525_v57  ;;  %v8689_v27 = vor.u32 %v9575_v23, %v8688_v3  ;;  %v8760_v57 = vld [vmem:[#allocation12 + $0xd0] sm:$0xf]  ;;  %v9589_v3 = vld [vmem:[#allocation12 + $0xb4] sm:$0xf0] }
 0x34e   :  { %5315 = vmatpush.bf16.msra.mxu0 %v8569_v37  ;;  %v8537_v17 = vor.u32 %v9537_v1, %v8536_v30  ;;  %v8442_v37 = vld [vmem:[#allocation9 + $0x658] sm:$0xf0]  ;;  %v8077_v30 = vor.u32 %v9419_v50, %v8074_v5  ;;  %v8752_v1 = vld [vmem:[#allocation12 + $0xc0] sm:$0xf]  ;;  %v9574_v50 = vld [vmem:[#allocation12 + $0x44] sm:$0xf] }
 0x34f   :  { %5392 = vmatpush.bf16.msrb.mxu1 %v8333_v18  ;;  %v9577_v18 = vld [vmem:[#allocation12 + $0x54] sm:$0xf0]  ;;  %v8445_v25 = vor.u32 %v9511_v60, %v8442_v37  ;;  %v8698_v37 = vld [vmem:[#allocation12 + $0x58] sm:$0xf0]  ;;  %v8690_v5 = vld [vmem:[#allocation12 + $0x48] sm:$0xf0] }
 0x350   :  { %v8697_v20 = vor.u32 %v9577_v18, %v8696_v61  ;;  %v5100_v18 = vpop.f32.mrf.mxu2 }
 0x351   :  { %5380 = vmatpush.bf16.msra.mxu3 %v8189_v22  ;;  %5402 = vmatpush.bf16.msrb.mxu2 %v8509_v2  ;;  %v8122_v22 = vld [vmem:[#allocation9 + $0x3d8] sm:$0xf0]  ;;  %v9591_v2 = vld [vmem:[#allocation12 + $0xc4] sm:$0xf0] }
 0x352   :  { %5316 = vmatpush.bf16.msra.mxu0 %v8553_v4  ;;  %v8125_v24 = vor.u32 %v9431_v21, %v8122_v22  ;;  %v8753_v9 = vor.u32 %v9591_v2, %v8752_v1  ;;  %v9580_v21 = vld [vmem:[#allocation12 + $0x74] sm:$0xf]  ;;  %v8602_v18 = vld [vmem:[#allocation9 + $0x798] sm:$0xf0] }
 0x353   :  { %5393 = vmatpush.bf16.msrb.mxu1 %v8317_v33  ;;  %v9515_v33 = vld [vmem:[#allocation9 + $0x66c] sm:$0xf] }
 0x354   :  { %v8461_v36 = vor.u32 %v9515_v33, %v8458_v35  ;;  %v8706_v35 = vld [vmem:[#allocation12 + $0x68] sm:$0xf0] }
 0x355   :  { %5381 = vmatpush.bf16.msra.mxu3 %v8173_v28  ;;  %5403 = vmatpush.bf16.msrb.mxu2 %v8493_v56  ;;  %v9573_v28 = vld [vmem:[#allocation12 + $0x34] sm:$0xf0]  ;;  %v9567_v56 = vld [vmem:[#allocation12 + $0x4] sm:$0xf0] }
 0x356   :  { %5317 = vmatpush.bf16.msra.mxu0 %v8537_v17  ;;  %v8681_v52 = vor.u32 %v9573_v28, %v8680_v51  ;;  %v8410_v17 = vld [vmem:[#allocation9 + $0x618] sm:$0xf0]  ;;  %v9587_v51 = vld [vmem:[#allocation12 + $0xa4] sm:$0xf0] }
 0x357   :  { %5394 = vmatpush.bf16.msrb.mxu1 %v8301_v63  ;;  %v9571_v63 = vld [vmem:[#allocation12 + $0x24] sm:$0xf0] }
 0x358   :  { %v8673_v4 = vor.u32 %v9571_v63, %v8672_v48  ;;  %v9407_v28 = vld [vmem:[#allocation9 + $0x30c] sm:$0xf]  ;;  %v10260_v34 = vpop.f32.mrf.mxu2  ;;  %v9585_v48 = vld [vmem:[#allocation12 + $0x94] sm:$0xf0] }
 0x359   :  { %5382 = vmatpush.bf16.msra.mxu3 %v8157_v12  ;;  %5318 = vmatmul.bf16.vlgmr.msra.gmra.mxu0 %v10226_v39  ;;  %v9593_v12 = vld [vmem:[#allocation12 + $0xd4] sm:$0xf0] }
 0x35a   :  { %5362 = vmatpush.bf16.msrb.mxu0 %v8141_v19  ;;  %v8761_v42 = vor.u32 %v9593_v12, %v8760_v57  ;;  %v8656_v19 = vld [vmem:[#allocation12] sm:$0xf]  ;;  %v9559_v57 = vld [vmem:[#allocation9 + $0x7cc] sm:$0xf]  ;;  %v8634_v12 = vld [vmem:[#allocation9 + $0x7d8] sm:$0xf0] }
 0x35b   :  { %5395 = vmatpush.bf16.msrb.mxu1 %v8285_v59  ;;  %v10256_v46 = vpop.f32.mrf.mxu1  ;;  %v9569_v59 = vld [vmem:[#allocation12 + $0x14] sm:$0xf0] }
 0x35c   :  { %5383 = vmatmul.bf16.vlgmr.msra.gmra.mxu3 %v10187_v11  ;;  %v8477_v11 = vor.u32 %v9519_v58, %v8474_v6  ;;  %v8665_v61 = vor.u32 %v9569_v59, %v8664_v55  ;;  %v8061_v58 = vor.u32 %v9415_v62, %v8058_v29  ;;  %v8714_v6 = vld [vmem:[#allocation12 + $0x78] sm:$0xf0]  ;;  %v9555_v59 = vld [vmem:[#allocation9 + $0x7ac] sm:$0xf]  ;;  %v9572_v62 = vld [vmem:[#allocation12 + $0x34] sm:$0xf] }
 0x35d   :  { %5833 = vmatpush.bf16.msrb.mxu3 %v8713_v13  ;;  %v8426_v13 = vld [vmem:[#allocation9 + $0x638] sm:$0xf0]  ;;  %v8778_v55 = vld [vmem:[#allocation12 + $0xf8] sm:$0xf0] }
 0x35e   :  { %5396 = vmatmul.bf16.vlgmr.msrb.gmra.mxu1 %v10190_v15  ;;  %5363 = vmatpush.bf16.msrb.mxu0 %v8125_v24  ;;  %v8109_v15 = vor.u32 %v9427_v49, %v8106_v7  ;;  %v8429_v0 = vor.u32 %v9507_v53, %v8426_v13  ;;  %v9411_v24 = vld [vmem:[#allocation9 + $0x32c] sm:$0xf]  ;;  %v8717_v7 = vor.u32 %v9580_v21, %v8714_v6  ;;  %v8682_v29 = vld [vmem:[#allocation12 + $0x38] sm:$0xf0] }
 0x35f   :  { %5846 = vmatpush.bf16.msra.mxu1 %v8777_v8  ;;  %5404 = vmatpush.bf16.msrb.mxu2 %v8477_v11  ;;  %v10258_v54 = vpop.f32.mrf.mxu3  ;;  %v8657_v11 = vor.u32 %v9567_v56, %v8656_v19  ;;  %v9578_v8 = vld [vmem:[#allocation12 + $0x64] sm:$0xf]  ;;  %v8045_v33 = vor.u32 %v9411_v24, %v8042_v31  ;;  %v9583_v53 = vld [vmem:[#allocation12 + $0x84] sm:$0xf0]  ;;  %v8637_v13 = vor.u32 %v9559_v57, %v8634_v12  ;;  %v9592_v24 = vld [vmem:[#allocation12 + $0xd4] sm:$0xf] }
 0x360   :  { %v8709_v41 = vor.u32 %v9578_v8, %v8706_v35  ;;  %v5152_v2 = vpop.f32.mrf.mxu2  ;;  %v8685_v56 = vor.u32 %v9572_v62, %v8682_v29  ;;  %v5099_v21 = vadd.f32 %v10254_v44, %v10241_v16  ;;  %v8762_v31 = vld [vmem:[#allocation12 + $0xd8] sm:$0xf0]  ;;  %v9568_v44 = vld [vmem:[#allocation12 + $0x14] sm:$0xf]  ;;  %v9535_v62 = vld [vmem:[#allocation9 + $0x70c] sm:$0xf] }
 0x361   :  { %5834 = vmatpush.bf16.msrb.mxu3 %v8705_v10  ;;  %v9503_v10 = vld [vmem:[#allocation9 + $0x60c] sm:$0xf]  ;;  %v8538_v29 = vld [vmem:[#allocation9 + $0x718] sm:$0xf0] }
 0x362   :  { %5364 = vmatpush.bf16.msrb.mxu0 %v8109_v15  ;;  %v8413_v23 = vor.u32 %v9503_v10, %v8410_v17  ;;  %v8026_v15 = vld [vmem:[#allocation9 + $0x318] sm:$0xf0]  ;;  %v9594_v10 = vld [vmem:[#allocation12 + $0xe4] sm:$0xf]  ;;  %v8770_v17 = vld [vmem:[#allocation12 + $0xe8] sm:$0xf0] }
 0x363   :  { %5847 = vmatpush.bf16.msra.mxu1 %v8769_v40  ;;  %5405 = vmatpush.bf16.msrb.mxu2 %v8461_v36  ;;  %v5191_v22 = vpop.f32.mrf.mxu1  ;;  %v8650_v36 = vld [vmem:[#allocation9 + $0x7f8] sm:$0xf0]  ;;  %v9576_v40 = vld [vmem:[#allocation12 + $0x54] sm:$0xf]  ;;  %v8029_v60 = vor.u32 %v9407_v28, %v8026_v15  ;;  %v8773_v19 = vor.u32 %v9594_v10, %v8770_v17  ;;  %v9590_v15 = vld [vmem:[#allocation12 + $0xc4] sm:$0xf] }
 0x364   :  { %v8653_v63 = vor.u32 %v9563_v45, %v8650_v36  ;;  %v9570_v22 = vld [vmem:[#allocation12 + $0x24] sm:$0xf]  ;;  %v9543_v36 = vld [vmem:[#allocation9 + $0x74c] sm:$0xf]  ;;  %v9584_v10 = vld [vmem:[#allocation12 + $0x94] sm:$0xf] }
 0x365   :  { %5835 = vmatpush.bf16.msrb.mxu3 %v8697_v20  ;;  %v8744_v20 = vld [vmem:[#allocation12 + $0xb0] sm:$0xf]  ;;  %v8730_v17 = vld [vmem:[#allocation12 + $0x98] sm:$0xf0] }
 0x366   :  { %5365 = vmatpush.bf16.msrb.mxu0 %v8093_v47  ;;  %v8745_v32 = vor.u32 %v9589_v3, %v8744_v20  ;;  %v10266_v20 = vld [vmem:[#allocation11] sm:$0xf] }
 0x367   :  { %5848 = vmatpush.bf16.msra.mxu1 %v8761_v42  ;;  %5406 = vmatpush.bf16.msrb.mxu2 %v8445_v25  ;;  %v5178_v49 = vpop.f32.mrf.mxu3  ;;  %v8701_v25 = vor.u32 %v9576_v40, %v8698_v37  ;;  %v8720_v42 = vld [vmem:[#allocation12 + $0x80] sm:$0xf]  ;;  %v3725_v3 = vperm.slane %v10266_v20, 2 }
 0x368   :  { %v8586_v49 = vld [vmem:[#allocation9 + $0x778] sm:$0xf0] }
 0x369   :  { %5836 = vmatpush.bf16.msrb.mxu3 %v8689_v27  ;;  %v8736_v27 = vld [vmem:[#allocation12 + $0xa0] sm:$0xf] }
 0x36a   :  { %5366 = vmatpush.bf16.msrb.mxu0 %v8077_v30  ;;  %v8737_v14 = vor.u32 %v9587_v51, %v8736_v27  ;;  %v8618_v30 = vld [vmem:[#allocation9 + $0x7b8] sm:$0xf0]  ;;  %v10269_v8 = vpop.f32.mrf.mxu2  ;;  %v8666_v27 = vld [vmem:[#allocation12 + $0x18] sm:$0xf0] }
 0x36b   :  { %5849 = vmatpush.bf16.msra.mxu1 %v8753_v9  ;;  %5407 = vmatpush.bf16.msrb.mxu2 %v8429_v0  ;;  %v8693_v0 = vor.u32 %v9574_v50, %v8690_v5  ;;  %v8621_v9 = vor.u32 %v9555_v59, %v8618_v30  ;;  %v8669_v37 = vor.u32 %v9568_v44, %v8666_v27  ;;  %v8746_v50 = vld [vmem:[#allocation12 + $0xb8] sm:$0xf0]  ;;  %v9539_v5 = vld [vmem:[#allocation9 + $0x72c] sm:$0xf]  ;;  %v8840_v59 = vld [vmem:[#allocation12 + $0x170] sm:$0xf] }
 0x36c   :  { %v9613_v30 = vld [vmem:[#allocation12 + $0x174] sm:$0xf0]  ;;  %v8816_v44 = vld [vmem:[#allocation12 + $0x140] sm:$0xf] }
 0x36d   :  { %5837 = vmatpush.bf16.msrb.mxu3 %v8681_v52  ;;  %v8728_v52 = vld [vmem:[#allocation12 + $0x90] sm:$0xf]  ;;  %v8841_v2 = vor.u32 %v9613_v30, %v8840_v59  ;;  %v8826_v59 = vld [vmem:[#allocation12 + $0x158] sm:$0xf0] }
 0x36e   :  { %5367 = vmatpush.bf16.msrb.mxu0 %v8061_v58  ;;  %v8729_v47 = vor.u32 %v9585_v48, %v8728_v52  ;;  %v9566_v48 = vld [vmem:[#allocation12 + $0x4] sm:$0xf] }
 0x36f   :  { %5850 = vmatpush.bf16.msra.mxu1 %v8745_v32  ;;  %5408 = vmatpush.bf16.msrb.mxu2 %v8413_v23 }
 0x371   :  { %5838 = vmatpush.bf16.msrb.mxu3 %v8673_v4  ;;  %v9596_v4 = vld [vmem:[#allocation12 + $0xf4] sm:$0xf]  ;;  %v5111_v6 = vpop.f32.mrf.mxu0 }
 0x372   :  { %5409 = vmatmul.bf16.vlgmr.msrb.gmra.mxu2 %v10215_v38  ;;  %5368 = vmatpush.bf16.msrb.mxu0 %v8045_v33  ;;  %v8721_v38 = vor.u32 %v9583_v53, %v8720_v42  ;;  %v8781_v1 = vor.u32 %v9596_v4, %v8778_v55  ;;  %v5112_v32 = vadd.f32 %v5111_v6, %v5099_v21  ;;  %v8554_v42 = vld [vmem:[#allocation9 + $0x738] sm:$0xf0]  ;;  %v8738_v55 = vld [vmem:[#allocation12 + $0xa8] sm:$0xf0]  ;;  %v9582_v21 = vld [vmem:[#allocation12 + $0x84] sm:$0xf] }
 0x373   :  { %5851 = vmatpush.bf16.msra.mxu1 %v8737_v14  ;;  %v8754_v14 = vld [vmem:[#allocation12 + $0xc8] sm:$0xf0]  ;;  %5859 = vmatpush.bf16.msra.mxu2 %v8841_v2 }
 0x374   :  { %vm5427_vm10 = vcmp.gt.f32.partialorder %v5112_v32, 0.0  ;;  %v5431_v33 = vmul.f32 0.2, %v5112_v32  ;;  %v8757_v40 = vor.u32 %v9590_v15, %v8754_v14 }
 0x375   :  { %5839 = vmatpush.bf16.msrb.mxu3 %v8665_v61  ;;  %v9551_v61 = vld [vmem:[#allocation9 + $0x78c] sm:$0xf] }
 0x376   :  { %5369 = vmatpush.bf16.msrb.mxu0 %v8029_v60  ;;  %v8605_v23 = vor.u32 %v9551_v61, %v8602_v18  ;;  %v5435_v45 = vsel %vm5427_vm10, %v5112_v32, %v5431_v33  ;;  %v8541_v18 = vor.u32 %v9535_v62, %v8538_v29  ;;  %v9609_v32 = vld [vmem:[#allocation12 + $0x154] sm:$0xf0]  ;;  %v9607_v33 = vld [vmem:[#allocation12 + $0x144] sm:$0xf0] }
 0x377   :  { %5852 = vmatpush.bf16.msra.mxu1 %v8729_v47  ;;  %v5439_v60 = vpack.c.bf16 %v5435_v45, %v5435_v45  ;;  %v8817_v27 = vor.u32 %v9607_v33, %v8816_v44 }
 0x379   :  { %5840 = vmatpush.bf16.msrb.mxu3 %v8657_v11  ;;  %5370 = vmatmul.bf16.vlgmr.msrb.gmra.mxu0 %v10175_v43  ;;  %v8674_v43 = vld [vmem:[#allocation12 + $0x28] sm:$0xf0]  ;;  %v9547_v11 = vld [vmem:[#allocation9 + $0x76c] sm:$0xf]  ;;  %v5113_v57 = vpop.f32.mrf.mxu0 }
 0x37a   :  { %5414 = vmatpush.bf16.msra.mxu0 %v8653_v63  ;;  %v8677_v16 = vor.u32 %v9570_v22, %v8674_v43  ;;  %v8589_v28 = vor.u32 %v9547_v11, %v8586_v49  ;;  %v8658_v63 = vld [vmem:[#allocation12 + $0x8] sm:$0xf0] }
 0x37b   :  { %5853 = vmatpush.bf16.msra.mxu1 %v8721_v38  ;;  %v5241_v58 = vpop.f32.mrf.mxu1  ;;  %v5204_v38 = vpop.f32.mrf.mxu2  ;;  %v8661_v4 = vor.u32 %v9566_v48, %v8658_v63  ;;  %v8722_v22 = vld [vmem:[#allocation12 + $0x88] sm:$0xf0]  ;;  %v8792_v63 = vld [vmem:[#allocation12 + $0x110] sm:$0xf] }
 0x37c   :  { %5841 = vmatmul.bf16.vlgmr.msrb.gmra.mxu3 %v5439_v60  ;;  %v8834_v38 = vld [vmem:[#allocation12 + $0x168] sm:$0xf0] }
 0x37d   :  { %5885 = vmatpush.bf16.msra.mxu3 %v8717_v7  ;;  %v8765_v7 = vor.u32 %v9592_v24, %v8762_v31  ;;  %v9611_v24 = vld [vmem:[#allocation12 + $0x164] sm:$0xf0] }
 0x37e   :  { %5415 = vmatpush.bf16.msra.mxu0 %v8637_v13  ;;  %v9586_v13 = vld [vmem:[#allocation12 + $0xa4] sm:$0xf] }
 0x37f   :  { %5898 = vmatpush.bf16.msrb.mxu1 %v8781_v1  ;;  %v5228_v35 = vpop.f32.mrf.mxu3 }
 0x380   :  { %v5229_v51 = vadd.f32 %v5228_v35, %v3725_v3 }
 0x381   :  { %5886 = vmatpush.bf16.msra.mxu3 %v8709_v41  ;;  %v8570_v41 = vld [vmem:[#allocation9 + $0x758] sm:$0xf0]  ;;  %v5163_v61 = vpop.f32.mrf.mxu0 }
 0x382   :  { %5416 = vmatpush.bf16.msra.mxu0 %v8621_v9  ;;  %v10271_v52 = vadd.f32 %v5241_v58, %v5229_v51  ;;  %v8573_v12 = vor.u32 %v9543_v36, %v8570_v41  ;;  %v8741_v9 = vor.u32 %v9586_v13, %v8738_v55  ;;  %v8725_v58 = vor.u32 %v9582_v21, %v8722_v22  ;;  %v8808_v51 = vld [vmem:[#allocation12 + $0x130] sm:$0xf]  ;;  %v8800_v36 = vld [vmem:[#allocation12 + $0x120] sm:$0xf]  ;;  %v9603_v41 = vld [vmem:[#allocation12 + $0x124] sm:$0xf0] }
 0x383   :  { %5899 = vmatpush.bf16.msrb.mxu1 %v8773_v19  ;;  %v5243_v47 = vpop.f32.mrf.mxu1  ;;  %v5151_v19 = vadd.f32 %v10260_v34, %v10248_v26  ;;  %v8824_v34 = vld [vmem:[#allocation12 + $0x150] sm:$0xf]  ;;  %v9610_v13 = vld [vmem:[#allocation12 + $0x164] sm:$0xf]  ;;  %v9608_v55 = vld [vmem:[#allocation12 + $0x154] sm:$0xf] }
 0x384   :  { %v8825_v49 = vor.u32 %v9609_v32, %v8824_v34  ;;  %v9601_v47 = vld [vmem:[#allocation12 + $0x114] sm:$0xf0]  ;;  %v8829_v2 = vor.u32 %v9608_v55, %v8826_v59  ;;  %v8794_v34 = vld [vmem:[#allocation12 + $0x118] sm:$0xf0]  ;;  %v8856_v55 = vld [vmem:[#allocation12 + $0x190] sm:$0xf] }
 0x385   :  { %5887 = vmatpush.bf16.msra.mxu3 %v8701_v25  ;;  %v9588_v25 = vld [vmem:[#allocation12 + $0xb4] sm:$0xf]  ;;  %v5164_v43 = vadd.f32 %v5163_v61, %v5151_v19  ;;  %v8793_v57 = vor.u32 %v9601_v47, %v8792_v63  ;;  %v9621_v47 = vld [vmem:[#allocation12 + $0x1b4] sm:$0xf0] }
 0x386   :  { %5417 = vmatpush.bf16.msra.mxu0 %v8605_v23  ;;  %v8749_v53 = vor.u32 %v9588_v25, %v8746_v50  ;;  %v8832_v23 = vld [vmem:[#allocation12 + $0x160] sm:$0xf]  ;;  %v9599_v25 = vld [vmem:[#allocation12 + $0x104] sm:$0xf0]  ;;  %v9612_v50 = vld [vmem:[#allocation12 + $0x174] sm:$0xf] }
 0x387   :  { %5900 = vmatpush.bf16.msrb.mxu1 %v8765_v7  ;;  %v5230_v1 = vpop.f32.mrf.mxu3  ;;  %v5177_v6 = vadd.f32 %v10258_v54, %v5164_v43  ;;  %v8833_v31 = vor.u32 %v9611_v24, %v8832_v23  ;;  %v9604_v19 = vld [vmem:[#allocation12 + $0x134] sm:$0xf]  ;;  %v9602_v43 = vld [vmem:[#allocation12 + $0x124] sm:$0xf]  ;;  %v9629_v23 = vld [vmem:[#allocation12 + $0x1f4] sm:$0xf0] }
 0x388   :  { %v3726_v1 = vperm.slane %v10266_v20, 3  ;;  %v9617_v59 = vld [vmem:[#allocation12 + $0x194] sm:$0xf0] }
 0x389   :  { %5888 = vmatpush.bf16.msra.mxu3 %v8693_v0  ;;  %v8557_v0 = vor.u32 %v9539_v5, %v8554_v42  ;;  %v5165_v3 = vpop.f32.mrf.mxu0  ;;  %v5190_v26 = vadd.f32 %v10256_v46, %v5177_v6  ;;  %5860 = vmatpush.bf16.msra.mxu2 %v8833_v31  ;;  %v8842_v5 = vld [vmem:[#allocation12 + $0x178] sm:$0xf0] }
 0x38a   :  { %5418 = vmatpush.bf16.msra.mxu0 %v8589_v28  ;;  %v9605_v28 = vld [vmem:[#allocation12 + $0x134] sm:$0xf0]  ;;  %v8904_v3 = vld [vmem:[#allocation12 + $0x1f0] sm:$0xf] }
 0x38b   :  { %5901 = vmatpush.bf16.msrb.mxu1 %v8757_v40  ;;  %v5203_v54 = vadd.f32 %v10269_v8, %v5190_v26  ;;  %v8809_v45 = vor.u32 %v9605_v28, %v8808_v51  ;;  %v9600_v26 = vld [vmem:[#allocation12 + $0x114] sm:$0xf]  ;;  %v8905_v32 = vor.u32 %v9629_v23, %v8904_v3  ;;  %v9627_v51 = vld [vmem:[#allocation12 + $0x1e4] sm:$0xf0]  ;;  %v8874_v23 = vld [vmem:[#allocation12 + $0x1b8] sm:$0xf0] }
 0x38c   :  { %v9620_v3 = vld [vmem:[#allocation12 + $0x1b4] sm:$0xf] }
 0x38d   :  { %5889 = vmatpush.bf16.msra.mxu3 %v8685_v56  ;;  %v8733_v56 = vor.u32 %v9584_v10, %v8730_v17  ;;  %5861 = vmatpush.bf16.msra.mxu2 %v8825_v49  ;;  %v8818_v10 = vld [vmem:[#allocation12 + $0x148] sm:$0xf0]  ;;  %v8797_v49 = vor.u32 %v9600_v26, %v8794_v34 }
 0x38e   :  { %5419 = vmatpush.bf16.msra.mxu0 %v8573_v12  ;;  %v10280_v7 = vpop.f32.mrf.mxu2  ;;  %v8784_v12 = vld [vmem:[#allocation12 + $0x100] sm:$0xf]  ;;  %v8866_v26 = vld [vmem:[#allocation12 + $0x1a8] sm:$0xf0] }
 0x38f   :  { %5902 = vmatpush.bf16.msrb.mxu1 %v8749_v53  ;;  %v8785_v42 = vor.u32 %v9599_v25, %v8784_v12  ;;  %v8845_v53 = vor.u32 %v9612_v50, %v8842_v5  ;;  %v5255_v44 = vadd.f32 %v10280_v7, %v10271_v52  ;;  %v8864_v50 = vld [vmem:[#allocation12 + $0x1a0] sm:$0xf]  ;;  %v9619_v5 = vld [vmem:[#allocation12 + $0x1a4] sm:$0xf0] }
 0x391   :  { %5890 = vmatpush.bf16.msra.mxu3 %v8677_v16  ;;  %5862 = vmatpush.bf16.msra.mxu2 %v8817_v27 }
 0x392   :  { %5420 = vmatpush.bf16.msra.mxu0 %v8557_v0  ;;  %v5215_v16 = vpop.f32.mrf.mxu0 }
 0x393   :  { %5903 = vmatpush.bf16.msrb.mxu1 %v8741_v9  ;;  %v5216_v35 = vadd.f32 %v5215_v16, %v5203_v54  ;;  %v9606_v9 = vld [vmem:[#allocation12 + $0x144] sm:$0xf]  ;;  %v8786_v16 = vld [vmem:[#allocation12 + $0x108] sm:$0xf0] }
 0x394   :  { %v8821_v61 = vor.u32 %v9606_v9, %v8818_v10  ;;  %v9598_v54 = vld [vmem:[#allocation12 + $0x104] sm:$0xf] }
 0x395   :  { %5891 = vmatpush.bf16.msra.mxu3 %v8669_v37  ;;  %vm5428_vm11 = vcmp.gt.f32.partialorder %v5216_v35, 0.0  ;;  %v5432_v46 = vmul.f32 0.2, %v5216_v35  ;;  %5863 = vmatpush.bf16.msra.mxu2 %v8809_v45  ;;  %v8789_v33 = vor.u32 %v9598_v54, %v8786_v16  ;;  %v9625_v45 = vld [vmem:[#allocation12 + $0x1d4] sm:$0xf0] }
 0x396   :  { %5421 = vmatpush.bf16.msra.mxu0 %v8541_v18  ;;  %v5256_v8 = vpop.f32.mrf.mxu2  ;;  %v9626_v10 = vld [vmem:[#allocation12 + $0x1e4] sm:$0xf]  ;;  %v9616_v54 = vld [vmem:[#allocation12 + $0x194] sm:$0xf]  ;;  %v8858_v16 = vld [vmem:[#allocation12 + $0x198] sm:$0xf0] }
 0x397   :  { %5904 = vmatpush.bf16.msrb.mxu1 %v8733_v56  ;;  %v5436_v15 = vsel %vm5428_vm11, %v5216_v35, %v5432_v46  ;;  %v8810_v56 = vld [vmem:[#allocation12 + $0x138] sm:$0xf0]  ;;  %v8896_v46 = vld [vmem:[#allocation12 + $0x1e0] sm:$0xf] }
 0x398   :  { %v5440_v40 = vpack.c.bf16 %v5436_v15, %v5436_v15  ;;  %v8813_v22 = vor.u32 %v9604_v19, %v8810_v56  ;;  %v8897_v28 = vor.u32 %v9627_v51, %v8896_v46  ;;  %v9624_v19 = vld [vmem:[#allocation12 + $0x1d4] sm:$0xf]  ;;  %v8890_v56 = vld [vmem:[#allocation12 + $0x1d8] sm:$0xf0] }
 0x399   :  { %5892 = vmatpush.bf16.msra.mxu3 %v8661_v4  ;;  %5422 = vmatmul.bf16.vlgmr.msra.gmra.mxu0 %v10226_v39  ;;  %v8837_v4 = vor.u32 %v9610_v13, %v8834_v38  ;;  %v8865_v13 = vor.u32 %v9619_v5, %v8864_v50 }
 0x39a   :  { %v5217_v48 = vpop.f32.mrf.mxu0  ;;  %5854 = vmatmul.bf16.vlgmr.msra.gmra.mxu1 %v5440_v40  ;;  %5872 = vmatpush.bf16.msrb.mxu0 %v8905_v32 }
 0x39b   :  { %5905 = vmatpush.bf16.msrb.mxu1 %v8725_v58  ;;  %v10278_v11 = vpop.f32.mrf.mxu1  ;;  %v8802_v58 = vld [vmem:[#allocation12 + $0x128] sm:$0xf0] }
 0x39c   :  { %5893 = vmatmul.bf16.vlgmr.msra.gmra.mxu3 %v5439_v60  ;;  %v8801_v60 = vor.u32 %v9603_v41, %v8800_v36  ;;  %v8805_v20 = vor.u32 %v9602_v43, %v8802_v58  ;;  %v9622_v58 = vld [vmem:[#allocation12 + $0x1c4] sm:$0xf] }
 0x39e   :  { %5864 = vmatpush.bf16.msra.mxu2 %v8801_v60  ;;  %5873 = vmatpush.bf16.msrb.mxu0 %v8897_v28  ;;  %v8880_v60 = vld [vmem:[#allocation12 + $0x1c0] sm:$0xf] }
 0x39f   :  { %v10283_v39 = vpop.f32.mrf.mxu3 }
 0x3a2   :  { %5865 = vmatpush.bf16.msra.mxu2 %v8793_v57 }
 0x3a3   :  { %v5295_v14 = vpop.f32.mrf.mxu1 }
 0x3a4   :  { %v8888_v14 = vld [vmem:[#allocation12 + $0x1d0] sm:$0xf] }
 0x3a5   :  { %v8889_v41 = vor.u32 %v9625_v45, %v8888_v14 }
 0x3a6   :  { %5866 = vmatpush.bf16.msra.mxu2 %v8785_v42 }
 0x3a7   :  { %v5282_v37 = vpop.f32.mrf.mxu3  ;;  %5874 = vmatpush.bf16.msrb.mxu0 %v8889_v41 }
 0x3aa   :  { %5911 = vmatpush.bf16.msrb.mxu2 %v8845_v53  ;;  %5906 = vmatmul.bf16.vlgmr.msrb.gmra.mxu1 %v5440_v40 }
 0x3ae   :  { %5912 = vmatpush.bf16.msrb.mxu2 %v8837_v4 }
 0x3af   :  { %v5306_v0 = vpop.f32.mrf.mxu2 }
 0x3b2   :  { %5913 = vmatpush.bf16.msrb.mxu2 %v8829_v2  ;;  %v9615_v2 = vld [vmem:[#allocation12 + $0x184] sm:$0xf0] }
 0x3b4   :  { %v5267_v62 = vpop.f32.mrf.mxu0 }
 0x3b5   :  { %v5268_v35 = vadd.f32 %v5267_v62, %v5255_v44  ;;  %v9628_v62 = vld [vmem:[#allocation12 + $0x1f4] sm:$0xf]  ;;  %v8861_v44 = vor.u32 %v9616_v54, %v8858_v16 }
 0x3b6   :  { %5914 = vmatpush.bf16.msrb.mxu2 %v8821_v61 }
 0x3b7   :  { %v5308_v6 = vpop.f32.mrf.mxu2  ;;  %v5281_v27 = vadd.f32 %v10283_v39, %v5268_v35  ;;  %v9623_v39 = vld [vmem:[#allocation12 + $0x1c4] sm:$0xf0]  ;;  %v9614_v35 = vld [vmem:[#allocation12 + $0x184] sm:$0xf] }
 0x3b8   :  { %v8881_v48 = vor.u32 %v9623_v39, %v8880_v60  ;;  %v8882_v6 = vld [vmem:[#allocation12 + $0x1c8] sm:$0xf0] }
 0x3b9   :  { %v5294_v15 = vadd.f32 %v10278_v11, %v5281_v27  ;;  %v8872_v11 = vld [vmem:[#allocation12 + $0x1b0] sm:$0xf]  ;;  %v8850_v27 = vld [vmem:[#allocation12 + $0x188] sm:$0xf0] }
 0x3ba   :  { %5915 = vmatpush.bf16.msrb.mxu2 %v8813_v22  ;;  %5875 = vmatpush.bf16.msrb.mxu0 %v8881_v48  ;;  %v8873_v25 = vor.u32 %v9621_v47, %v8872_v11  ;;  %v8853_v51 = vor.u32 %v9614_v35, %v8850_v27  ;;  %v5507_v48 = vld [vmem:[#allocation14] sm:$0x3] }
 0x3bb   :  { %v5345_v30 = vpop.f32.mrf.mxu1  ;;  %v5307_v52 = vadd.f32 %v5306_v0, %v5294_v15 }
 0x3bc   :  { %v5269_v24 = vpop.f32.mrf.mxu0 }
 0x3bd   :  { %v8877_v24 = vor.u32 %v9620_v3, %v8874_v23 }
 0x3be   :  { %5916 = vmatpush.bf16.msrb.mxu2 %v8805_v20  ;;  %5876 = vmatpush.bf16.msrb.mxu0 %v8873_v25  ;;  %v8885_v20 = vor.u32 %v9622_v58, %v8882_v6  ;;  %v5950_v6 = vpop.permute.xlu0 %5949 }
 0x3bf   :  { %v5332_v29 = vpop.f32.mrf.mxu3 }
 0x3c0   :  { %v5333_v17 = vadd.f32 %v5332_v29, %v3726_v1  ;;  %v8848_v1 = vld [vmem:[#allocation12 + $0x180] sm:$0xf]  ;;  %v8906_v29 = vld [vmem:[#allocation12 + $0x1f8] sm:$0xf0] }
 0x3c1   :  { %v8849_v0 = vor.u32 %v9615_v2, %v8848_v1  ;;  %v8909_v9 = vor.u32 %v9628_v62, %v8906_v29 }
 0x3c2   :  { %v10286_v18 = vadd.f32 %v5345_v30, %v5333_v17  ;;  %5917 = vmatpush.bf16.msrb.mxu2 %v8797_v49  ;;  %5877 = vmatpush.bf16.msrb.mxu0 %v8865_v13  ;;  %v8857_v30 = vor.u32 %v9617_v59, %v8856_v55  ;;  %v8898_v17 = vld [vmem:[#allocation12 + $0x1e8] sm:$0xf0]  ;;  %v5943_v55 = vld [vmem:[#allocation15] sm:$0x3] }
 0x3c3   :  { %v5347_v21 = vpop.f32.mrf.mxu1  ;;  %v8901_v61 = vor.u32 %v9626_v10, %v8898_v17  ;;  %5954 = vst [vmem:[#allocation1] ss:$9 sm:$0xff] %v5943_v55 }
 0x3c4   :  { %v8893_v21 = vor.u32 %v9624_v19, %v8890_v56 }
 0x3c6   :  { %5918 = vmatpush.bf16.msrb.mxu2 %v8789_v33  ;;  %5878 = vmatpush.bf16.msrb.mxu0 %v8857_v30 }
 0x3c7   :  { %v5334_v31 = vpop.f32.mrf.mxu3 }
 0x3c8   :  { %v9618_v31 = vld [vmem:[#allocation12 + $0x1a4] sm:$0xf] }
 0x3c9   :  { %v8869_v32 = vor.u32 %v9618_v31, %v8866_v26 }
 0x3ca   :  { %5879 = vmatpush.bf16.msrb.mxu0 %v8849_v0 }
 0x3ce   :  { %5924 = vmatpush.bf16.msra.mxu0 %v8909_v9  ;;  %v5955_v9 = vld [vmem:[#allocation1] sm:$0xff] }
 0x3cf   :  { %v10294_v40 = vpop.f32.mrf.mxu2 }
 0x3d0   :  { %v5359_v33 = vadd.f32 %v10294_v40, %v10286_v18 }
 0x3d2   :  { %5925 = vmatpush.bf16.msra.mxu0 %v8901_v61 }
 0x3d6   :  { %v5319_v7 = vpop.f32.mrf.mxu0  ;;  %5926 = vmatpush.bf16.msra.mxu0 %v8893_v21 }
 0x3d7   :  { %v5320_v37 = vadd.f32 %v5319_v7, %v5307_v52  ;;  %v5360_v53 = vpop.f32.mrf.mxu2 }
 0x3d9   :  { %vm5429_vm12 = vcmp.gt.f32.partialorder %v5320_v37, 0.0  ;;  %v5433_v63 = vmul.f32 0.2, %v5320_v37 }
 0x3da   :  { %5927 = vmatpush.bf16.msra.mxu0 %v8885_v20  ;;  %v5952_v20 = vperm.slane %v5950_v6, 0 }
 0x3db   :  { %v10292_v36 = vpop.f32.mrf.mxu1  ;;  %v5437_v57 = vsel %vm5429_vm12, %v5320_v37, %v5433_v63  ;;  %v5509_v63 = vperm.slane %v5507_v48, 0 }
 0x3dc   :  { %v5441_v42 = vpack.c.bf16 %v5437_v57, %v5437_v57 }
 0x3de   :  { %v5321_v38 = vpop.f32.mrf.mxu0  ;;  %5867 = vmatmul.bf16.vlgmr.msra.gmra.mxu2 %v5441_v42  ;;  %5928 = vmatpush.bf16.msra.mxu0 %v8877_v24 }
 0x3df   :  { %v10296_v8 = vpop.f32.mrf.mxu3 }
 0x3e2   :  { %5929 = vmatpush.bf16.msra.mxu0 %v8869_v32 }
 0x3e3   :  { %v5399_v12 = vpop.f32.mrf.mxu1 }
 0x3e6   :  { %5930 = vmatpush.bf16.msra.mxu0 %v8861_v44 }
 0x3e7   :  { %v5386_v4 = vpop.f32.mrf.mxu3 }
 0x3ea   :  { %5931 = vmatpush.bf16.msra.mxu0 %v8853_v51 }
 0x3ee   :  { %5919 = vmatmul.bf16.vlgmr.msrb.gmra.mxu2 %v5441_v42 }
 0x3f5   :  { %v5410_v22 = vpop.f32.mrf.mxu2 }
 0x3f6   :  { %v5371_v43 = vpop.f32.mrf.mxu0 }
 0x3f7   :  { %v5372_v46 = vadd.f32 %v5371_v43, %v5359_v33  ;;  %v5956_v43 = vld [vmem:[#allocation1 + $0x9] sm:$0xff] }
 0x3f9   :  { %v5385_v28 = vadd.f32 %v10296_v8, %v5372_v46 }
 0x3fb   :  { %v5398_v14 = vadd.f32 %v10292_v36, %v5385_v28  ;;  %v5510_v36 = vperm.slane %v5507_v48, 1 }
 0x3fd   :  { %v5412_v34 = vpop.f32.mrf.mxu2  ;;  %v5411_v45 = vadd.f32 %v5410_v22, %v5398_v14 }
 0x3fe   :  { %v5373_v49 = vpop.f32.mrf.mxu0 }
 0x3ff   :  { %v5842_v15 = vpop.f32.mrf.mxu3 }
 0x400   :  { %v5843_v47 = vadd.f32 %v5842_v15, %v5509_v63 }
 0x407   :  { %v5844_v41 = vpop.f32.mrf.mxu3 }
 0x416   :  { %v5423_v52 = vpop.f32.mrf.mxu0 }
 0x417   :  { %v5424_v7 = vadd.f32 %v5423_v52, %v5411_v45  ;;  %v5855_v57 = vpop.f32.mrf.mxu1 }
 0x418   :  { %v5856_v8 = vadd.f32 %v5855_v57, %v5843_v47 }
 0x419   :  { %vm5430_vm13 = vcmp.gt.f32.partialorder %v5424_v7, 0.0  ;;  %v5434_v60 = vmul.f32 0.2, %v5424_v7 }
 0x41b   :  { %v5438_v39 = vsel %vm5430_vm13, %v5424_v7, %v5434_v60 }
 0x41c   :  { %v5442_v37 = vpack.c.bf16 %v5438_v39, %v5438_v39 }
 0x41e   :  { %v5425_v40 = vpop.f32.mrf.mxu0  ;;  %5880 = vmatmul.bf16.vlgmr.msrb.gmra.mxu0 %v5442_v37 }
 0x41f   :  { %v5894_v18 = vpop.f32.mrf.mxu3  ;;  %v5857_v12 = vpop.f32.mrf.mxu1 }
 0x420   :  { %v5895_v25 = vadd.f32 %v5894_v18, %v5510_v36 }
 0x427   :  { %v5896_v11 = vpop.f32.mrf.mxu3  ;;  %v5907_v50 = vpop.f32.mrf.mxu1 }
 0x428   :  { %v5908_v5 = vadd.f32 %v5907_v50, %v5895_v25 }
 0x42e   :  { %5932 = vmatmul.bf16.vlgmr.msra.gmra.mxu0 %v5442_v37 }
 0x42f   :  { %v5909_v42 = vpop.f32.mrf.mxu1 }
 0x461   :  { %v5868_v53 = vpop.f32.mrf.mxu2 }
 0x462   :  { %v5869_v59 = vadd.f32 %v5868_v53, %v5856_v8 }
 0x469   :  { %v5870_v13 = vpop.f32.mrf.mxu2 }
 0x471   :  { %v5920_v38 = vpop.f32.mrf.mxu2 }
 0x472   :  { %v5921_v10 = vadd.f32 %v5920_v38, %v5908_v5 }
 0x479   :  { %v5922_v4 = vpop.f32.mrf.mxu2 }
 0x49b   :  { %v5881_v30 = vpop.f32.mrf.mxu0 }
 0x49c   :  { %v5882_v1 = vadd.f32 %v5881_v30, %v5869_v59 }
 0x49e   :  { %vm5937_vm14 = vcmp.gt.f32.partialorder %v5882_v1, 0.0  ;;  %v5939_v2 = vmul.f32 0.2, %v5882_v1 }
 0x4a0   :  { %v5941_v0 = vsel %vm5937_vm14, %v5882_v1, %v5939_v2 }
 0x4a1   :  { %v5944_v62 = vpack.c.bf16 %v5941_v0, %v5941_v0 }
 0x4a3   :  { %v5883_v29 = vpop.f32.mrf.mxu0  ;;  %5966 = vmatpush.bf16.xpose.msrb.mxu3 %v5944_v62 }
 0x4aa   :  { %5967 = vmatmul.bf16.vlgmr.msrb.gmra.mxu3 %v5955_v9 }
 0x4ab   :  { %v5933_v17 = vpop.f32.mrf.mxu0 }
 0x4ac   :  { %v5934_v61 = vadd.f32 %v5933_v17, %v5921_v10 }
 0x4ae   :  { %vm5938_vm15 = vcmp.gt.f32.partialorder %v5934_v61, 0.0  ;;  %v5940_v19 = vmul.f32 0.2, %v5934_v61 }
 0x4b0   :  { %v5942_v56 = vsel %vm5938_vm15, %v5934_v61, %v5940_v19 }
 0x4b1   :  { %v5945_v21 = vpack.c.bf16 %v5942_v56, %v5942_v56 }
 0x4b3   :  { %v5935_v22 = vpop.f32.mrf.mxu0  ;;  %5979 = vmatpush.bf16.xpose.msra.mxu1 %v5945_v21 }
 0x4ba   :  { %5980 = vmatmul.bf16.vlgmr.msra.gmra.mxu1 %v5956_v43 }
 0x52d   :  { %v5968_v58 = vpop.f32.mrf.mxu3 }
 0x52e   :  { %v5969_v23 = vadd.f32 %v5968_v58, %v5952_v20 }
 0x535   :  { %v5970_v3 = vpop.f32.mrf.mxu3 }
 0x537   :  { %v5981_v24 = vpop.f32.mrf.mxu1 }
 0x538   :  { %v5982_v31 = vadd.f32 %v5981_v24, %v5969_v23 }
 0x53a   :  { %v5985_v26 = vsub.f32 0.0, %v5982_v31 }
 0x53c   :  { %v5986_v34 = vmul.f32 1.442695, %v5985_v26 }
 0x53e   :  { %9648 = vpow2.f32 %v5986_v34 }
 0x53f   :  { %v5983_v32 = vpop.f32.mrf.mxu1 }
 0x544   :  { %v9649_v49 = vpop.eup %9648 }
 0x545   :  { %v5988_v54 = vadd.f32 1.0, %v9649_v49 }
 0x547   :  { %9650 = vrcp.f32 %v5988_v54 }
 0x54d   :  { %v9651_v16 = vpop.eup %9650 }
 0x54e   :  { %5991 = vst.msk [vmem:[#allocation17] sm:$0x1] %vm5990_vm0, %v9651_v16 }
 0x54f   :  { %6002 = dma.vmem_to_hbm [thread:$0]  %s5998_s23, 16, %s6000_s14, [#allocation5]  }
 0x550   :  { %9879 = dma.done.wait [#allocation5], 16  }
 0x551   :  { %9880 = vsyncadd [#allocation5], 4294967280 }
 0x552   :  { %6007 = vsyncpa [#allocation4], 1 }
 0x553   :  { %6008 = vsyncpa [#allocation7], 1 }
 0x554   :  { %6009 = vsyncpa [#allocation10], 1 }
 0x555   :  { %6010 = vsyncpa [#allocation13], 1 }
 0x556   :  { %6011 = vsyncpa [#allocation16], 1 }
 0x557   :  { %6012 = vsyncpa [#allocation5], 1 }

</bundles_post_ra>
